<compile_context>
chip_gen: v6e
topology: v6e:2x2x1
jax: 0.10.0
libtpu: 0.0.40
codegen_flags: <defaults>
</compile_context>

<pallas_src>
import jax
import jax.numpy as jnp
from jax.experimental import pallas as pl
from jax.experimental.pallas import tpu as pltpu


def bc_kernel(x_ref, w1_ref, b1_ref, w2_ref, b2_ref, o_ref):
    # x streams in as f32; the f32->bf16 pack is a VPU op that hides under the
    # MXU.  Whole hot path (2 matmuls + bias + relu) runs in one grid step.
    x = x_ref[...].astype(jnp.bfloat16)                               # (bm, d_in)
    h = jnp.dot(x, w1_ref[...], preferred_element_type=jnp.float32)   # f32 (bm, d_h)
    h = jnp.maximum(h + b1_ref[...], 0.0)                             # f32 bias + relu
    o = jnp.dot(h.astype(jnp.bfloat16), w2_ref[...],
                preferred_element_type=jnp.float32) + b2_ref[...]     # f32 (bm, d_out_pad)
    o_ref[...] = o.astype(o_ref.dtype)


def _round_up(v, m):
    return ((v + m - 1) // m) * m


def prepare_bc_params(w1, b1, w2, b2):
    """One-time parameter preparation (hoisted out of the per-call path).

    w1: (d_in, d_h), b1: (d_h,) or (1, d_h), w2: (d_h, d_out),
    b2: (d_out,) or (1, d_out) -- i.e. nn.Linear weights pre-transposed to
    (in, out).  Returns bf16 weights, f32 biases, with the output layer
    zero-padded to a multiple of 128 lanes (lane-dense unmasked stores)."""
    d_out = w2.shape[1]
    d_out_pad = _round_up(max(d_out, 1), 128)
    w2_p = jnp.pad(w2, ((0, 0), (0, d_out_pad - d_out)))
    b2_p = jnp.pad(jnp.reshape(b2, (1, -1)), ((0, 0), (0, d_out_pad - d_out)))
    return {
        "w1": w1.astype(jnp.bfloat16),
        "b1": jnp.reshape(b1, (1, -1)).astype(jnp.float32),
        "w2": w2_p.astype(jnp.bfloat16),
        "b2": b2_p.astype(jnp.float32),
        "d_out": d_out,
    }


def _batch_tiling(B, bm_max):
    """Pick the tile COUNT first, then the tile size.

    Avoids over-padding ragged batches (B=300 -> 2 tiles of 152, 1.3% pad,
    instead of 1 tile of 512 with 41% pad) and keeps the grid length >=2 and
    even when possible so both v7x TensorCores get work."""
    num_tiles = max(1, pl.cdiv(B, bm_max))
    if num_tiles % 2 == 1 and B >= 16:
        num_tiles += 1
    bm = max(8, _round_up(pl.cdiv(B, num_tiles), 8))
    return bm, num_tiles * bm


_USE_BUFFERED_WEIGHTS = True  # pl.Buffered(1): single-buffer resident weights


def bc_forward(x, params, *, bm_max=512):
    """x: (B, d_in) f32, params from prepare_bc_params(). Returns (B, d_out) f32."""
    global _USE_BUFFERED_WEIGHTS
    w1, b1, w2, b2, d_out = (params["w1"], params["b1"], params["w2"],
                             params["b2"], params["d_out"])
    B, d_in = x.shape
    d_h = w1.shape[1]
    d_out_pad = w2.shape[1]

    bm, B_pad = _batch_tiling(B, bm_max)
    x_p = x if B_pad == B else jnp.pad(x, ((0, B_pad - B), (0, 0)))
    grid = (B_pad // bm,)

    cost = pl.CostEstimate(
        flops=2 * B_pad * (d_in * d_h + d_h * d_out_pad),
        transcendentals=0,
        bytes_accessed=(x_p.size * 4 + w1.size * 2 + w2.size * 2
                        + b1.size * 4 + b2.size * 4 + B_pad * d_out_pad * 4),
    )

    def call(use_buffered):
        def resident(shape):
            # Constant-index blocks: no double buffer needed (frees ~2 MiB VMEM).
            if use_buffered:
                return pl.BlockSpec(shape, lambda i: (0, 0),
                                    pipeline_mode=pl.Buffered(1))
            return pl.BlockSpec(shape, lambda i: (0, 0))

        return pl.pallas_call(
            bc_kernel,
            out_shape=jax.ShapeDtypeStruct((B_pad, d_out_pad), jnp.float32),
            grid_spec=pltpu.PrefetchScalarGridSpec(
                num_scalar_prefetch=0,
                grid=grid,
                in_specs=[
                    pl.BlockSpec((bm, d_in), lambda i: (i, 0)),  # x tile (streams, f32)
                    resident((d_in, d_h)),                       # W1 bf16 (resident)
                    resident((1, d_h)),                          # b1 f32  (resident)
                    resident((d_h, d_out_pad)),                  # W2 bf16 (resident)
                    resident((1, d_out_pad)),                    # b2 f32  (resident)
                ],
                out_specs=pl.BlockSpec((bm, d_out_pad), lambda i: (i, 0)),
            ),
            compiler_params=pltpu.CompilerParams(
                dimension_semantics=("parallel",),
                vmem_limit_bytes=32 * 1024 * 1024,
            ),
            cost_estimate=cost,
        )(x_p, w1, b1, w2, b2)

    if _USE_BUFFERED_WEIGHTS:
        try:
            out = call(True)
        except Exception:
            _USE_BUFFERED_WEIGHTS = False
            out = call(False)
    else:
        out = call(False)

    # TODO(synk): fuse this slice into the consumer to avoid one extra HBM pass
    # over the padded output when embedding into a larger jit'd graph.
    return out[:B, :d_out]


def _bf16_reference(x, w1, b1, w2, b2):
    """Reference computed with the same bf16-operand / f32-accumulate recipe."""
    h = jnp.dot(x.astype(jnp.bfloat16), w1.astype(jnp.bfloat16),
                preferred_element_type=jnp.float32) + b1
    h = jnp.maximum(h, 0.0)
    return jnp.dot(h.astype(jnp.bfloat16), w2.astype(jnp.bfloat16),
                   preferred_element_type=jnp.float32) + b2


if __name__ == "__main__":
    # Module shapes: input_size=2048, hidden=512, output_size=6 (BC defaults).
    D_IN, D_H, D_OUT = 2048, 512, 6

    key = jax.random.PRNGKey(0)
    kx, k1, k2, k3, k4, kx2 = jax.random.split(key, 6)

    # Deterministic synthetic parameters (Kaiming-ish scaling), stored as
    # (in, out) so the kernel matmuls directly (== nn.Linear weight.T).
    w1 = jax.random.normal(k1, (D_IN, D_H), dtype=jnp.float32) * (1.0 / jnp.sqrt(D_IN))
    b1 = jax.random.normal(k2, (1, D_H), dtype=jnp.float32) * 0.01
    w2 = jax.random.normal(k3, (D_H, D_OUT), dtype=jnp.float32) * (1.0 / jnp.sqrt(D_H))
    b2 = jax.random.normal(k4, (1, D_OUT), dtype=jnp.float32) * 0.01

    # One-time parameter prep (hoisted out of the per-call path).
    params = prepare_bc_params(w1, b1, w2, b2)

    # Case 1: small batch (single grid step).
    B1 = 8
    x1 = jax.random.normal(kx, (B1, D_IN), dtype=jnp.float32)
    out1 = jax.block_until_ready(bc_forward(x1, params))
    assert out1.shape == (B1, D_OUT)

    # Case 2: ragged larger batch (2 tiles of 152, even grid for v7x).
    B2 = 300
    x2 = jax.random.normal(kx2, (B2, D_IN), dtype=jnp.float32)
    out2 = jax.block_until_ready(bc_forward(x2, params))
    assert out2.shape == (B2, D_OUT)

    # Correctness: tight vs bf16-recipe reference, loose vs pure-f32 reference.
    for x, out in ((x1, out1), (x2, out2)):
        ref_bf = _bf16_reference(x, w1, b1, w2, b2)
        ref_f32 = jnp.maximum(x @ w1 + b1, 0.0) @ w2 + b2
        assert jnp.allclose(out, ref_bf, atol=1e-2, rtol=1e-2), "mismatch vs bf16 reference"
        assert jnp.allclose(out, ref_f32, atol=5e-2, rtol=5e-2), "mismatch vs f32 reference"

    print("KERNEL_OK")
</pallas_src>

<mosaic_0001>
module attributes {stable_mosaic.version = 11 : i64} {
  func.func @bc_kernel(%arg0: i32, %arg1: memref<8x2048xf32, #tpu.memory_space<vmem>>, %arg2: memref<2048x512xbf16, #tpu.memory_space<vmem>>, %arg3: memref<1x512xf32, #tpu.memory_space<vmem>>, %arg4: memref<512x128xbf16, #tpu.memory_space<vmem>>, %arg5: memref<1x128xf32, #tpu.memory_space<vmem>>, %arg6: memref<8x128xf32, #tpu.memory_space<vmem>>) attributes {dimension_semantics = [#tpu.dimension_semantics<parallel>], iteration_bounds = array<i64: 1>, scalar_prefetch = 0 : i64, scratch_operands = 0 : i64, tpu.core_type = #tpu.core_type<tc>, window_params = [{transform_indices = @transform_0, window_bounds = array<i64: 8, 2048>}, {pipeline_mode = #tpu.pipeline_mode<synchronous>, transform_indices = @transform_1, window_bounds = array<i64: 2048, 512>}, {pipeline_mode = #tpu.pipeline_mode<synchronous>, transform_indices = @transform_2, window_bounds = array<i64: 1, 512>}, {pipeline_mode = #tpu.pipeline_mode<synchronous>, transform_indices = @transform_3, window_bounds = array<i64: 512, 128>}, {pipeline_mode = #tpu.pipeline_mode<synchronous>, transform_indices = @transform_4, window_bounds = array<i64: 1, 128>}, {transform_indices = @transform_5, window_bounds = array<i64: 8, 128>}]} {
    %c0 = arith.constant 0 : index
    %c0_0 = arith.constant 0 : index
    %0 = vector.load %arg1[%c0, %c0_0] : memref<8x2048xf32, #tpu.memory_space<vmem>>, vector<8x2048xf32>
    %1 = arith.truncf %0 : vector<8x2048xf32> to vector<8x2048xbf16>
    %c0_1 = arith.constant 0 : index
    %c0_2 = arith.constant 0 : index
    %2 = vector.load %arg2[%c0_1, %c0_2] : memref<2048x512xbf16, #tpu.memory_space<vmem>>, vector<2048x512xbf16>
    %cst = arith.constant dense<0.000000e+00> : vector<8x512xf32>
    %3 = tpu.matmul %1, %2, %cst {dimension_numbers = #tpu.dot_dimension_numbers<[1], [0], [0], [1], [0, 0, 1, 1], [], []>} : vector<8x2048xbf16>, vector<2048x512xbf16>, vector<8x512xf32> -> vector<8x512xf32>
    %c0_3 = arith.constant 0 : index
    %c0_4 = arith.constant 0 : index
    %4 = vector.load %arg3[%c0_3, %c0_4] : memref<1x512xf32, #tpu.memory_space<vmem>>, vector<1x512xf32>
    %5 = vector.broadcast %4 : vector<1x512xf32> to vector<8x512xf32>
    %6 = arith.addf %3, %5 : vector<8x512xf32>
    %cst_5 = arith.constant 0.000000e+00 : f32
    %7 = vector.broadcast %cst_5 : f32 to vector<8x512xf32>
    %8 = arith.maximumf %6, %7 : vector<8x512xf32>
    %9 = arith.truncf %8 : vector<8x512xf32> to vector<8x512xbf16>
    %c0_6 = arith.constant 0 : index
    %c0_7 = arith.constant 0 : index
    %10 = vector.load %arg4[%c0_6, %c0_7] : memref<512x128xbf16, #tpu.memory_space<vmem>>, vector<512x128xbf16>
    %cst_8 = arith.constant dense<0.000000e+00> : vector<8x128xf32>
    %11 = tpu.matmul %9, %10, %cst_8 {dimension_numbers = #tpu.dot_dimension_numbers<[1], [0], [0], [1], [0, 0, 1, 1], [], []>} : vector<8x512xbf16>, vector<512x128xbf16>, vector<8x128xf32> -> vector<8x128xf32>
    %c0_9 = arith.constant 0 : index
    %c0_10 = arith.constant 0 : index
    %12 = vector.load %arg5[%c0_9, %c0_10] : memref<1x128xf32, #tpu.memory_space<vmem>>, vector<1x128xf32>
    %13 = vector.broadcast %12 : vector<1x128xf32> to vector<8x128xf32>
    %14 = arith.addf %11, %13 : vector<8x128xf32>
    %c0_11 = arith.constant 0 : index
    %c0_12 = arith.constant 0 : index
    %15 = vector.load %arg6[%c0_11, %c0_12] : memref<8x128xf32, #tpu.memory_space<vmem>>, vector<8x128xf32>
    tpu.vector_store %arg6[%c0_11, %c0_12], %14 {strides = array<i32>} : memref<8x128xf32, #tpu.memory_space<vmem>>, vector<8x128xf32>,
    return
  }
  func.func @transform_0(%arg0: i32) -> (i32, i32) {
    %c0_i32 = arith.constant 0 : i32
    %c0_i32_0 = arith.constant 0 : i32
    return %arg0, %c0_i32 : i32, i32
  }
  func.func @transform_1(%arg0: i32) -> (i32, i32) {
    %c0_i32 = arith.constant 0 : i32
    %c0_i32_0 = arith.constant 0 : i32
    %c0_i32_1 = arith.constant 0 : i32
    return %c0_i32, %c0_i32_0 : i32, i32
  }
  func.func @transform_2(%arg0: i32) -> (i32, i32) {
    %c0_i32 = arith.constant 0 : i32
    %c0_i32_0 = arith.constant 0 : i32
    %c0_i32_1 = arith.constant 0 : i32
    return %c0_i32, %c0_i32_0 : i32, i32
  }
  func.func @transform_3(%arg0: i32) -> (i32, i32) {
    %c0_i32 = arith.constant 0 : i32
    %c0_i32_0 = arith.constant 0 : i32
    %c0_i32_1 = arith.constant 0 : i32
    return %c0_i32, %c0_i32_0 : i32, i32
  }
  func.func @transform_4(%arg0: i32) -> (i32, i32) {
    %c0_i32 = arith.constant 0 : i32
    %c0_i32_0 = arith.constant 0 : i32
    %c0_i32_1 = arith.constant 0 : i32
    return %c0_i32, %c0_i32_0 : i32, i32
  }
  func.func @transform_5(%arg0: i32) -> (i32, i32) {
    %c0_i32 = arith.constant 0 : i32
    %c0_i32_0 = arith.constant 0 : i32
    return %arg0, %c0_i32 : i32, i32
  }
}

module attributes {stable_mosaic.version = 11 : i64} {
  func.func @bc_kernel(%arg0: i32, %arg1: memref<8x2048xf32, #tpu.memory_space<vmem>>, %arg2: memref<2048x512xbf16, #tpu.memory_space<vmem>>, %arg3: memref<1x512xf32, #tpu.memory_space<vmem>>, %arg4: memref<512x128xbf16, #tpu.memory_space<vmem>>, %arg5: memref<1x128xf32, #tpu.memory_space<vmem>>, %arg6: memref<8x128xf32, #tpu.memory_space<vmem>>) attributes {dimension_semantics = [#tpu.dimension_semantics<parallel>], iteration_bounds = array<i64: 1>, scalar_prefetch = 0 : i64, scratch_operands = 0 : i64, tpu.core_type = #tpu.core_type<tc>, window_params = [{transform_indices = @transform_0, window_bounds = array<i64: 8, 2048>}, {pipeline_mode = #tpu.pipeline_mode<synchronous>, transform_indices = @transform_1, window_bounds = array<i64: 2048, 512>}, {pipeline_mode = #tpu.pipeline_mode<synchronous>, transform_indices = @transform_2, window_bounds = array<i64: 1, 512>}, {pipeline_mode = #tpu.pipeline_mode<synchronous>, transform_indices = @transform_3, window_bounds = array<i64: 512, 128>}, {pipeline_mode = #tpu.pipeline_mode<synchronous>, transform_indices = @transform_4, window_bounds = array<i64: 1, 128>}, {transform_indices = @transform_5, window_bounds = array<i64: 8, 128>}]} {
    %c0 = arith.constant 0 : index
    %c0_0 = arith.constant 0 : index
    %0 = vector.load %arg1[%c0, %c0_0] : memref<8x2048xf32, #tpu.memory_space<vmem>>, vector<8x2048xf32>
    %1 = arith.truncf %0 : vector<8x2048xf32> to vector<8x2048xbf16>
    %c0_1 = arith.constant 0 : index
    %c0_2 = arith.constant 0 : index
    %2 = vector.load %arg2[%c0_1, %c0_2] : memref<2048x512xbf16, #tpu.memory_space<vmem>>, vector<2048x512xbf16>
    %cst = arith.constant dense<0.000000e+00> : vector<8x512xf32>
    %3 = tpu.matmul %1, %2, %cst {dimension_numbers = #tpu.dot_dimension_numbers<[1], [0], [0], [1], [0, 0, 1, 1], [], []>} : vector<8x2048xbf16>, vector<2048x512xbf16>, vector<8x512xf32> -> vector<8x512xf32>
    %c0_3 = arith.constant 0 : index
    %c0_4 = arith.constant 0 : index
    %4 = vector.load %arg3[%c0_3, %c0_4] : memref<1x512xf32, #tpu.memory_space<vmem>>, vector<1x512xf32>
    %5 = vector.broadcast %4 : vector<1x512xf32> to vector<8x512xf32>
    %6 = arith.addf %3, %5 : vector<8x512xf32>
    %cst_5 = arith.constant 0.000000e+00 : f32
    %7 = vector.broadcast %cst_5 : f32 to vector<8x512xf32>
    %8 = arith.maximumf %6, %7 : vector<8x512xf32>
    %9 = arith.truncf %8 : vector<8x512xf32> to vector<8x512xbf16>
    %c0_6 = arith.constant 0 : index
    %c0_7 = arith.constant 0 : index
    %10 = vector.load %arg4[%c0_6, %c0_7] : memref<512x128xbf16, #tpu.memory_space<vmem>>, vector<512x128xbf16>
    %cst_8 = arith.constant dense<0.000000e+00> : vector<8x128xf32>
    %11 = tpu.matmul %9, %10, %cst_8 {dimension_numbers = #tpu.dot_dimension_numbers<[1], [0], [0], [1], [0, 0, 1, 1], [], []>} : vector<8x512xbf16>, vector<512x128xbf16>, vector<8x128xf32> -> vector<8x128xf32>
    %c0_9 = arith.constant 0 : index
    %c0_10 = arith.constant 0 : index
    %12 = vector.load %arg5[%c0_9, %c0_10] : memref<1x128xf32, #tpu.memory_space<vmem>>, vector<1x128xf32>
    %13 = vector.broadcast %12 : vector<1x128xf32> to vector<8x128xf32>
    %14 = arith.addf %11, %13 : vector<8x128xf32>
    %c0_11 = arith.constant 0 : index
    %c0_12 = arith.constant 0 : index
    %15 = vector.load %arg6[%c0_11, %c0_12] : memref<8x128xf32, #tpu.memory_space<vmem>>, vector<8x128xf32>
    tpu.vector_store %arg6[%c0_11, %c0_12], %14 {strides = array<i32>} : memref<8x128xf32, #tpu.memory_space<vmem>>, vector<8x128xf32>,
    return
  }
  func.func @transform_0(%arg0: i32) -> (i32, i32) {
    %c0_i32 = arith.constant 0 : i32
    %c0_i32_0 = arith.constant 0 : i32
    return %arg0, %c0_i32 : i32, i32
  }
  func.func @transform_1(%arg0: i32) -> (i32, i32) {
    %c0_i32 = arith.constant 0 : i32
    %c0_i32_0 = arith.constant 0 : i32
    %c0_i32_1 = arith.constant 0 : i32
    return %c0_i32, %c0_i32_0 : i32, i32
  }
  func.func @transform_2(%arg0: i32) -> (i32, i32) {
    %c0_i32 = arith.constant 0 : i32
    %c0_i32_0 = arith.constant 0 : i32
    %c0_i32_1 = arith.constant 0 : i32
    return %c0_i32, %c0_i32_0 : i32, i32
  }
  func.func @transform_3(%arg0: i32) -> (i32, i32) {
    %c0_i32 = arith.constant 0 : i32
    %c0_i32_0 = arith.constant 0 : i32
    %c0_i32_1 = arith.constant 0 : i32
    return %c0_i32, %c0_i32_0 : i32, i32
  }
  func.func @transform_4(%arg0: i32) -> (i32, i32) {
    %c0_i32 = arith.constant 0 : i32
    %c0_i32_0 = arith.constant 0 : i32
    %c0_i32_1 = arith.constant 0 : i32
    return %c0_i32, %c0_i32_0 : i32, i32
  }
  func.func @transform_5(%arg0: i32) -> (i32, i32) {
    %c0_i32 = arith.constant 0 : i32
    %c0_i32_0 = arith.constant 0 : i32
    return %arg0, %c0_i32 : i32, i32
  }
}

</mosaic_0001>

<bundles_post_ra>
// kernel: tpu_custom_call.1
= control target key start
LH: loop header
LB: loop body
LE: loop exit
PB: predicated region body
PF: predicated region fallthrough
CT: control target
= control target key end

     0   :  { %10 = vsyncpa [#allocation3], 0  ;;  %s5918_s0 = inlined_call_operand.hbm [shape: f32[8,2048], index: 0, kind: input, shape index: {}]   ;;  %s5919_s1 = inlined_call_operand.hbm [shape: bf16[2048,512], index: 1, kind: input, shape index: {}]   ;;  %s5920_s2 = inlined_call_operand.hbm [shape: f32[1,512], index: 2, kind: input, shape index: {}]   ;;  %s5921_s3 = inlined_call_operand.hbm [shape: bf16[512,128], index: 3, kind: input, shape index: {}]   ;;  %s5922_s4 = inlined_call_operand.hbm [shape: f32[1,128], index: 4, kind: input, shape index: {}]   ;;  %s5923_s5 = inlined_call_operand.hbm [shape: f32[8,128], index: 5, kind: output, shape index: {}]  }
   0x1   :  { %11 = vsyncpa [#allocation6], 0 }
   0x2   :  { %12 = vsyncpa [#allocation9], 0 }
   0x3   :  { %13 = vsyncpa [#allocation4], 0  ;;  %s5763_s18 = smov [#allocation5]  }
   0x4   :  { %s29_s19 = sshll.u32 %s5763_s18, 4  ;;  %s30_s19 = int_to_ptr.vmem [resolvable:$true] %s29_s19 }
   0x5   :  { %s5643_s20 = scalar_lea.vmem %s30_s19, 65536  ;;  %p5648_p1 = scmp.lt.s32.totalorder %s30_s19, %s30_s19 }
   0x6   :  { %p5644_p0 = scmp.ne.s32.totalorder %s30_s19, %s5643_s20  ;;  %p5649_p2 = scmp.lt.s32.totalorder %s5643_s20, %s5643_s20 }
   0x8   :  { %p5650_p3 = por %p5649_p2, %p5648_p1 }
   0xa   :  { %p5651_p4 = pnand %p5650_p3, %p5644_p0 }
   0xc   :  { %5654 = shalt.err (!%p5651_p4)
}
   0xd   :  { %s5764_s21 = smov 256   ;;  %s5765_s22 = smov 16  }
   0xe   :  { %35 = dma.hbm_to_vmem [thread:$0]  %s5919_s1, 65536, %s30_s19, [#allocation6], %s5764_s21, %s5764_s21, %s5765_s22  }
   0xf   :  { %s5766_s25 = smov [#allocation8]  }
  0x10   :  { %s51_s26 = sshll.u32 %s5766_s25, 4  ;;  %s52_s26 = int_to_ptr.vmem [resolvable:$true] %s51_s26 }
  0x11   :  { %s5663_s27 = scalar_lea.vmem %s52_s26, 4096  ;;  %p5668_p6 = scmp.lt.s32.totalorder %s52_s26, %s52_s26 }
  0x12   :  { %p5664_p5 = scmp.ne.s32.totalorder %s52_s26, %s5663_s27  ;;  %p5669_p7 = scmp.lt.s32.totalorder %s5663_s27, %s5663_s27 }
  0x14   :  { %p5670_p8 = por %p5669_p7, %p5668_p6 }
  0x16   :  { %p5671_p9 = pnand %p5670_p8, %p5664_p5 }
  0x18   :  { %5674 = shalt.err (!%p5671_p9)
}
  0x19   :  { %s5767_s28 = smov 64   ;;  %s5768_s29 = smov 4  }
  0x1a   :  { %57 = dma.hbm_to_vmem [thread:$0]  %s5921_s3, 4096, %s52_s26, [#allocation9], %s5767_s28, %s5767_s28, %s5768_s29  }
  0x1b   :  { %s5769_s7 = smov [#allocation2]   ;;  %s5770_s9 = smov [#allocation7]  }
  0x1c   :  { %s20_s8 = sshll.u32 %s5769_s7, 4  ;;  %s42_s1 = sshll.u32 %s5770_s9, 4  ;;  %s21_s8 = int_to_ptr.vmem [resolvable:$true] %s20_s8  ;;  %s43_s1 = int_to_ptr.vmem [resolvable:$true] %s42_s1 }
  0x1d   :  { %s5683_s10 = scalar_lea.vmem %s21_s8, 2048  ;;  %p5688_p11 = scmp.lt.s32.totalorder %s21_s8, %s21_s8 }
  0x1e   :  { %p5684_p10 = scmp.ne.s32.totalorder %s21_s8, %s5683_s10  ;;  %p5689_p12 = scmp.lt.s32.totalorder %s5683_s10, %s5683_s10 }
  0x20   :  { %p5690_p13 = por %p5689_p12, %p5688_p11 }
  0x22   :  { %p5691_p0 = pnand %p5690_p13, %p5684_p10 }
  0x24   :  { %5694 = shalt.err (!%p5691_p0)
}
  0x25   :  { %23 = dma.hbm_to_vmem [thread:$0]  %s5918_s0, 2048, %s21_s8, [#allocation3]  }
  0x26   :  { %s5703_s13 = scalar_lea.vmem %s43_s1, 64  ;;  %p5708_p2 = scmp.lt.s32.totalorder %s43_s1, %s43_s1 }
  0x27   :  { %p5704_p1 = scmp.ne.s32.totalorder %s43_s1, %s5703_s13  ;;  %p5709_p3 = scmp.lt.s32.totalorder %s5703_s13, %s5703_s13 }
  0x29   :  { %p5710_p4 = por %p5709_p3, %p5708_p2 }
  0x2b   :  { %p5711_p5 = pnand %p5710_p4, %p5704_p1 }
  0x2d   :  { %5714 = shalt.err (!%p5711_p5)
}
  0x2e   :  { %45 = dma.hbm_to_vmem [thread:$0]  %s5920_s2, 64, %s43_s1, [#allocation6]  }
  0x2f   :  { %s5771_s15 = smov [#allocation10]  }
  0x30   :  { %s64_s16 = sshll.u32 %s5771_s15, 4  ;;  %s65_s16 = int_to_ptr.vmem [resolvable:$true] %s64_s16 }
  0x31   :  { %s5723_s17 = scalar_lea.vmem %s65_s16, 16  ;;  %s5727_s18 = scalar_lea.vmem %s65_s16, 32 }
  0x32   :  { %p5724_p6 = scmp.ne.s32.totalorder %s65_s16, %s5723_s17  ;;  %p5728_p7 = scmp.lt.s32.totalorder %s65_s16, %s65_s16 }
  0x33   :  { %p5729_p8 = scmp.lt.s32.totalorder %s5727_s18, %s5723_s17 }
  0x35   :  { %p5730_p9 = por %p5729_p8, %p5728_p7 }
  0x37   :  { %p5731_p10 = pnand %p5730_p9, %p5724_p6 }
  0x39   :  { %5734 = shalt.err (!%p5731_p10)
}
  0x3a   :  { %67 = dma.hbm_to_vmem [thread:$0]  %s5922_s4, 16, %s65_s16, [#allocation9]  }
  0x3b   :  { %5755 = dma.done.wait [#allocation3], 2048  }
  0x3c   :  { %5756 = vsyncadd [#allocation3], 4294965248 }
  0x3d   :  { %5757 = dma.done.wait [#allocation6], 65600  }
  0x3e   :  { %5758 = vsyncadd [#allocation6], 4294901696 }
  0x3f   :  { %5759 = dma.done.wait [#allocation9], 4112  }
  0x40   :  { %5760 = vsyncadd [#allocation9], 4294963184  ;;  %v4834_v0 = vld [vmem:[#allocation5 + $0xe4] ss:$16 sps:$4 sm:$0xff]   ;;  %v4838_v2 = vld [vmem:[#allocation5 + $0xe0] ss:$16 sps:$4 sm:$0xff]  }
  0x41   :  { %v4836_v1 = vld [vmem:[#allocation5 + $0x2e4] ss:$16 sps:$4 sm:$0xff]   ;;  %3210 = vmatprep.subr.bf16.mxu0 %v4834_v0  ;;  %v4839_v3 = vld [vmem:[#allocation5 + $0x2e0] ss:$16 sps:$4 sm:$0xff]   ;;  %v85_v46 = vld [vmem:[#allocation2 + $0x8] sm:$0xff]  ;;  %s5772_s2 = smov [#allocation11]  }
  0x42   :  { %3251 = vmatprep.subr.bf16.mxu1 %v4836_v1  ;;  %v4840_v4 = vld [vmem:[#allocation5 + $0xc4] ss:$16 sps:$4 sm:$0xff]   ;;  %3211 = vmatpush1.bf16.msra.mxu0 %v4838_v2  ;;  %v4844_v6 = vld [vmem:[#allocation5 + $0xc0] ss:$16 sps:$4 sm:$0xff]   ;;  %v5818_v49 = vpack.c.bf16 %v85_v46, %v85_v46  ;;  %v87_v50 = vld [vmem:[#allocation2 + $0x18] sm:$0xff]  ;;  %s4224_s4 = sshll.u32 %s5772_s2, 4  ;;  %s4225_s4 = int_to_ptr.vmem [resolvable:$true] %s4224_s4 }
  0x43   :  { %3252 = vmatpush1.bf16.msra.mxu1 %v4839_v3  ;;  %v4842_v5 = vld [vmem:[#allocation5 + $0x2c4] ss:$16 sps:$4 sm:$0xff]   ;;  %3212 = vmatprep.subr.bf16.mxu0 %v4840_v4  ;;  %v4845_v7 = vld [vmem:[#allocation5 + $0x2c0] ss:$16 sps:$4 sm:$0xff]   ;;  %v5820_v52 = vpack.c.bf16 %v87_v50, %v87_v50  ;;  %s5735_s20 = scalar_lea.vmem %s4225_s4, 128  ;;  %p5740_p12 = scmp.lt.s32.totalorder %s4225_s4, %s4225_s4 }
  0x44   :  { %3253 = vmatprep.subr.bf16.mxu1 %v4842_v5  ;;  %v4846_v8 = vld [vmem:[#allocation5 + $0xa4] ss:$16 sps:$4 sm:$0xff]   ;;  %v4850_v10 = vld [vmem:[#allocation5 + $0xa0] ss:$16 sps:$4 sm:$0xff]   ;;  %3242 = vmatprep.mubr.bf16.mxu0 %v5818_v49  ;;  %p5736_p11 = scmp.ne.s32.totalorder %s4225_s4, %s5735_s20  ;;  %p5741_p13 = scmp.lt.s32.totalorder %s5735_s20, %s5735_s20 }
  0x45   :  { %v4848_v9 = vld [vmem:[#allocation5 + $0x2a4] ss:$16 sps:$4 sm:$0xff]   ;;  %v4851_v11 = vld [vmem:[#allocation5 + $0x2a0] ss:$16 sps:$4 sm:$0xff]   ;;  %3283 = vmatprep.mubr.bf16.mxu1 %v5820_v52 }
  0x46   :  { %3213 = vmatpush1.bf16.msra.mxu0 %v4844_v6  ;;  %v4852_v12 = vld [vmem:[#allocation5 + $0x84] ss:$16 sps:$4 sm:$0xff]   ;;  %v4856_v14 = vld [vmem:[#allocation5 + $0x80] ss:$16 sps:$4 sm:$0xff]   ;;  %p5742_p0 = por %p5741_p13, %p5740_p12 }
  0x47   :  { %3254 = vmatpush1.bf16.msra.mxu1 %v4845_v7  ;;  %3214 = vmatprep.subr.bf16.mxu0 %v4846_v8  ;;  %v4854_v13 = vld [vmem:[#allocation5 + $0x284] ss:$16 sps:$4 sm:$0xff]   ;;  %v4857_v15 = vld [vmem:[#allocation5 + $0x280] ss:$16 sps:$4 sm:$0xff]  }
  0x48   :  { %3255 = vmatprep.subr.bf16.mxu1 %v4848_v9  ;;  %v4858_v16 = vld [vmem:[#allocation5 + $0x64] ss:$16 sps:$4 sm:$0xff]   ;;  %v4862_v18 = vld [vmem:[#allocation5 + $0x60] ss:$16 sps:$4 sm:$0xff]   ;;  %p5743_p1 = pnand %p5742_p0, %p5736_p11 }
  0x49   :  { %v4860_v17 = vld [vmem:[#allocation5 + $0x264] ss:$16 sps:$4 sm:$0xff]   ;;  %v4863_v19 = vld [vmem:[#allocation5 + $0x260] ss:$16 sps:$4 sm:$0xff]  }
  0x4a   :  { %3215 = vmatpush1.bf16.msra.mxu0 %v4850_v10  ;;  %v4864_v20 = vld [vmem:[#allocation5 + $0x44] ss:$16 sps:$4 sm:$0xff]   ;;  %v4868_v22 = vld [vmem:[#allocation5 + $0x40] ss:$16 sps:$4 sm:$0xff]  }
  0x4b   :  { %3256 = vmatpush1.bf16.msra.mxu1 %v4851_v11  ;;  %3216 = vmatprep.subr.bf16.mxu0 %v4852_v12  ;;  %v4866_v21 = vld [vmem:[#allocation5 + $0x244] ss:$16 sps:$4 sm:$0xff]   ;;  %v4869_v23 = vld [vmem:[#allocation5 + $0x240] ss:$16 sps:$4 sm:$0xff]  }
  0x4c   :  { %3257 = vmatprep.subr.bf16.mxu1 %v4854_v13  ;;  %v4870_v24 = vld [vmem:[#allocation5 + $0x24] ss:$16 sps:$4 sm:$0xff]   ;;  %v4874_v26 = vld [vmem:[#allocation5 + $0x20] ss:$16 sps:$4 sm:$0xff]  }
  0x4d   :  { %v4872_v25 = vld [vmem:[#allocation5 + $0x224] ss:$16 sps:$4 sm:$0xff]   ;;  %v4875_v27 = vld [vmem:[#allocation5 + $0x220] ss:$16 sps:$4 sm:$0xff]  }
  0x4e   :  { %3217 = vmatpush1.bf16.msra.mxu0 %v4856_v14  ;;  %v4876_v28 = vld [vmem:[#allocation5 + $0x4] ss:$16 sps:$4 sm:$0xff]   ;;  %v4880_v30 = vld [vmem:[#allocation5] ss:$16 sps:$4 sm:$0xff]  }
  0x4f   :  { %3258 = vmatpush1.bf16.msra.mxu1 %v4857_v15  ;;  %3218 = vmatprep.subr.bf16.mxu0 %v4858_v16  ;;  %v4878_v29 = vld [vmem:[#allocation5 + $0x204] ss:$16 sps:$4 sm:$0xff]   ;;  %v4881_v31 = vld [vmem:[#allocation5 + $0x200] ss:$16 sps:$4 sm:$0xff]  }
  0x50   :  { %3259 = vmatprep.subr.bf16.mxu1 %v4860_v17  ;;  %v4882_v32 = vld [vmem:[#allocation5 + $0x1e4] ss:$16 sps:$4 sm:$0xff]   ;;  %v4886_v34 = vld [vmem:[#allocation5 + $0x1e0] ss:$16 sps:$4 sm:$0xff]  }
  0x51   :  { %v4884_v33 = vld [vmem:[#allocation5 + $0x3e4] ss:$16 sps:$4 sm:$0xff]   ;;  %v4887_v35 = vld [vmem:[#allocation5 + $0x3e0] ss:$16 sps:$4 sm:$0xff]  }
  0x52   :  { %3219 = vmatpush1.bf16.msra.mxu0 %v4862_v18  ;;  %v4888_v36 = vld [vmem:[#allocation5 + $0x1c4] ss:$16 sps:$4 sm:$0xff]   ;;  %v4892_v38 = vld [vmem:[#allocation5 + $0x1c0] ss:$16 sps:$4 sm:$0xff]  }
  0x53   :  { %3260 = vmatpush1.bf16.msra.mxu1 %v4863_v19  ;;  %3220 = vmatprep.subr.bf16.mxu0 %v4864_v20  ;;  %v4890_v37 = vld [vmem:[#allocation5 + $0x3c4] ss:$16 sps:$4 sm:$0xff]   ;;  %v4893_v39 = vld [vmem:[#allocation5 + $0x3c0] ss:$16 sps:$4 sm:$0xff]  }
  0x54   :  { %3261 = vmatprep.subr.bf16.mxu1 %v4866_v21  ;;  %v4894_v40 = vld [vmem:[#allocation5 + $0x1a4] ss:$16 sps:$4 sm:$0xff]   ;;  %v4898_v42 = vld [vmem:[#allocation5 + $0x1a0] ss:$16 sps:$4 sm:$0xff]  }
  0x55   :  { %v4896_v41 = vld [vmem:[#allocation5 + $0x3a4] ss:$16 sps:$4 sm:$0xff]   ;;  %v4899_v43 = vld [vmem:[#allocation5 + $0x3a0] ss:$16 sps:$4 sm:$0xff]  }
  0x56   :  { %3221 = vmatpush1.bf16.msra.mxu0 %v4868_v22  ;;  %v4900_v44 = vld [vmem:[#allocation5 + $0x184] ss:$16 sps:$4 sm:$0xff]   ;;  %v4904_v47 = vld [vmem:[#allocation5 + $0x180] ss:$16 sps:$4 sm:$0xff]  }
  0x57   :  { %3262 = vmatpush1.bf16.msra.mxu1 %v4869_v23  ;;  %3222 = vmatprep.subr.bf16.mxu0 %v4870_v24  ;;  %v4902_v45 = vld [vmem:[#allocation5 + $0x384] ss:$16 sps:$4 sm:$0xff]   ;;  %v4905_v48 = vld [vmem:[#allocation5 + $0x380] ss:$16 sps:$4 sm:$0xff]  }
  0x58   :  { %3263 = vmatprep.subr.bf16.mxu1 %v4872_v25  ;;  %v4906_v51 = vld [vmem:[#allocation5 + $0x164] ss:$16 sps:$4 sm:$0xff]   ;;  %v4910_v54 = vld [vmem:[#allocation5 + $0x160] ss:$16 sps:$4 sm:$0xff]  }
  0x59   :  { %v4908_v53 = vld [vmem:[#allocation5 + $0x364] ss:$16 sps:$4 sm:$0xff]   ;;  %v4911_v55 = vld [vmem:[#allocation5 + $0x360] ss:$16 sps:$4 sm:$0xff]  }
  0x5a   :  { %3223 = vmatpush1.bf16.msra.mxu0 %v4874_v26  ;;  %v4912_v56 = vld [vmem:[#allocation5 + $0x144] ss:$16 sps:$4 sm:$0xff]   ;;  %v4916_v58 = vld [vmem:[#allocation5 + $0x140] ss:$16 sps:$4 sm:$0xff]  }
  0x5b   :  { %3264 = vmatpush1.bf16.msra.mxu1 %v4875_v27  ;;  %3224 = vmatprep.subr.bf16.mxu0 %v4876_v28  ;;  %v4914_v57 = vld [vmem:[#allocation5 + $0x344] ss:$16 sps:$4 sm:$0xff]   ;;  %v4917_v59 = vld [vmem:[#allocation5 + $0x340] ss:$16 sps:$4 sm:$0xff]  }
  0x5c   :  { %3265 = vmatprep.subr.bf16.mxu1 %v4878_v29  ;;  %v4918_v60 = vld [vmem:[#allocation5 + $0x124] ss:$16 sps:$4 sm:$0xff]   ;;  %v4922_v62 = vld [vmem:[#allocation5 + $0x120] ss:$16 sps:$4 sm:$0xff]  }
  0x5d   :  { %v4920_v61 = vld [vmem:[#allocation5 + $0x324] ss:$16 sps:$4 sm:$0xff]   ;;  %v4923_v63 = vld [vmem:[#allocation5 + $0x320] ss:$16 sps:$4 sm:$0xff]  }
  0x5e   :  { %3225 = vmatpush1.bf16.msra.mxu0 %v4880_v30  ;;  %v4924_v0 = vld [vmem:[#allocation5 + $0x104] ss:$16 sps:$4 sm:$0xff]   ;;  %v4928_v2 = vld [vmem:[#allocation5 + $0x100] ss:$16 sps:$4 sm:$0xff]  }
  0x5f   :  { %3266 = vmatpush1.bf16.msra.mxu1 %v4881_v31  ;;  %3226 = vmatprep.subr.bf16.mxu0 %v4882_v32  ;;  %v4926_v1 = vld [vmem:[#allocation5 + $0x304] ss:$16 sps:$4 sm:$0xff]   ;;  %v4929_v3 = vld [vmem:[#allocation5 + $0x300] ss:$16 sps:$4 sm:$0xff]  }
  0x60   :  { %3267 = vmatprep.subr.bf16.mxu1 %v4884_v33  ;;  %v84_v4 = vld [vmem:[#allocation2] sm:$0xff]  ;;  %v86_v5 = vld [vmem:[#allocation2 + $0x10] sm:$0xff] }
  0x61   :  { %v4932_v6 = vld [vmem:[#allocation5 + $0x4e4] ss:$16 sps:$4 sm:$0xff]   ;;  %v5824_v8 = vpack.c.bf16 %v84_v4, %v84_v4  ;;  %v5826_v9 = vpack.c.bf16 %v86_v5, %v86_v5  ;;  %v4930_v10 = vld [vmem:[#allocation5 + $0x4e0] ss:$16 sps:$4 sm:$0xff]  }
  0x62   :  { %3227 = vmatpush2.bf16.msra.mxu0 %v4886_v34  ;;  %v4935_v7 = vld [vmem:[#allocation5 + $0x6e4] ss:$16 sps:$4 sm:$0xff]   ;;  %v4933_v11 = vld [vmem:[#allocation5 + $0x6e0] ss:$16 sps:$4 sm:$0xff]   ;;  %v89_v34 = vld [vmem:[#allocation2 + $0x28] sm:$0xff] }
  0x63   :  { %3268 = vmatpush2.bf16.msra.mxu1 %v4887_v35  ;;  %3228 = vmatprep.subr.bf16.mxu0 %v4888_v36  ;;  %v4938_v12 = vld [vmem:[#allocation5 + $0x4c4] ss:$16 sps:$4 sm:$0xff]   ;;  %v4936_v14 = vld [vmem:[#allocation5 + $0x4c0] ss:$16 sps:$4 sm:$0xff]  }
  0x64   :  { %3269 = vmatprep.subr.bf16.mxu1 %v4890_v37  ;;  %v4941_v13 = vld [vmem:[#allocation5 + $0x6c4] ss:$16 sps:$4 sm:$0xff]   ;;  %v4939_v15 = vld [vmem:[#allocation5 + $0x6c0] ss:$16 sps:$4 sm:$0xff]   ;;  %v5830_v37 = vpack.c.bf16 %v89_v34, %v89_v34 }
  0x65   :  { %v4944_v16 = vld [vmem:[#allocation5 + $0x4a4] ss:$16 sps:$4 sm:$0xff]   ;;  %v4942_v18 = vld [vmem:[#allocation5 + $0x4a0] ss:$16 sps:$4 sm:$0xff]  }
  0x66   :  { %3229 = vmatpush2.bf16.msra.mxu0 %v4892_v38  ;;  %v4947_v17 = vld [vmem:[#allocation5 + $0x6a4] ss:$16 sps:$4 sm:$0xff]   ;;  %v4945_v19 = vld [vmem:[#allocation5 + $0x6a0] ss:$16 sps:$4 sm:$0xff]   ;;  %v91_v38 = vld [vmem:[#allocation2 + $0x38] sm:$0xff] }
  0x67   :  { %3270 = vmatpush2.bf16.msra.mxu1 %v4893_v39  ;;  %3230 = vmatprep.subr.bf16.mxu0 %v4894_v40  ;;  %v4950_v20 = vld [vmem:[#allocation5 + $0x484] ss:$16 sps:$4 sm:$0xff]   ;;  %v4948_v22 = vld [vmem:[#allocation5 + $0x480] ss:$16 sps:$4 sm:$0xff]   ;;  %v5832_v40 = vpack.c.bf16 %v91_v38, %v91_v38 }
  0x68   :  { %3271 = vmatprep.subr.bf16.mxu1 %v4896_v41  ;;  %v4953_v21 = vld [vmem:[#allocation5 + $0x684] ss:$16 sps:$4 sm:$0xff]   ;;  %v4951_v23 = vld [vmem:[#allocation5 + $0x680] ss:$16 sps:$4 sm:$0xff]  }
  0x69   :  { %v4956_v24 = vld [vmem:[#allocation5 + $0x464] ss:$16 sps:$4 sm:$0xff]   ;;  %v4954_v26 = vld [vmem:[#allocation5 + $0x460] ss:$16 sps:$4 sm:$0xff]  }
  0x6a   :  { %3231 = vmatpush2.bf16.msra.mxu0 %v4898_v42  ;;  %v4959_v25 = vld [vmem:[#allocation5 + $0x664] ss:$16 sps:$4 sm:$0xff]   ;;  %v4957_v27 = vld [vmem:[#allocation5 + $0x660] ss:$16 sps:$4 sm:$0xff]  }
  0x6b   :  { %3272 = vmatpush2.bf16.msra.mxu1 %v4899_v43  ;;  %3232 = vmatprep.subr.bf16.mxu0 %v4900_v44  ;;  %v4962_v28 = vld [vmem:[#allocation5 + $0x444] ss:$16 sps:$4 sm:$0xff]   ;;  %v4960_v30 = vld [vmem:[#allocation5 + $0x440] ss:$16 sps:$4 sm:$0xff]  }
  0x6c   :  { %3273 = vmatprep.subr.bf16.mxu1 %v4902_v45  ;;  %v4965_v29 = vld [vmem:[#allocation5 + $0x644] ss:$16 sps:$4 sm:$0xff]   ;;  %v4963_v31 = vld [vmem:[#allocation5 + $0x640] ss:$16 sps:$4 sm:$0xff]  }
  0x6d   :  { %v4968_v32 = vld [vmem:[#allocation5 + $0x424] ss:$16 sps:$4 sm:$0xff]   ;;  %v4966_v35 = vld [vmem:[#allocation5 + $0x420] ss:$16 sps:$4 sm:$0xff]  }
  0x6e   :  { %3233 = vmatpush2.bf16.msra.mxu0 %v4904_v47  ;;  %v4971_v33 = vld [vmem:[#allocation5 + $0x624] ss:$16 sps:$4 sm:$0xff]   ;;  %v4969_v36 = vld [vmem:[#allocation5 + $0x620] ss:$16 sps:$4 sm:$0xff]  }
  0x6f   :  { %3274 = vmatpush2.bf16.msra.mxu1 %v4905_v48  ;;  %3234 = vmatprep.subr.bf16.mxu0 %v4906_v51  ;;  %v4974_v39 = vld [vmem:[#allocation5 + $0x404] ss:$16 sps:$4 sm:$0xff]   ;;  %v4972_v42 = vld [vmem:[#allocation5 + $0x400] ss:$16 sps:$4 sm:$0xff]  }
  0x70   :  { %3275 = vmatprep.subr.bf16.mxu1 %v4908_v53  ;;  %v4977_v41 = vld [vmem:[#allocation5 + $0x604] ss:$16 sps:$4 sm:$0xff]   ;;  %v4975_v43 = vld [vmem:[#allocation5 + $0x600] ss:$16 sps:$4 sm:$0xff]  }
  0x71   :  { %v4980_v44 = vld [vmem:[#allocation5 + $0x5e4] ss:$16 sps:$4 sm:$0xff]   ;;  %v4978_v46 = vld [vmem:[#allocation5 + $0x5e0] ss:$16 sps:$4 sm:$0xff]  }
  0x72   :  { %3235 = vmatpush2.bf16.msra.mxu0 %v4910_v54  ;;  %v4983_v45 = vld [vmem:[#allocation5 + $0x7e4] ss:$16 sps:$4 sm:$0xff]   ;;  %v4981_v47 = vld [vmem:[#allocation5 + $0x7e0] ss:$16 sps:$4 sm:$0xff]  }
  0x73   :  { %3276 = vmatpush2.bf16.msra.mxu1 %v4911_v55  ;;  %3236 = vmatprep.subr.bf16.mxu0 %v4912_v56  ;;  %v4986_v48 = vld [vmem:[#allocation5 + $0x5c4] ss:$16 sps:$4 sm:$0xff]   ;;  %v4984_v51 = vld [vmem:[#allocation5 + $0x5c0] ss:$16 sps:$4 sm:$0xff]  }
  0x74   :  { %3277 = vmatprep.subr.bf16.mxu1 %v4914_v57  ;;  %v4989_v50 = vld [vmem:[#allocation5 + $0x7c4] ss:$16 sps:$4 sm:$0xff]   ;;  %v4987_v53 = vld [vmem:[#allocation5 + $0x7c0] ss:$16 sps:$4 sm:$0xff]  }
  0x75   :  { %v4992_v54 = vld [vmem:[#allocation5 + $0x5a4] ss:$16 sps:$4 sm:$0xff]   ;;  %v4990_v56 = vld [vmem:[#allocation5 + $0x5a0] ss:$16 sps:$4 sm:$0xff]  }
  0x76   :  { %3237 = vmatpush2.bf16.msra.mxu0 %v4916_v58  ;;  %v4995_v55 = vld [vmem:[#allocation5 + $0x7a4] ss:$16 sps:$4 sm:$0xff]   ;;  %v4993_v57 = vld [vmem:[#allocation5 + $0x7a0] ss:$16 sps:$4 sm:$0xff]  }
  0x77   :  { %3278 = vmatpush2.bf16.msra.mxu1 %v4917_v59  ;;  %3238 = vmatprep.subr.bf16.mxu0 %v4918_v60  ;;  %v4998_v58 = vld [vmem:[#allocation5 + $0x584] ss:$16 sps:$4 sm:$0xff]   ;;  %v4996_v60 = vld [vmem:[#allocation5 + $0x580] ss:$16 sps:$4 sm:$0xff]  }
  0x78   :  { %3279 = vmatprep.subr.bf16.mxu1 %v4920_v61  ;;  %v5001_v59 = vld [vmem:[#allocation5 + $0x784] ss:$16 sps:$4 sm:$0xff]   ;;  %v4999_v61 = vld [vmem:[#allocation5 + $0x780] ss:$16 sps:$4 sm:$0xff]  }
  0x79   :  { %v5008_v4 = vld [vmem:[#allocation5 + $0x540] ss:$16 sps:$4 sm:$0xff]   ;;  %v5049_v38 = vld [vmem:[#allocation5 + $0xa84] ss:$16 sps:$4 sm:$0xff]  }
  0x7a   :  { %3239 = vmatpush2.bf16.msra.mxu0 %v4922_v62  ;;  %v5004_v62 = vld [vmem:[#allocation5 + $0x564] ss:$16 sps:$4 sm:$0xff]   ;;  %v5011_v5 = vld [vmem:[#allocation5 + $0x740] ss:$16 sps:$4 sm:$0xff]  }
  0x7b   :  { %3280 = vmatpush2.bf16.msra.mxu1 %v4923_v63  ;;  %3240 = vmatprep.subr.bf16.mxu0 %v4924_v0  ;;  %v5007_v63 = vld [vmem:[#allocation5 + $0x764] ss:$16 sps:$4 sm:$0xff]   ;;  %v5002_v0 = vld [vmem:[#allocation5 + $0x560] ss:$16 sps:$4 sm:$0xff]  }
  0x7c   :  { %3281 = vmatprep.subr.bf16.mxu1 %v4926_v1  ;;  %v5005_v1 = vld [vmem:[#allocation5 + $0x760] ss:$16 sps:$4 sm:$0xff]  }
  0x7d   :  { %v5038_v34 = vld [vmem:[#allocation5 + $0x8a0] ss:$16 sps:$4 sm:$0xff]  }
  0x7e   :  { %3241 = vmatpush2.bf16.msra.mxu0 %v4928_v2  ;;  %v5010_v2 = vld [vmem:[#allocation5 + $0x544] ss:$16 sps:$4 sm:$0xff]  }
  0x7f   :  { %3282 = vmatpush2.bf16.msra.mxu1 %v4929_v3  ;;  %3292 = vmatprep.subr.bf16.mxu0 %v4932_v6  ;;  %v5013_v3 = vld [vmem:[#allocation5 + $0x744] ss:$16 sps:$4 sm:$0xff]  }
  0x80   :  { %3333 = vmatprep.subr.bf16.mxu1 %v4935_v7  ;;  %v5016_v6 = vld [vmem:[#allocation5 + $0x524] ss:$16 sps:$4 sm:$0xff]  }
  0x81   :  { %3243 = vmatmul.mubr.bf16.vlgmr.msra.gmra.mxu0 %v5824_v8  ;;  %v5019_v7 = vld [vmem:[#allocation5 + $0x724] ss:$16 sps:$4 sm:$0xff]  }
  0x82   :  { %3284 = vmatmul.mubr.bf16.vlgmr.msra.gmra.mxu1 %v5826_v9  ;;  %3293 = vmatpush1.bf16.msra.mxu0 %v4930_v10  ;;  %v5014_v10 = vld [vmem:[#allocation5 + $0x520] ss:$16 sps:$4 sm:$0xff]  }
  0x83   :  { %3334 = vmatpush1.bf16.msra.mxu1 %v4933_v11  ;;  %3294 = vmatprep.subr.bf16.mxu0 %v4938_v12  ;;  %v5017_v11 = vld [vmem:[#allocation5 + $0x720] ss:$16 sps:$4 sm:$0xff]   ;;  %v5022_v12 = vld [vmem:[#allocation5 + $0x504] ss:$16 sps:$4 sm:$0xff]  }
  0x84   :  { %3335 = vmatprep.subr.bf16.mxu1 %v4941_v13  ;;  %3324 = vmatprep.mubr.bf16.mxu0 %v5830_v37  ;;  %v5025_v13 = vld [vmem:[#allocation5 + $0x704] ss:$16 sps:$4 sm:$0xff]  }
  0x85   :  { %3365 = vmatprep.mubr.bf16.mxu1 %v5832_v40 }
  0x86   :  { %3295 = vmatpush1.bf16.msra.mxu0 %v4936_v14  ;;  %v5020_v14 = vld [vmem:[#allocation5 + $0x500] ss:$16 sps:$4 sm:$0xff]  }
  0x87   :  { %3336 = vmatpush1.bf16.msra.mxu1 %v4939_v15  ;;  %3296 = vmatprep.subr.bf16.mxu0 %v4944_v16  ;;  %v5023_v15 = vld [vmem:[#allocation5 + $0x700] ss:$16 sps:$4 sm:$0xff]  }
  0x88   :  { %3337 = vmatprep.subr.bf16.mxu1 %v4947_v17  ;;  %v88_v16 = vld [vmem:[#allocation2 + $0x20] sm:$0xff]  ;;  %v90_v17 = vld [vmem:[#allocation2 + $0x30] sm:$0xff] }
  0x8a   :  { %3297 = vmatpush1.bf16.msra.mxu0 %v4942_v18  ;;  %v5028_v18 = vld [vmem:[#allocation5 + $0x8e4] ss:$16 sps:$4 sm:$0xff]  }
  0x8b   :  { %3338 = vmatpush1.bf16.msra.mxu1 %v4945_v19  ;;  %3298 = vmatprep.subr.bf16.mxu0 %v4950_v20  ;;  %v5031_v19 = vld [vmem:[#allocation5 + $0xae4] ss:$16 sps:$4 sm:$0xff]   ;;  %v5836_v20 = vpack.c.bf16 %v88_v16, %v88_v16  ;;  %v5098_v16 = vld [vmem:[#allocation5 + $0x960] ss:$16 sps:$4 sm:$0xff]  }
  0x8c   :  { %3339 = vmatprep.subr.bf16.mxu1 %v4953_v21  ;;  %v5838_v21 = vpack.c.bf16 %v90_v17, %v90_v17  ;;  %v5101_v17 = vld [vmem:[#allocation5 + $0xb60] ss:$16 sps:$4 sm:$0xff]  }
  0x8e   :  { %3299 = vmatpush1.bf16.msra.mxu0 %v4948_v22  ;;  %v5026_v22 = vld [vmem:[#allocation5 + $0x8e0] ss:$16 sps:$4 sm:$0xff]  }
  0x8f   :  { %3340 = vmatpush1.bf16.msra.mxu1 %v4951_v23  ;;  %3300 = vmatprep.subr.bf16.mxu0 %v4956_v24  ;;  %v5029_v23 = vld [vmem:[#allocation5 + $0xae0] ss:$16 sps:$4 sm:$0xff]   ;;  %v5034_v24 = vld [vmem:[#allocation5 + $0x8c4] ss:$16 sps:$4 sm:$0xff]  }
  0x90   :  { %3341 = vmatprep.subr.bf16.mxu1 %v4959_v25  ;;  %v5037_v25 = vld [vmem:[#allocation5 + $0xac4] ss:$16 sps:$4 sm:$0xff]  }
  0x92   :  { %3301 = vmatpush1.bf16.msra.mxu0 %v4954_v26  ;;  %v93_v26 = vld [vmem:[#allocation2 + $0x48] sm:$0xff] }
  0x93   :  { %3342 = vmatpush1.bf16.msra.mxu1 %v4957_v27  ;;  %3302 = vmatprep.subr.bf16.mxu0 %v4962_v28  ;;  %v5032_v27 = vld [vmem:[#allocation5 + $0x8c0] ss:$16 sps:$4 sm:$0xff]  }
  0x94   :  { %3343 = vmatprep.subr.bf16.mxu1 %v4965_v29  ;;  %v5035_v28 = vld [vmem:[#allocation5 + $0xac0] ss:$16 sps:$4 sm:$0xff]   ;;  %v5842_v29 = vpack.c.bf16 %v93_v26, %v93_v26 }
  0x95   :  { %v5110_v26 = vld [vmem:[#allocation5 + $0x920] ss:$16 sps:$4 sm:$0xff]  }
  0x96   :  { %3303 = vmatpush1.bf16.msra.mxu0 %v4960_v30  ;;  %v95_v30 = vld [vmem:[#allocation2 + $0x58] sm:$0xff] }
  0x97   :  { %3344 = vmatpush1.bf16.msra.mxu1 %v4963_v31  ;;  %3304 = vmatprep.subr.bf16.mxu0 %v4968_v32  ;;  %v5040_v31 = vld [vmem:[#allocation5 + $0x8a4] ss:$16 sps:$4 sm:$0xff]   ;;  %v5844_v32 = vpack.c.bf16 %v95_v30, %v95_v30 }
  0x98   :  { %3345 = vmatprep.subr.bf16.mxu1 %v4971_v33  ;;  %v5043_v33 = vld [vmem:[#allocation5 + $0xaa4] ss:$16 sps:$4 sm:$0xff]  }
  0x99   :  { %v5121_v30 = vld [vmem:[#allocation5 + $0xb04] ss:$16 sps:$4 sm:$0xff]  }
  0x9a   :  { %3305 = vmatpush1.bf16.msra.mxu0 %v4966_v35  ;;  %v5041_v35 = vld [vmem:[#allocation5 + $0xaa0] ss:$16 sps:$4 sm:$0xff]  }
  0x9b   :  { %3346 = vmatpush1.bf16.msra.mxu1 %v4969_v36  ;;  %3306 = vmatprep.subr.bf16.mxu0 %v4974_v39  ;;  %v5046_v36 = vld [vmem:[#allocation5 + $0x884] ss:$16 sps:$4 sm:$0xff]   ;;  %v5044_v39 = vld [vmem:[#allocation5 + $0x880] ss:$16 sps:$4 sm:$0xff]  }
  0x9c   :  { %3347 = vmatprep.subr.bf16.mxu1 %v4977_v41  ;;  %v5047_v41 = vld [vmem:[#allocation5 + $0xa80] ss:$16 sps:$4 sm:$0xff]  }
  0x9e   :  { %3307 = vmatpush1.bf16.msra.mxu0 %v4972_v42  ;;  %v5052_v42 = vld [vmem:[#allocation5 + $0x864] ss:$16 sps:$4 sm:$0xff]  }
  0x9f   :  { %3348 = vmatpush1.bf16.msra.mxu1 %v4975_v43  ;;  %3308 = vmatprep.subr.bf16.mxu0 %v4980_v44  ;;  %v5055_v43 = vld [vmem:[#allocation5 + $0xa64] ss:$16 sps:$4 sm:$0xff]   ;;  %v5050_v44 = vld [vmem:[#allocation5 + $0x860] ss:$16 sps:$4 sm:$0xff]  }
  0xa0   :  { %3349 = vmatprep.subr.bf16.mxu1 %v4983_v45  ;;  %v5053_v45 = vld [vmem:[#allocation5 + $0xa60] ss:$16 sps:$4 sm:$0xff]  }
  0xa2   :  { %3309 = vmatpush2.bf16.msra.mxu0 %v4978_v46  ;;  %v5058_v46 = vld [vmem:[#allocation5 + $0x844] ss:$16 sps:$4 sm:$0xff]  }
  0xa3   :  { %3350 = vmatpush2.bf16.msra.mxu1 %v4981_v47  ;;  %3310 = vmatprep.subr.bf16.mxu0 %v4986_v48  ;;  %v5061_v47 = vld [vmem:[#allocation5 + $0xa44] ss:$16 sps:$4 sm:$0xff]   ;;  %v5056_v48 = vld [vmem:[#allocation5 + $0x840] ss:$16 sps:$4 sm:$0xff]  }
  0xa4   :  { %3351 = vmatprep.subr.bf16.mxu1 %v4989_v50  ;;  %v5059_v50 = vld [vmem:[#allocation5 + $0xa40] ss:$16 sps:$4 sm:$0xff]  }
  0xa6   :  { %3311 = vmatpush2.bf16.msra.mxu0 %v4984_v51  ;;  %v5064_v51 = vld [vmem:[#allocation5 + $0x824] ss:$16 sps:$4 sm:$0xff]  }
  0xa7   :  { %3352 = vmatpush2.bf16.msra.mxu1 %v4987_v53  ;;  %3312 = vmatprep.subr.bf16.mxu0 %v4992_v54  ;;  %v5067_v53 = vld [vmem:[#allocation5 + $0xa24] ss:$16 sps:$4 sm:$0xff]   ;;  %v5062_v54 = vld [vmem:[#allocation5 + $0x820] ss:$16 sps:$4 sm:$0xff]  }
  0xa8   :  { %3353 = vmatprep.subr.bf16.mxu1 %v4995_v55  ;;  %v5065_v55 = vld [vmem:[#allocation5 + $0xa20] ss:$16 sps:$4 sm:$0xff]  }
  0xaa   :  { %3313 = vmatpush2.bf16.msra.mxu0 %v4990_v56  ;;  %v5070_v56 = vld [vmem:[#allocation5 + $0x804] ss:$16 sps:$4 sm:$0xff]  }
  0xab   :  { %3354 = vmatpush2.bf16.msra.mxu1 %v4993_v57  ;;  %3314 = vmatprep.subr.bf16.mxu0 %v4998_v58  ;;  %v5073_v57 = vld [vmem:[#allocation5 + $0xa04] ss:$16 sps:$4 sm:$0xff]   ;;  %v5068_v58 = vld [vmem:[#allocation5 + $0x800] ss:$16 sps:$4 sm:$0xff]  }
  0xac   :  { %3355 = vmatprep.subr.bf16.mxu1 %v5001_v59  ;;  %v5071_v59 = vld [vmem:[#allocation5 + $0xa00] ss:$16 sps:$4 sm:$0xff]  }
  0xae   :  { %3315 = vmatpush2.bf16.msra.mxu0 %v4996_v60  ;;  %v5076_v60 = vld [vmem:[#allocation5 + $0x9e4] ss:$16 sps:$4 sm:$0xff]  }
  0xaf   :  { %3356 = vmatpush2.bf16.msra.mxu1 %v4999_v61  ;;  %3316 = vmatprep.subr.bf16.mxu0 %v5004_v62  ;;  %v5079_v61 = vld [vmem:[#allocation5 + $0xbe4] ss:$16 sps:$4 sm:$0xff]   ;;  %v5074_v62 = vld [vmem:[#allocation5 + $0x9e0] ss:$16 sps:$4 sm:$0xff]  }
  0xb0   :  { %3357 = vmatprep.subr.bf16.mxu1 %v5007_v63  ;;  %v5077_v63 = vld [vmem:[#allocation5 + $0xbe0] ss:$16 sps:$4 sm:$0xff]  }
  0xb2   :  { %3317 = vmatpush2.bf16.msra.mxu0 %v5002_v0  ;;  %v5082_v0 = vld [vmem:[#allocation5 + $0x9c4] ss:$16 sps:$4 sm:$0xff]  }
  0xb3   :  { %3358 = vmatpush2.bf16.msra.mxu1 %v5005_v1  ;;  %3318 = vmatprep.subr.bf16.mxu0 %v5010_v2  ;;  %v5085_v1 = vld [vmem:[#allocation5 + $0xbc4] ss:$16 sps:$4 sm:$0xff]   ;;  %v5080_v2 = vld [vmem:[#allocation5 + $0x9c0] ss:$16 sps:$4 sm:$0xff]  }
  0xb4   :  { %3359 = vmatprep.subr.bf16.mxu1 %v5013_v3  ;;  %v5083_v3 = vld [vmem:[#allocation5 + $0xbc0] ss:$16 sps:$4 sm:$0xff]  }
  0xb6   :  { %3319 = vmatpush2.bf16.msra.mxu0 %v5008_v4  ;;  %v5088_v4 = vld [vmem:[#allocation5 + $0x9a4] ss:$16 sps:$4 sm:$0xff]  }
  0xb7   :  { %3360 = vmatpush2.bf16.msra.mxu1 %v5011_v5  ;;  %3320 = vmatprep.subr.bf16.mxu0 %v5016_v6  ;;  %v5091_v5 = vld [vmem:[#allocation5 + $0xba4] ss:$16 sps:$4 sm:$0xff]   ;;  %v5086_v6 = vld [vmem:[#allocation5 + $0x9a0] ss:$16 sps:$4 sm:$0xff]  }
  0xb8   :  { %3361 = vmatprep.subr.bf16.mxu1 %v5019_v7  ;;  %v5089_v7 = vld [vmem:[#allocation5 + $0xba0] ss:$16 sps:$4 sm:$0xff]  }
  0xba   :  { %3321 = vmatpush2.bf16.msra.mxu0 %v5014_v10  ;;  %v5094_v10 = vld [vmem:[#allocation5 + $0x984] ss:$16 sps:$4 sm:$0xff]  }
  0xbb   :  { %3362 = vmatpush2.bf16.msra.mxu1 %v5017_v11  ;;  %3322 = vmatprep.subr.bf16.mxu0 %v5022_v12  ;;  %v5097_v11 = vld [vmem:[#allocation5 + $0xb84] ss:$16 sps:$4 sm:$0xff]   ;;  %v5092_v12 = vld [vmem:[#allocation5 + $0x980] ss:$16 sps:$4 sm:$0xff]  }
  0xbc   :  { %3363 = vmatprep.subr.bf16.mxu1 %v5025_v13  ;;  %v5095_v13 = vld [vmem:[#allocation5 + $0xb80] ss:$16 sps:$4 sm:$0xff]  }
  0xbe   :  { %3323 = vmatpush2.bf16.msra.mxu0 %v5020_v14  ;;  %v5100_v14 = vld [vmem:[#allocation5 + $0x964] ss:$16 sps:$4 sm:$0xff]  }
  0xbf   :  { %3364 = vmatpush2.bf16.msra.mxu1 %v5023_v15  ;;  %3374 = vmatprep.subr.bf16.mxu0 %v5028_v18  ;;  %v5103_v15 = vld [vmem:[#allocation5 + $0xb64] ss:$16 sps:$4 sm:$0xff]  }
  0xc0   :  { %3415 = vmatprep.subr.bf16.mxu1 %v5031_v19  ;;  %v5106_v18 = vld [vmem:[#allocation5 + $0x944] ss:$16 sps:$4 sm:$0xff]  }
  0xc1   :  { %3325 = vmatmul.mubr.bf16.vlgmr.msra.gmra.mxu0 %v5836_v20  ;;  %v5109_v19 = vld [vmem:[#allocation5 + $0xb44] ss:$16 sps:$4 sm:$0xff]  }
  0xc2   :  { %3366 = vmatmul.mubr.bf16.vlgmr.msra.gmra.mxu1 %v5838_v21  ;;  %3375 = vmatpush1.bf16.msra.mxu0 %v5026_v22  ;;  %v5104_v22 = vld [vmem:[#allocation5 + $0x940] ss:$16 sps:$4 sm:$0xff]  }
  0xc3   :  { %3416 = vmatpush1.bf16.msra.mxu1 %v5029_v23  ;;  %3376 = vmatprep.subr.bf16.mxu0 %v5034_v24  ;;  %v5107_v23 = vld [vmem:[#allocation5 + $0xb40] ss:$16 sps:$4 sm:$0xff]   ;;  %v5112_v24 = vld [vmem:[#allocation5 + $0x924] ss:$16 sps:$4 sm:$0xff]  }
  0xc4   :  { %3417 = vmatprep.subr.bf16.mxu1 %v5037_v25  ;;  %3406 = vmatprep.mubr.bf16.mxu0 %v5842_v29  ;;  %v5115_v25 = vld [vmem:[#allocation5 + $0xb24] ss:$16 sps:$4 sm:$0xff]  }
  0xc5   :  { %3447 = vmatprep.mubr.bf16.mxu1 %v5844_v32 }
  0xc6   :  { %3377 = vmatpush1.bf16.msra.mxu0 %v5032_v27  ;;  %v5113_v27 = vld [vmem:[#allocation5 + $0xb20] ss:$16 sps:$4 sm:$0xff]  }
  0xc7   :  { %3418 = vmatpush1.bf16.msra.mxu1 %v5035_v28  ;;  %3378 = vmatprep.subr.bf16.mxu0 %v5040_v31  ;;  %v5118_v28 = vld [vmem:[#allocation5 + $0x904] ss:$16 sps:$4 sm:$0xff]   ;;  %v5116_v31 = vld [vmem:[#allocation5 + $0x900] ss:$16 sps:$4 sm:$0xff]  }
  0xc8   :  { %3419 = vmatprep.subr.bf16.mxu1 %v5043_v33  ;;  %v5119_v33 = vld [vmem:[#allocation5 + $0xb00] ss:$16 sps:$4 sm:$0xff]  }
  0xca   :  { %3379 = vmatpush1.bf16.msra.mxu0 %v5038_v34  ;;  %v92_v34 = vld [vmem:[#allocation2 + $0x40] sm:$0xff] }
  0xcb   :  { %3420 = vmatpush1.bf16.msra.mxu1 %v5041_v35  ;;  %3380 = vmatprep.subr.bf16.mxu0 %v5046_v36  ;;  %v94_v35 = vld [vmem:[#allocation2 + $0x50] sm:$0xff] }
  0xcc   :  { %3421 = vmatprep.subr.bf16.mxu1 %v5049_v38  ;;  %v5124_v36 = vld [vmem:[#allocation5 + $0xce4] ss:$16 sps:$4 sm:$0xff]  }
  0xcd   :  { %v5127_v38 = vld [vmem:[#allocation5 + $0xee4] ss:$16 sps:$4 sm:$0xff]  }
  0xce   :  { %3381 = vmatpush1.bf16.msra.mxu0 %v5044_v39  ;;  %v5122_v39 = vld [vmem:[#allocation5 + $0xce0] ss:$16 sps:$4 sm:$0xff]  }
  0xcf   :  { %3422 = vmatpush1.bf16.msra.mxu1 %v5047_v41  ;;  %3382 = vmatprep.subr.bf16.mxu0 %v5052_v42  ;;  %v97_v41 = vld [vmem:[#allocation2 + $0x68] sm:$0xff]  ;;  %v5848_v42 = vpack.c.bf16 %v92_v34, %v92_v34  ;;  %v5188_v34 = vld [vmem:[#allocation5 + $0xd80] ss:$16 sps:$4 sm:$0xff]  }
  0xd0   :  { %3423 = vmatprep.subr.bf16.mxu1 %v5055_v43  ;;  %v5850_v43 = vpack.c.bf16 %v94_v35, %v94_v35  ;;  %v5191_v35 = vld [vmem:[#allocation5 + $0xf80] ss:$16 sps:$4 sm:$0xff]  }
  0xd2   :  { %3383 = vmatpush1.bf16.msra.mxu0 %v5050_v44  ;;  %v99_v44 = vld [vmem:[#allocation2 + $0x78] sm:$0xff] }
  0xd3   :  { %3424 = vmatpush1.bf16.msra.mxu1 %v5053_v45  ;;  %3384 = vmatprep.subr.bf16.mxu0 %v5058_v46  ;;  %v5125_v45 = vld [vmem:[#allocation5 + $0xee0] ss:$16 sps:$4 sm:$0xff]   ;;  %v5130_v46 = vld [vmem:[#allocation5 + $0xcc4] ss:$16 sps:$4 sm:$0xff]  }
  0xd4   :  { %3425 = vmatprep.subr.bf16.mxu1 %v5061_v47  ;;  %v5133_v47 = vld [vmem:[#allocation5 + $0xec4] ss:$16 sps:$4 sm:$0xff]  }
  0xd6   :  { %3385 = vmatpush1.bf16.msra.mxu0 %v5056_v48  ;;  %v5852_v48 = vpack.c.bf16 %v97_v41, %v97_v41  ;;  %v5197_v41 = vld [vmem:[#allocation5 + $0xf60] ss:$16 sps:$4 sm:$0xff]  }
  0xd7   :  { %3426 = vmatpush1.bf16.msra.mxu1 %v5059_v50  ;;  %3386 = vmatprep.subr.bf16.mxu0 %v5064_v51  ;;  %v5854_v50 = vpack.c.bf16 %v99_v44, %v99_v44  ;;  %v5128_v51 = vld [vmem:[#allocation5 + $0xcc0] ss:$16 sps:$4 sm:$0xff]   ;;  %v5202_v44 = vld [vmem:[#allocation5 + $0xd44] ss:$16 sps:$4 sm:$0xff]  }
  0xd8   :  { %3427 = vmatprep.subr.bf16.mxu1 %v5067_v53  ;;  %v5131_v53 = vld [vmem:[#allocation5 + $0xec0] ss:$16 sps:$4 sm:$0xff]  }
  0xda   :  { %3387 = vmatpush1.bf16.msra.mxu0 %v5062_v54  ;;  %v5136_v54 = vld [vmem:[#allocation5 + $0xca4] ss:$16 sps:$4 sm:$0xff]  }
  0xdb   :  { %3428 = vmatpush1.bf16.msra.mxu1 %v5065_v55  ;;  %3388 = vmatprep.subr.bf16.mxu0 %v5070_v56  ;;  %v5139_v55 = vld [vmem:[#allocation5 + $0xea4] ss:$16 sps:$4 sm:$0xff]   ;;  %v5134_v56 = vld [vmem:[#allocation5 + $0xca0] ss:$16 sps:$4 sm:$0xff]  }
  0xdc   :  { %3429 = vmatprep.subr.bf16.mxu1 %v5073_v57  ;;  %v5137_v57 = vld [vmem:[#allocation5 + $0xea0] ss:$16 sps:$4 sm:$0xff]  }
  0xde   :  { %3389 = vmatpush1.bf16.msra.mxu0 %v5068_v58  ;;  %v5142_v58 = vld [vmem:[#allocation5 + $0xc84] ss:$16 sps:$4 sm:$0xff]  }
  0xdf   :  { %3430 = vmatpush1.bf16.msra.mxu1 %v5071_v59  ;;  %3390 = vmatprep.subr.bf16.mxu0 %v5076_v60  ;;  %v5145_v59 = vld [vmem:[#allocation5 + $0xe84] ss:$16 sps:$4 sm:$0xff]   ;;  %v5140_v60 = vld [vmem:[#allocation5 + $0xc80] ss:$16 sps:$4 sm:$0xff]  }
  0xe0   :  { %3431 = vmatprep.subr.bf16.mxu1 %v5079_v61  ;;  %v5143_v61 = vld [vmem:[#allocation5 + $0xe80] ss:$16 sps:$4 sm:$0xff]  }
  0xe2   :  { %3391 = vmatpush2.bf16.msra.mxu0 %v5074_v62  ;;  %v5148_v62 = vld [vmem:[#allocation5 + $0xc64] ss:$16 sps:$4 sm:$0xff]  }
  0xe3   :  { %3432 = vmatpush2.bf16.msra.mxu1 %v5077_v63  ;;  %3392 = vmatprep.subr.bf16.mxu0 %v5082_v0  ;;  %v5151_v63 = vld [vmem:[#allocation5 + $0xe64] ss:$16 sps:$4 sm:$0xff]   ;;  %v5146_v0 = vld [vmem:[#allocation5 + $0xc60] ss:$16 sps:$4 sm:$0xff]  }
  0xe4   :  { %3433 = vmatprep.subr.bf16.mxu1 %v5085_v1  ;;  %v5149_v1 = vld [vmem:[#allocation5 + $0xe60] ss:$16 sps:$4 sm:$0xff]  }
  0xe6   :  { %3393 = vmatpush2.bf16.msra.mxu0 %v5080_v2  ;;  %v5154_v2 = vld [vmem:[#allocation5 + $0xc44] ss:$16 sps:$4 sm:$0xff]  }
  0xe7   :  { %3434 = vmatpush2.bf16.msra.mxu1 %v5083_v3  ;;  %3394 = vmatprep.subr.bf16.mxu0 %v5088_v4  ;;  %v5157_v3 = vld [vmem:[#allocation5 + $0xe44] ss:$16 sps:$4 sm:$0xff]   ;;  %v5152_v4 = vld [vmem:[#allocation5 + $0xc40] ss:$16 sps:$4 sm:$0xff]  }
  0xe8   :  { %3435 = vmatprep.subr.bf16.mxu1 %v5091_v5  ;;  %v5155_v5 = vld [vmem:[#allocation5 + $0xe40] ss:$16 sps:$4 sm:$0xff]  }
  0xea   :  { %3395 = vmatpush2.bf16.msra.mxu0 %v5086_v6  ;;  %v5160_v6 = vld [vmem:[#allocation5 + $0xc24] ss:$16 sps:$4 sm:$0xff]  }
  0xeb   :  { %3436 = vmatpush2.bf16.msra.mxu1 %v5089_v7  ;;  %3396 = vmatprep.subr.bf16.mxu0 %v5094_v10  ;;  %v5163_v7 = vld [vmem:[#allocation5 + $0xe24] ss:$16 sps:$4 sm:$0xff]   ;;  %v5158_v10 = vld [vmem:[#allocation5 + $0xc20] ss:$16 sps:$4 sm:$0xff]  }
  0xec   :  { %3437 = vmatprep.subr.bf16.mxu1 %v5097_v11  ;;  %v5161_v11 = vld [vmem:[#allocation5 + $0xe20] ss:$16 sps:$4 sm:$0xff]  }
  0xee   :  { %3397 = vmatpush2.bf16.msra.mxu0 %v5092_v12  ;;  %v5166_v12 = vld [vmem:[#allocation5 + $0xc04] ss:$16 sps:$4 sm:$0xff]  }
  0xef   :  { %3438 = vmatpush2.bf16.msra.mxu1 %v5095_v13  ;;  %3398 = vmatprep.subr.bf16.mxu0 %v5100_v14  ;;  %v5169_v13 = vld [vmem:[#allocation5 + $0xe04] ss:$16 sps:$4 sm:$0xff]   ;;  %v5164_v14 = vld [vmem:[#allocation5 + $0xc00] ss:$16 sps:$4 sm:$0xff]  }
  0xf0   :  { %3439 = vmatprep.subr.bf16.mxu1 %v5103_v15  ;;  %v5167_v15 = vld [vmem:[#allocation5 + $0xe00] ss:$16 sps:$4 sm:$0xff]  }
  0xf2   :  { %3399 = vmatpush2.bf16.msra.mxu0 %v5098_v16  ;;  %v5172_v16 = vld [vmem:[#allocation5 + $0xde4] ss:$16 sps:$4 sm:$0xff]  }
  0xf3   :  { %3440 = vmatpush2.bf16.msra.mxu1 %v5101_v17  ;;  %3400 = vmatprep.subr.bf16.mxu0 %v5106_v18  ;;  %v5175_v17 = vld [vmem:[#allocation5 + $0xfe4] ss:$16 sps:$4 sm:$0xff]   ;;  %v5170_v18 = vld [vmem:[#allocation5 + $0xde0] ss:$16 sps:$4 sm:$0xff]  }
  0xf4   :  { %3441 = vmatprep.subr.bf16.mxu1 %v5109_v19  ;;  %v5173_v19 = vld [vmem:[#allocation5 + $0xfe0] ss:$16 sps:$4 sm:$0xff]  }
  0xf6   :  { %3401 = vmatpush2.bf16.msra.mxu0 %v5104_v22  ;;  %v5178_v22 = vld [vmem:[#allocation5 + $0xdc4] ss:$16 sps:$4 sm:$0xff]  }
  0xf7   :  { %3442 = vmatpush2.bf16.msra.mxu1 %v5107_v23  ;;  %3402 = vmatprep.subr.bf16.mxu0 %v5112_v24  ;;  %v5181_v23 = vld [vmem:[#allocation5 + $0xfc4] ss:$16 sps:$4 sm:$0xff]   ;;  %v5176_v24 = vld [vmem:[#allocation5 + $0xdc0] ss:$16 sps:$4 sm:$0xff]  }
  0xf8   :  { %3443 = vmatprep.subr.bf16.mxu1 %v5115_v25  ;;  %v5179_v25 = vld [vmem:[#allocation5 + $0xfc0] ss:$16 sps:$4 sm:$0xff]  }
  0xfa   :  { %3403 = vmatpush2.bf16.msra.mxu0 %v5110_v26  ;;  %v5184_v26 = vld [vmem:[#allocation5 + $0xda4] ss:$16 sps:$4 sm:$0xff]  }
  0xfb   :  { %3444 = vmatpush2.bf16.msra.mxu1 %v5113_v27  ;;  %3404 = vmatprep.subr.bf16.mxu0 %v5118_v28  ;;  %v5187_v27 = vld [vmem:[#allocation5 + $0xfa4] ss:$16 sps:$4 sm:$0xff]   ;;  %v5182_v28 = vld [vmem:[#allocation5 + $0xda0] ss:$16 sps:$4 sm:$0xff]  }
  0xfc   :  { %3445 = vmatprep.subr.bf16.mxu1 %v5121_v30  ;;  %v5185_v30 = vld [vmem:[#allocation5 + $0xfa0] ss:$16 sps:$4 sm:$0xff]  }
  0xfe   :  { %3405 = vmatpush2.bf16.msra.mxu0 %v5116_v31  ;;  %v5190_v31 = vld [vmem:[#allocation5 + $0xd84] ss:$16 sps:$4 sm:$0xff]  }
  0xff   :  { %3446 = vmatpush2.bf16.msra.mxu1 %v5119_v33  ;;  %3456 = vmatprep.subr.bf16.mxu0 %v5124_v36  ;;  %v5193_v33 = vld [vmem:[#allocation5 + $0xf84] ss:$16 sps:$4 sm:$0xff]  }
 0x100   :  { %3497 = vmatprep.subr.bf16.mxu1 %v5127_v38  ;;  %v5196_v36 = vld [vmem:[#allocation5 + $0xd64] ss:$16 sps:$4 sm:$0xff]  }
 0x101   :  { %3407 = vmatmul.mubr.bf16.vlgmr.msra.gmra.mxu0 %v5848_v42  ;;  %v5199_v38 = vld [vmem:[#allocation5 + $0xf64] ss:$16 sps:$4 sm:$0xff]  }
 0x102   :  { %3448 = vmatmul.mubr.bf16.vlgmr.msra.gmra.mxu1 %v5850_v43  ;;  %3457 = vmatpush1.bf16.msra.mxu0 %v5122_v39  ;;  %v5194_v39 = vld [vmem:[#allocation5 + $0xd60] ss:$16 sps:$4 sm:$0xff]  }
 0x103   :  { %3498 = vmatpush1.bf16.msra.mxu1 %v5125_v45  ;;  %3458 = vmatprep.subr.bf16.mxu0 %v5130_v46  ;;  %v5205_v45 = vld [vmem:[#allocation5 + $0xf44] ss:$16 sps:$4 sm:$0xff]   ;;  %v5200_v46 = vld [vmem:[#allocation5 + $0xd40] ss:$16 sps:$4 sm:$0xff]  }
 0x104   :  { %3499 = vmatprep.subr.bf16.mxu1 %v5133_v47  ;;  %3488 = vmatprep.mubr.bf16.mxu0 %v5852_v48  ;;  %v5203_v47 = vld [vmem:[#allocation5 + $0xf40] ss:$16 sps:$4 sm:$0xff]  }
 0x105   :  { %3529 = vmatprep.mubr.bf16.mxu1 %v5854_v50 }
 0x106   :  { %3459 = vmatpush1.bf16.msra.mxu0 %v5128_v51  ;;  %v630_v51 = vlaneseq }
 0x107   :  { %3500 = vmatpush1.bf16.msra.mxu1 %v5131_v53  ;;  %3460 = vmatprep.subr.bf16.mxu0 %v5136_v54  ;;  %v5208_v53 = vld [vmem:[#allocation5 + $0xd24] ss:$16 sps:$4 sm:$0xff]  }
 0x108   :  { %3501 = vmatprep.subr.bf16.mxu1 %v5139_v55  ;;  %v5211_v54 = vld [vmem:[#allocation5 + $0xf24] ss:$16 sps:$4 sm:$0xff]   ;;  %v5206_v55 = vld [vmem:[#allocation5 + $0xd20] ss:$16 sps:$4 sm:$0xff]  }
 0x10a   :  { %3461 = vmatpush1.bf16.msra.mxu0 %v5134_v56  ;;  %v5209_v56 = vld [vmem:[#allocation5 + $0xf20] ss:$16 sps:$4 sm:$0xff]  }
 0x10b   :  { %3502 = vmatpush1.bf16.msra.mxu1 %v5137_v57  ;;  %3462 = vmatprep.subr.bf16.mxu0 %v5142_v58  ;;  %v5860_v57 = vshrl.u32 %v630_v51, 7  ;;  %v5214_v58 = vld [vmem:[#allocation5 + $0xd04] ss:$16 sps:$4 sm:$0xff]   ;;  %v5253_v51 = vld [vmem:[#allocation5 + $0x24c] ss:$16 sps:$4 sm:$0xff]  }
 0x10c   :  { %3503 = vmatprep.subr.bf16.mxu1 %v5145_v59  ;;  %v5217_v59 = vld [vmem:[#allocation5 + $0xf04] ss:$16 sps:$4 sm:$0xff]  }
 0x10e   :  { %3463 = vmatpush1.bf16.msra.mxu0 %v5140_v60  ;;  %v5212_v60 = vld [vmem:[#allocation5 + $0xd00] ss:$16 sps:$4 sm:$0xff]  }
 0x10f   :  { %3504 = vmatpush1.bf16.msra.mxu1 %v5143_v61  ;;  %3464 = vmatprep.subr.bf16.mxu0 %v5148_v62  ;;  %v5215_v61 = vld [vmem:[#allocation5 + $0xf00] ss:$16 sps:$4 sm:$0xff]  }
 0x110   :  { %3505 = vmatprep.subr.bf16.mxu1 %v5151_v63  ;;  %v628_v62 = vld [vmem:[#allocation7] sm:$0xf] }
 0x111   :  { %v96_v63 = vld [vmem:[#allocation2 + $0x60] sm:$0xff] }
 0x112   :  { %3465 = vmatpush1.bf16.msra.mxu0 %v5146_v0  ;;  %v632_v0 = vsub.s32 0, %v5860_v57 }
 0x113   :  { %3506 = vmatpush1.bf16.msra.mxu1 %v5149_v1  ;;  %3466 = vmatprep.subr.bf16.mxu0 %v5154_v2  ;;  %v98_v1 = vld [vmem:[#allocation2 + $0x70] sm:$0xff]  ;;  %v5220_v2 = vld [vmem:[#allocation5 + $0xec] ss:$16 sps:$4 sm:$0xff]  }
 0x114   :  { %3507 = vmatprep.subr.bf16.mxu1 %v5157_v3  ;;  %v5223_v3 = vld [vmem:[#allocation5 + $0x2ec] ss:$16 sps:$4 sm:$0xff]  }
 0x116   :  { %3467 = vmatpush1.bf16.msra.mxu0 %v5152_v4  ;;  %v636_v4 = vsub.s32 1, %v5860_v57 }
 0x117   :  { %3508 = vmatpush1.bf16.msra.mxu1 %v5155_v5  ;;  %3468 = vmatprep.subr.bf16.mxu0 %v5160_v6  ;;  %v5864_v5 = vpack.c.bf16 %v96_v63, %v96_v63  ;;  %v5866_v6 = vpack.c.bf16 %v98_v1, %v98_v1  ;;  %v5263_v63 = vld [vmem:[#allocation5 + $0x208] ss:$16 sps:$4 sm:$0xff]   ;;  %v5271_v1 = vld [vmem:[#allocation5 + $0x3ec] ss:$16 sps:$4 sm:$0xff]  }
 0x118   :  { %3509 = vmatprep.subr.bf16.mxu1 %v5163_v7  ;;  %v5218_v7 = vld [vmem:[#allocation5 + $0xe8] ss:$16 sps:$4 sm:$0xff]  }
 0x11a   :  { %3469 = vmatpush1.bf16.msra.mxu0 %v5158_v10  ;;  %v633_v10 = vrot.slane %v628_v62, %v632_v0  ;;  %v5268_v0 = vld [vmem:[#allocation5 + $0x1ec] ss:$16 sps:$4 sm:$0xff]  }
 0x11b   :  { %3510 = vmatpush1.bf16.msra.mxu1 %v5161_v11  ;;  %3470 = vmatprep.subr.bf16.mxu0 %v5166_v12  ;;  %v5221_v11 = vld [vmem:[#allocation5 + $0x2e8] ss:$16 sps:$4 sm:$0xff]   ;;  %v5226_v12 = vld [vmem:[#allocation5 + $0xcc] ss:$16 sps:$4 sm:$0xff]  }
 0x11c   :  { %3511 = vmatprep.subr.bf16.mxu1 %v5169_v13  ;;  %v5229_v13 = vld [vmem:[#allocation5 + $0x2cc] ss:$16 sps:$4 sm:$0xff]  }
 0x11e   :  { %3471 = vmatpush1.bf16.msra.mxu0 %v5164_v14  ;;  %v637_v14 = vrot.slane %v628_v62, %v636_v4  ;;  %v5260_v62 = vld [vmem:[#allocation5 + $0x8] ss:$16 sps:$4 sm:$0xff]   ;;  %v5274_v4 = vld [vmem:[#allocation5 + $0x1cc] ss:$16 sps:$4 sm:$0xff]  }
 0x11f   :  { %3512 = vmatpush1.bf16.msra.mxu1 %v5167_v15  ;;  %3472 = vmatprep.subr.bf16.mxu0 %v5172_v16 }
 0x120   :  { %3513 = vmatprep.subr.bf16.mxu1 %v5175_v17  ;;  %v5224_v17 = vld [vmem:[#allocation5 + $0xc8] ss:$16 sps:$4 sm:$0xff]  }
 0x122   :  { %3473 = vmatpush2.bf16.msra.mxu0 %v5170_v18 }
 0x123   :  { %3514 = vmatpush2.bf16.msra.mxu1 %v5173_v19  ;;  %3474 = vmatprep.subr.bf16.mxu0 %v5178_v22  ;;  %v5227_v19 = vld [vmem:[#allocation5 + $0x2c8] ss:$16 sps:$4 sm:$0xff]  }
 0x124   :  { %3515 = vmatprep.subr.bf16.mxu1 %v5181_v23 }
 0x126   :  { %3475 = vmatpush2.bf16.msra.mxu0 %v5176_v24  ;;  %v5232_v24 = vld [vmem:[#allocation5 + $0xac] ss:$16 sps:$4 sm:$0xff]  }
 0x127   :  { %3516 = vmatpush2.bf16.msra.mxu1 %v5179_v25  ;;  %3476 = vmatprep.subr.bf16.mxu0 %v5184_v26  ;;  %v5235_v25 = vld [vmem:[#allocation5 + $0x2ac] ss:$16 sps:$4 sm:$0xff]  }
 0x128   :  { %3517 = vmatprep.subr.bf16.mxu1 %v5187_v27 }
 0x12a   :  { %3477 = vmatpush2.bf16.msra.mxu0 %v5182_v28 }
 0x12b   :  { %3518 = vmatpush2.bf16.msra.mxu1 %v5185_v30  ;;  %3478 = vmatprep.subr.bf16.mxu0 %v5190_v31  ;;  %v5230_v31 = vld [vmem:[#allocation5 + $0xa8] ss:$16 sps:$4 sm:$0xff]  }
 0x12c   :  { %3519 = vmatprep.subr.bf16.mxu1 %v5193_v33 }
 0x12e   :  { %3479 = vmatpush2.bf16.msra.mxu0 %v5188_v34  ;;  %v5233_v34 = vld [vmem:[#allocation5 + $0x2a8] ss:$16 sps:$4 sm:$0xff]  }
 0x12f   :  { %3520 = vmatpush2.bf16.msra.mxu1 %v5191_v35  ;;  %3480 = vmatprep.subr.bf16.mxu0 %v5196_v36 }
 0x130   :  { %3521 = vmatprep.subr.bf16.mxu1 %v5199_v38  ;;  %v5238_v38 = vld [vmem:[#allocation5 + $0x8c] ss:$16 sps:$4 sm:$0xff]  }
 0x132   :  { %3481 = vmatpush2.bf16.msra.mxu0 %v5194_v39  ;;  %v5241_v39 = vld [vmem:[#allocation5 + $0x28c] ss:$16 sps:$4 sm:$0xff]  }
 0x133   :  { %3522 = vmatpush2.bf16.msra.mxu1 %v5197_v41  ;;  %3482 = vmatprep.subr.bf16.mxu0 %v5202_v44  ;;  %v5236_v41 = vld [vmem:[#allocation5 + $0x88] ss:$16 sps:$4 sm:$0xff]   ;;  %v5247_v44 = vld [vmem:[#allocation5 + $0x26c] ss:$16 sps:$4 sm:$0xff]  }
 0x134   :  { %3523 = vmatprep.subr.bf16.mxu1 %v5205_v45  ;;  %v5242_v45 = vld [vmem:[#allocation5 + $0x68] ss:$16 sps:$4 sm:$0xff]  }
 0x136   :  { %3483 = vmatpush2.bf16.msra.mxu0 %v5200_v46  ;;  %v5245_v46 = vld [vmem:[#allocation5 + $0x268] ss:$16 sps:$4 sm:$0xff]  }
 0x137   :  { %3524 = vmatpush2.bf16.msra.mxu1 %v5203_v47  ;;  %3484 = vmatprep.subr.bf16.mxu0 %v5208_v53  ;;  %v5250_v47 = vld [vmem:[#allocation5 + $0x4c] ss:$16 sps:$4 sm:$0xff]   ;;  %v5248_v53 = vld [vmem:[#allocation5 + $0x48] ss:$16 sps:$4 sm:$0xff]  }
 0x138   :  { %3525 = vmatprep.subr.bf16.mxu1 %v5211_v54  ;;  %v5251_v54 = vld [vmem:[#allocation5 + $0x248] ss:$16 sps:$4 sm:$0xff]  }
 0x13a   :  { %3485 = vmatpush2.bf16.msra.mxu0 %v5206_v55  ;;  %v5256_v55 = vld [vmem:[#allocation5 + $0x2c] ss:$16 sps:$4 sm:$0xff]  }
 0x13b   :  { %3526 = vmatpush2.bf16.msra.mxu1 %v5209_v56  ;;  %3486 = vmatprep.subr.bf16.mxu0 %v5214_v58  ;;  %v5259_v56 = vld [vmem:[#allocation5 + $0x22c] ss:$16 sps:$4 sm:$0xff]   ;;  %v5254_v58 = vld [vmem:[#allocation5 + $0x28] ss:$16 sps:$4 sm:$0xff]  }
 0x13c   :  { %3527 = vmatprep.subr.bf16.mxu1 %v5217_v59  ;;  %v5257_v59 = vld [vmem:[#allocation5 + $0x228] ss:$16 sps:$4 sm:$0xff]  }
 0x13e   :  { %3487 = vmatpush2.bf16.msra.mxu0 %v5212_v60  ;;  %v5262_v60 = vld [vmem:[#allocation5 + $0xc] ss:$16 sps:$4 sm:$0xff]  }
 0x13f   :  { %3528 = vmatpush2.bf16.msra.mxu1 %v5215_v61  ;;  %3538 = vmatprep.subr.bf16.mxu0 %v5220_v2  ;;  %v5265_v61 = vld [vmem:[#allocation5 + $0x20c] ss:$16 sps:$4 sm:$0xff]   ;;  %v5266_v2 = vld [vmem:[#allocation5 + $0x1e8] ss:$16 sps:$4 sm:$0xff]  }
 0x140   :  { %3579 = vmatprep.subr.bf16.mxu1 %v5223_v3  ;;  %v5269_v3 = vld [vmem:[#allocation5 + $0x3e8] ss:$16 sps:$4 sm:$0xff]  }
 0x141   :  { %v3244_v15 = vpop.f32.mrf.mxu0  ;;  %3489 = vmatmul.mubr.bf16.vlgmr.msra.gmra.mxu0 %v5864_v5 }
 0x142   :  { %v3285_v16 = vpop.f32.mrf.mxu1  ;;  %3530 = vmatmul.mubr.bf16.vlgmr.msra.gmra.mxu1 %v5866_v6  ;;  %v3245_v18 = vadd.f32 %v3244_v15, %v633_v10  ;;  %3539 = vmatpush1.bf16.msra.mxu0 %v5218_v7  ;;  %v5277_v7 = vld [vmem:[#allocation5 + $0x3cc] ss:$16 sps:$4 sm:$0xff]   ;;  %v5272_v10 = vld [vmem:[#allocation5 + $0x1c8] ss:$16 sps:$4 sm:$0xff]  }
 0x143   :  { %3580 = vmatpush1.bf16.msra.mxu1 %v5221_v11  ;;  %v3246_v22 = vpop.f32.mrf.mxu0  ;;  %3540 = vmatprep.subr.bf16.mxu0 %v5226_v12  ;;  %v5275_v11 = vld [vmem:[#allocation5 + $0x3c8] ss:$16 sps:$4 sm:$0xff]   ;;  %v5280_v12 = vld [vmem:[#allocation5 + $0x1ac] ss:$16 sps:$4 sm:$0xff]  }
 0x144   :  { %v3287_v23 = vpop.f32.mrf.mxu1  ;;  %3581 = vmatprep.subr.bf16.mxu1 %v5229_v13  ;;  %v5870_v26 = vadd.f32 %v3285_v16, %v3245_v18  ;;  %v3247_v27 = vadd.f32 %v3246_v22, %v637_v14  ;;  %3570 = vmatprep.mubr.bf16.mxu0 %v5818_v49  ;;  %v5239_v49 = vld [vmem:[#allocation5 + $0x288] ss:$16 sps:$4 sm:$0xff]   ;;  %v5283_v13 = vld [vmem:[#allocation5 + $0x3ac] ss:$16 sps:$4 sm:$0xff]  }
 0x145   :  { %3611 = vmatprep.mubr.bf16.mxu1 %v5820_v52  ;;  %v3248_v28 = vpop.f32.mrf.mxu0  ;;  %v5244_v52 = vld [vmem:[#allocation5 + $0x6c] ss:$16 sps:$4 sm:$0xff]   ;;  %v5278_v14 = vld [vmem:[#allocation5 + $0x1a8] ss:$16 sps:$4 sm:$0xff]  }
 0x146   :  { %v3289_v30 = vpop.f32.mrf.mxu1  ;;  %v5874_v33 = vadd.f32 %v3287_v23, %v3247_v27  ;;  %3541 = vmatpush1.bf16.msra.mxu0 %v5224_v17  ;;  %v5281_v15 = vld [vmem:[#allocation5 + $0x3a8] ss:$16 sps:$4 sm:$0xff]   ;;  %v5286_v16 = vld [vmem:[#allocation5 + $0x18c] ss:$16 sps:$4 sm:$0xff]  }
 0x147   :  { %3582 = vmatpush1.bf16.msra.mxu1 %v5227_v19  ;;  %v3249_v35 = vpop.f32.mrf.mxu0  ;;  %3542 = vmatprep.subr.bf16.mxu0 %v5232_v24  ;;  %v5289_v17 = vld [vmem:[#allocation5 + $0x38c] ss:$16 sps:$4 sm:$0xff]   ;;  %v5284_v18 = vld [vmem:[#allocation5 + $0x188] ss:$16 sps:$4 sm:$0xff]  }
 0x148   :  { %v3290_v36 = vpop.f32.mrf.mxu1  ;;  %3583 = vmatprep.subr.bf16.mxu1 %v5235_v25  ;;  %v5287_v19 = vld [vmem:[#allocation5 + $0x388] ss:$16 sps:$4 sm:$0xff]   ;;  %v5292_v22 = vld [vmem:[#allocation5 + $0x16c] ss:$16 sps:$4 sm:$0xff]  }
 0x149   :  { %v5295_v23 = vld [vmem:[#allocation5 + $0x36c] ss:$16 sps:$4 sm:$0xff]   ;;  %v5290_v24 = vld [vmem:[#allocation5 + $0x168] ss:$16 sps:$4 sm:$0xff]  }
 0x14a   :  { %3543 = vmatpush1.bf16.msra.mxu0 %v5230_v31  ;;  %v5293_v25 = vld [vmem:[#allocation5 + $0x368] ss:$16 sps:$4 sm:$0xff]   ;;  %v5298_v27 = vld [vmem:[#allocation5 + $0x14c] ss:$16 sps:$4 sm:$0xff]  }
 0x14b   :  { %3584 = vmatpush1.bf16.msra.mxu1 %v5233_v34  ;;  %3544 = vmatprep.subr.bf16.mxu0 %v5238_v38  ;;  %v5301_v28 = vld [vmem:[#allocation5 + $0x34c] ss:$16 sps:$4 sm:$0xff]   ;;  %v5296_v30 = vld [vmem:[#allocation5 + $0x148] ss:$16 sps:$4 sm:$0xff]  }
 0x14c   :  { %3585 = vmatprep.subr.bf16.mxu1 %v5241_v39  ;;  %v5299_v31 = vld [vmem:[#allocation5 + $0x348] ss:$16 sps:$4 sm:$0xff]   ;;  %v5304_v34 = vld [vmem:[#allocation5 + $0x12c] ss:$16 sps:$4 sm:$0xff]  }
 0x14d   :  { %v5307_v35 = vld [vmem:[#allocation5 + $0x32c] ss:$16 sps:$4 sm:$0xff]   ;;  %v5302_v36 = vld [vmem:[#allocation5 + $0x128] ss:$16 sps:$4 sm:$0xff]  }
 0x14e   :  { %3545 = vmatpush1.bf16.msra.mxu0 %v5236_v41  ;;  %v5305_v38 = vld [vmem:[#allocation5 + $0x328] ss:$16 sps:$4 sm:$0xff]   ;;  %v5310_v39 = vld [vmem:[#allocation5 + $0x10c] ss:$16 sps:$4 sm:$0xff]  }
 0x14f   :  { %3586 = vmatpush1.bf16.msra.mxu1 %v5239_v49  ;;  %3546 = vmatprep.subr.bf16.mxu0 %v5244_v52  ;;  %v5313_v41 = vld [vmem:[#allocation5 + $0x30c] ss:$16 sps:$4 sm:$0xff]   ;;  %v5308_v49 = vld [vmem:[#allocation5 + $0x108] ss:$16 sps:$4 sm:$0xff]  }
 0x150   :  { %3587 = vmatprep.subr.bf16.mxu1 %v5247_v44  ;;  %v5311_v52 = vld [vmem:[#allocation5 + $0x308] ss:$16 sps:$4 sm:$0xff]   ;;  %v5316_v44 = vld [vmem:[#allocation5 + $0x4ec] ss:$16 sps:$4 sm:$0xff]  }
 0x152   :  { %3547 = vmatpush1.bf16.msra.mxu0 %v5242_v45  ;;  %v5319_v45 = vld [vmem:[#allocation5 + $0x6ec] ss:$16 sps:$4 sm:$0xff]  }
 0x153   :  { %3588 = vmatpush1.bf16.msra.mxu1 %v5245_v46  ;;  %3548 = vmatprep.subr.bf16.mxu0 %v5250_v47  ;;  %v5314_v46 = vld [vmem:[#allocation5 + $0x4e8] ss:$16 sps:$4 sm:$0xff]  }
 0x154   :  { %3589 = vmatprep.subr.bf16.mxu1 %v5253_v51  ;;  %v5317_v47 = vld [vmem:[#allocation5 + $0x6e8] ss:$16 sps:$4 sm:$0xff]   ;;  %v5322_v51 = vld [vmem:[#allocation5 + $0x4cc] ss:$16 sps:$4 sm:$0xff]  }
 0x156   :  { %3549 = vmatpush1.bf16.msra.mxu0 %v5248_v53  ;;  %v5325_v53 = vld [vmem:[#allocation5 + $0x6cc] ss:$16 sps:$4 sm:$0xff]  }
 0x157   :  { %3590 = vmatpush1.bf16.msra.mxu1 %v5251_v54  ;;  %3550 = vmatprep.subr.bf16.mxu0 %v5256_v55  ;;  %v5320_v54 = vld [vmem:[#allocation5 + $0x4c8] ss:$16 sps:$4 sm:$0xff]  }
 0x158   :  { %3591 = vmatprep.subr.bf16.mxu1 %v5259_v56  ;;  %v5323_v55 = vld [vmem:[#allocation5 + $0x6c8] ss:$16 sps:$4 sm:$0xff]  }
 0x15a   :  { %3551 = vmatpush1.bf16.msra.mxu0 %v5254_v58 }
 0x15b   :  { %3592 = vmatpush1.bf16.msra.mxu1 %v5257_v59  ;;  %3552 = vmatprep.subr.bf16.mxu0 %v5262_v60 }
 0x15c   :  { %3593 = vmatprep.subr.bf16.mxu1 %v5265_v61 }
 0x15e   :  { %3553 = vmatpush1.bf16.msra.mxu0 %v5260_v62  ;;  %v5328_v62 = vld [vmem:[#allocation5 + $0x4ac] ss:$16 sps:$4 sm:$0xff]  }
 0x15f   :  { %3594 = vmatpush1.bf16.msra.mxu1 %v5263_v63  ;;  %3554 = vmatprep.subr.bf16.mxu0 %v5268_v0  ;;  %v5331_v63 = vld [vmem:[#allocation5 + $0x6ac] ss:$16 sps:$4 sm:$0xff]  }
 0x160   :  { %3595 = vmatprep.subr.bf16.mxu1 %v5271_v1 }
 0x162   :  { %3555 = vmatpush2.bf16.msra.mxu0 %v5266_v2  ;;  %v5326_v2 = vld [vmem:[#allocation5 + $0x4a8] ss:$16 sps:$4 sm:$0xff]  }
 0x163   :  { %3596 = vmatpush2.bf16.msra.mxu1 %v5269_v3  ;;  %3556 = vmatprep.subr.bf16.mxu0 %v5274_v4  ;;  %v5329_v3 = vld [vmem:[#allocation5 + $0x6a8] ss:$16 sps:$4 sm:$0xff]  }
 0x164   :  { %3597 = vmatprep.subr.bf16.mxu1 %v5277_v7 }
 0x166   :  { %3557 = vmatpush2.bf16.msra.mxu0 %v5272_v10  ;;  %v5334_v10 = vld [vmem:[#allocation5 + $0x48c] ss:$16 sps:$4 sm:$0xff]  }
 0x167   :  { %3598 = vmatpush2.bf16.msra.mxu1 %v5275_v11  ;;  %3558 = vmatprep.subr.bf16.mxu0 %v5280_v12  ;;  %v5337_v11 = vld [vmem:[#allocation5 + $0x68c] ss:$16 sps:$4 sm:$0xff]   ;;  %v5335_v12 = vld [vmem:[#allocation5 + $0x688] ss:$16 sps:$4 sm:$0xff]  }
 0x168   :  { %3599 = vmatprep.subr.bf16.mxu1 %v5283_v13  ;;  %v5338_v13 = vld [vmem:[#allocation5 + $0x468] ss:$16 sps:$4 sm:$0xff]  }
 0x16a   :  { %3559 = vmatpush2.bf16.msra.mxu0 %v5278_v14  ;;  %v5341_v14 = vld [vmem:[#allocation5 + $0x668] ss:$16 sps:$4 sm:$0xff]  }
 0x16b   :  { %3600 = vmatpush2.bf16.msra.mxu1 %v5281_v15  ;;  %3560 = vmatprep.subr.bf16.mxu0 %v5286_v16  ;;  %v5346_v15 = vld [vmem:[#allocation5 + $0x44c] ss:$16 sps:$4 sm:$0xff]  }
 0x16c   :  { %3601 = vmatprep.subr.bf16.mxu1 %v5289_v17  ;;  %v5349_v16 = vld [vmem:[#allocation5 + $0x64c] ss:$16 sps:$4 sm:$0xff]   ;;  %v5344_v17 = vld [vmem:[#allocation5 + $0x448] ss:$16 sps:$4 sm:$0xff]  }
 0x16e   :  { %3561 = vmatpush2.bf16.msra.mxu0 %v5284_v18  ;;  %v5347_v18 = vld [vmem:[#allocation5 + $0x648] ss:$16 sps:$4 sm:$0xff]  }
 0x16f   :  { %3602 = vmatpush2.bf16.msra.mxu1 %v5287_v19  ;;  %3562 = vmatprep.subr.bf16.mxu0 %v5292_v22  ;;  %v5352_v19 = vld [vmem:[#allocation5 + $0x42c] ss:$16 sps:$4 sm:$0xff]  }
 0x170   :  { %3603 = vmatprep.subr.bf16.mxu1 %v5295_v23  ;;  %v5355_v22 = vld [vmem:[#allocation5 + $0x62c] ss:$16 sps:$4 sm:$0xff]   ;;  %v5350_v23 = vld [vmem:[#allocation5 + $0x428] ss:$16 sps:$4 sm:$0xff]  }
 0x172   :  { %3563 = vmatpush2.bf16.msra.mxu0 %v5290_v24  ;;  %v5353_v24 = vld [vmem:[#allocation5 + $0x628] ss:$16 sps:$4 sm:$0xff]  }
 0x173   :  { %3604 = vmatpush2.bf16.msra.mxu1 %v5293_v25  ;;  %3564 = vmatprep.subr.bf16.mxu0 %v5298_v27  ;;  %v5358_v25 = vld [vmem:[#allocation5 + $0x40c] ss:$16 sps:$4 sm:$0xff]  }
 0x174   :  { %3605 = vmatprep.subr.bf16.mxu1 %v5301_v28  ;;  %v5361_v27 = vld [vmem:[#allocation5 + $0x60c] ss:$16 sps:$4 sm:$0xff]   ;;  %v5356_v28 = vld [vmem:[#allocation5 + $0x408] ss:$16 sps:$4 sm:$0xff]  }
 0x176   :  { %3565 = vmatpush2.bf16.msra.mxu0 %v5296_v30  ;;  %v5359_v30 = vld [vmem:[#allocation5 + $0x608] ss:$16 sps:$4 sm:$0xff]  }
 0x177   :  { %3606 = vmatpush2.bf16.msra.mxu1 %v5299_v31  ;;  %3566 = vmatprep.subr.bf16.mxu0 %v5304_v34  ;;  %v5364_v31 = vld [vmem:[#allocation5 + $0x5ec] ss:$16 sps:$4 sm:$0xff]  }
 0x178   :  { %3607 = vmatprep.subr.bf16.mxu1 %v5307_v35  ;;  %v5367_v34 = vld [vmem:[#allocation5 + $0x7ec] ss:$16 sps:$4 sm:$0xff]   ;;  %v5362_v35 = vld [vmem:[#allocation5 + $0x5e8] ss:$16 sps:$4 sm:$0xff]  }
 0x17a   :  { %3567 = vmatpush2.bf16.msra.mxu0 %v5302_v36  ;;  %v5365_v36 = vld [vmem:[#allocation5 + $0x7e8] ss:$16 sps:$4 sm:$0xff]  }
 0x17b   :  { %3608 = vmatpush2.bf16.msra.mxu1 %v5305_v38  ;;  %3568 = vmatprep.subr.bf16.mxu0 %v5310_v39  ;;  %v5370_v38 = vld [vmem:[#allocation5 + $0x5cc] ss:$16 sps:$4 sm:$0xff]  }
 0x17c   :  { %3609 = vmatprep.subr.bf16.mxu1 %v5313_v41  ;;  %v5373_v39 = vld [vmem:[#allocation5 + $0x7cc] ss:$16 sps:$4 sm:$0xff]   ;;  %v5368_v41 = vld [vmem:[#allocation5 + $0x5c8] ss:$16 sps:$4 sm:$0xff]  }
 0x17e   :  { %3569 = vmatpush2.bf16.msra.mxu0 %v5308_v49  ;;  %v5371_v49 = vld [vmem:[#allocation5 + $0x7c8] ss:$16 sps:$4 sm:$0xff]  }
 0x17f   :  { %3610 = vmatpush2.bf16.msra.mxu1 %v5311_v52  ;;  %3620 = vmatprep.subr.bf16.mxu0 %v5316_v44  ;;  %v5376_v52 = vld [vmem:[#allocation5 + $0x5ac] ss:$16 sps:$4 sm:$0xff]  }
 0x180   :  { %3661 = vmatprep.subr.bf16.mxu1 %v5319_v45  ;;  %v5379_v44 = vld [vmem:[#allocation5 + $0x7ac] ss:$16 sps:$4 sm:$0xff]   ;;  %v5374_v45 = vld [vmem:[#allocation5 + $0x5a8] ss:$16 sps:$4 sm:$0xff]  }
 0x181   :  { %v3326_v56 = vpop.f32.mrf.mxu0  ;;  %3571 = vmatmul.mubr.bf16.vlgmr.msra.gmra.mxu0 %v5824_v8 }
 0x182   :  { %v3367_v58 = vpop.f32.mrf.mxu1  ;;  %3612 = vmatmul.mubr.bf16.vlgmr.msra.gmra.mxu1 %v5826_v9  ;;  %v3327_v59 = vadd.f32 %v3326_v56, %v5870_v26  ;;  %3621 = vmatpush1.bf16.msra.mxu0 %v5314_v46  ;;  %v5377_v46 = vld [vmem:[#allocation5 + $0x7a8] ss:$16 sps:$4 sm:$0xff]   ;;  %v5391_v56 = vld [vmem:[#allocation5 + $0x76c] ss:$16 sps:$4 sm:$0xff]  }
 0x183   :  { %3662 = vmatpush1.bf16.msra.mxu1 %v5317_v47  ;;  %v3328_v60 = vpop.f32.mrf.mxu0  ;;  %3622 = vmatprep.subr.bf16.mxu0 %v5322_v51  ;;  %v5382_v47 = vld [vmem:[#allocation5 + $0x58c] ss:$16 sps:$4 sm:$0xff]  }
 0x184   :  { %v3369_v61 = vpop.f32.mrf.mxu1  ;;  %3663 = vmatprep.subr.bf16.mxu1 %v5325_v53  ;;  %v5879_v0 = vadd.f32 %v3367_v58, %v3327_v59  ;;  %v3329_v1 = vadd.f32 %v3328_v60, %v5874_v33  ;;  %3652 = vmatprep.mubr.bf16.mxu0 %v5830_v37  ;;  %v5332_v33 = vld [vmem:[#allocation5 + $0x488] ss:$16 sps:$4 sm:$0xff]   ;;  %v5340_v37 = vld [vmem:[#allocation5 + $0x46c] ss:$16 sps:$4 sm:$0xff]  }
 0x185   :  { %3693 = vmatprep.mubr.bf16.mxu1 %v5832_v40  ;;  %v3330_v8 = vpop.f32.mrf.mxu0  ;;  %v5343_v40 = vld [vmem:[#allocation5 + $0x66c] ss:$16 sps:$4 sm:$0xff]   ;;  %v5380_v53 = vld [vmem:[#allocation5 + $0x588] ss:$16 sps:$4 sm:$0xff]  }
 0x186   :  { %v3371_v9 = vpop.f32.mrf.mxu1  ;;  %v5884_v26 = vadd.f32 %v3369_v61, %v3329_v1  ;;  %3623 = vmatpush1.bf16.msra.mxu0 %v5320_v54  ;;  %v5385_v51 = vld [vmem:[#allocation5 + $0x78c] ss:$16 sps:$4 sm:$0xff]   ;;  %v5383_v54 = vld [vmem:[#allocation5 + $0x788] ss:$16 sps:$4 sm:$0xff]  }
 0x187   :  { %3664 = vmatpush1.bf16.msra.mxu1 %v5323_v55  ;;  %v3331_v4 = vpop.f32.mrf.mxu0  ;;  %3624 = vmatprep.subr.bf16.mxu0 %v5328_v62  ;;  %v5388_v55 = vld [vmem:[#allocation5 + $0x56c] ss:$16 sps:$4 sm:$0xff]   ;;  %v5386_v58 = vld [vmem:[#allocation5 + $0x568] ss:$16 sps:$4 sm:$0xff]  }
 0x188   :  { %v3372_v7 = vpop.f32.mrf.mxu1  ;;  %3665 = vmatprep.subr.bf16.mxu1 %v5331_v63  ;;  %v5389_v59 = vld [vmem:[#allocation5 + $0x768] ss:$16 sps:$4 sm:$0xff]   ;;  %v5394_v60 = vld [vmem:[#allocation5 + $0x54c] ss:$16 sps:$4 sm:$0xff]  }
 0x189   :  { %v5397_v61 = vld [vmem:[#allocation5 + $0x74c] ss:$16 sps:$4 sm:$0xff]   ;;  %v5392_v62 = vld [vmem:[#allocation5 + $0x548] ss:$16 sps:$4 sm:$0xff]  }
 0x18a   :  { %3625 = vmatpush1.bf16.msra.mxu0 %v5326_v2  ;;  %v5395_v63 = vld [vmem:[#allocation5 + $0x748] ss:$16 sps:$4 sm:$0xff]   ;;  %v5400_v1 = vld [vmem:[#allocation5 + $0x52c] ss:$16 sps:$4 sm:$0xff]  }
 0x18b   :  { %3666 = vmatpush1.bf16.msra.mxu1 %v5329_v3  ;;  %3626 = vmatprep.subr.bf16.mxu0 %v5334_v10  ;;  %v5403_v2 = vld [vmem:[#allocation5 + $0x72c] ss:$16 sps:$4 sm:$0xff]   ;;  %v5398_v3 = vld [vmem:[#allocation5 + $0x528] ss:$16 sps:$4 sm:$0xff]  }
 0x18c   :  { %3667 = vmatprep.subr.bf16.mxu1 %v5337_v11  ;;  %v5401_v8 = vld [vmem:[#allocation5 + $0x728] ss:$16 sps:$4 sm:$0xff]   ;;  %v5406_v9 = vld [vmem:[#allocation5 + $0x50c] ss:$16 sps:$4 sm:$0xff]  }
 0x18d   :  { %v5409_v4 = vld [vmem:[#allocation5 + $0x70c] ss:$16 sps:$4 sm:$0xff]   ;;  %v5404_v7 = vld [vmem:[#allocation5 + $0x508] ss:$16 sps:$4 sm:$0xff]  }
 0x18e   :  { %3627 = vmatpush1.bf16.msra.mxu0 %v5332_v33  ;;  %v5407_v10 = vld [vmem:[#allocation5 + $0x708] ss:$16 sps:$4 sm:$0xff]   ;;  %v5412_v11 = vld [vmem:[#allocation5 + $0x8ec] ss:$16 sps:$4 sm:$0xff]  }
 0x18f   :  { %3668 = vmatpush1.bf16.msra.mxu1 %v5335_v12  ;;  %3628 = vmatprep.subr.bf16.mxu0 %v5340_v37  ;;  %v5415_v33 = vld [vmem:[#allocation5 + $0xaec] ss:$16 sps:$4 sm:$0xff]   ;;  %v5410_v12 = vld [vmem:[#allocation5 + $0x8e8] ss:$16 sps:$4 sm:$0xff]  }
 0x190   :  { %3669 = vmatprep.subr.bf16.mxu1 %v5343_v40  ;;  %v5413_v37 = vld [vmem:[#allocation5 + $0xae8] ss:$16 sps:$4 sm:$0xff]   ;;  %v5418_v40 = vld [vmem:[#allocation5 + $0x8cc] ss:$16 sps:$4 sm:$0xff]  }
 0x192   :  { %3629 = vmatpush1.bf16.msra.mxu0 %v5338_v13  ;;  %v5421_v13 = vld [vmem:[#allocation5 + $0xacc] ss:$16 sps:$4 sm:$0xff]  }
 0x193   :  { %3670 = vmatpush1.bf16.msra.mxu1 %v5341_v14  ;;  %3630 = vmatprep.subr.bf16.mxu0 %v5346_v15 }
 0x194   :  { %3671 = vmatprep.subr.bf16.mxu1 %v5349_v16 }
 0x196   :  { %3631 = vmatpush1.bf16.msra.mxu0 %v5344_v17  ;;  %v5416_v17 = vld [vmem:[#allocation5 + $0x8c8] ss:$16 sps:$4 sm:$0xff]  }
 0x197   :  { %3672 = vmatpush1.bf16.msra.mxu1 %v5347_v18  ;;  %3632 = vmatprep.subr.bf16.mxu0 %v5352_v19  ;;  %v5419_v18 = vld [vmem:[#allocation5 + $0xac8] ss:$16 sps:$4 sm:$0xff]  }
 0x198   :  { %3673 = vmatprep.subr.bf16.mxu1 %v5355_v22 }
 0x19a   :  { %3633 = vmatpush1.bf16.msra.mxu0 %v5350_v23  ;;  %v5424_v23 = vld [vmem:[#allocation5 + $0x8ac] ss:$16 sps:$4 sm:$0xff]  }
 0x19b   :  { %3674 = vmatpush1.bf16.msra.mxu1 %v5353_v24  ;;  %3634 = vmatprep.subr.bf16.mxu0 %v5358_v25  ;;  %v5427_v24 = vld [vmem:[#allocation5 + $0xaac] ss:$16 sps:$4 sm:$0xff]  }
 0x19c   :  { %3675 = vmatprep.subr.bf16.mxu1 %v5361_v27 }
 0x19e   :  { %3635 = vmatpush1.bf16.msra.mxu0 %v5356_v28  ;;  %v5422_v28 = vld [vmem:[#allocation5 + $0x8a8] ss:$16 sps:$4 sm:$0xff]  }
 0x19f   :  { %3676 = vmatpush1.bf16.msra.mxu1 %v5359_v30  ;;  %3636 = vmatprep.subr.bf16.mxu0 %v5364_v31  ;;  %v5425_v30 = vld [vmem:[#allocation5 + $0xaa8] ss:$16 sps:$4 sm:$0xff]  }
 0x1a0   :  { %3677 = vmatprep.subr.bf16.mxu1 %v5367_v34 }
 0x1a2   :  { %3637 = vmatpush2.bf16.msra.mxu0 %v5362_v35  ;;  %v5430_v35 = vld [vmem:[#allocation5 + $0x88c] ss:$16 sps:$4 sm:$0xff]  }
 0x1a3   :  { %3678 = vmatpush2.bf16.msra.mxu1 %v5365_v36  ;;  %3638 = vmatprep.subr.bf16.mxu0 %v5370_v38  ;;  %v5433_v36 = vld [vmem:[#allocation5 + $0xa8c] ss:$16 sps:$4 sm:$0xff]  }
 0x1a4   :  { %3679 = vmatprep.subr.bf16.mxu1 %v5373_v39  ;;  %v5439_v38 = vld [vmem:[#allocation5 + $0xa6c] ss:$16 sps:$4 sm:$0xff]   ;;  %v5434_v39 = vld [vmem:[#allocation5 + $0x868] ss:$16 sps:$4 sm:$0xff]  }
 0x1a6   :  { %3639 = vmatpush2.bf16.msra.mxu0 %v5368_v41  ;;  %v5437_v41 = vld [vmem:[#allocation5 + $0xa68] ss:$16 sps:$4 sm:$0xff]  }
 0x1a7   :  { %3680 = vmatpush2.bf16.msra.mxu1 %v5371_v49  ;;  %3640 = vmatprep.subr.bf16.mxu0 %v5376_v52  ;;  %v5442_v49 = vld [vmem:[#allocation5 + $0x84c] ss:$16 sps:$4 sm:$0xff]  }
 0x1a8   :  { %3681 = vmatprep.subr.bf16.mxu1 %v5379_v44  ;;  %v5445_v52 = vld [vmem:[#allocation5 + $0xa4c] ss:$16 sps:$4 sm:$0xff]   ;;  %v5440_v44 = vld [vmem:[#allocation5 + $0x848] ss:$16 sps:$4 sm:$0xff]  }
 0x1aa   :  { %3641 = vmatpush2.bf16.msra.mxu0 %v5374_v45  ;;  %v5443_v45 = vld [vmem:[#allocation5 + $0xa48] ss:$16 sps:$4 sm:$0xff]  }
 0x1ab   :  { %3682 = vmatpush2.bf16.msra.mxu1 %v5377_v46  ;;  %3642 = vmatprep.subr.bf16.mxu0 %v5382_v47  ;;  %v5448_v46 = vld [vmem:[#allocation5 + $0x82c] ss:$16 sps:$4 sm:$0xff]  }
 0x1ac   :  { %3683 = vmatprep.subr.bf16.mxu1 %v5385_v51  ;;  %v5451_v47 = vld [vmem:[#allocation5 + $0xa2c] ss:$16 sps:$4 sm:$0xff]   ;;  %v5446_v51 = vld [vmem:[#allocation5 + $0x828] ss:$16 sps:$4 sm:$0xff]  }
 0x1ae   :  { %3643 = vmatpush2.bf16.msra.mxu0 %v5380_v53  ;;  %v5449_v53 = vld [vmem:[#allocation5 + $0xa28] ss:$16 sps:$4 sm:$0xff]  }
 0x1af   :  { %3684 = vmatpush2.bf16.msra.mxu1 %v5383_v54  ;;  %3644 = vmatprep.subr.bf16.mxu0 %v5388_v55  ;;  %v5454_v54 = vld [vmem:[#allocation5 + $0x80c] ss:$16 sps:$4 sm:$0xff]  }
 0x1b0   :  { %3685 = vmatprep.subr.bf16.mxu1 %v5391_v56  ;;  %v5457_v55 = vld [vmem:[#allocation5 + $0xa0c] ss:$16 sps:$4 sm:$0xff]   ;;  %v5452_v56 = vld [vmem:[#allocation5 + $0x808] ss:$16 sps:$4 sm:$0xff]  }
 0x1b2   :  { %3645 = vmatpush2.bf16.msra.mxu0 %v5386_v58  ;;  %v5455_v58 = vld [vmem:[#allocation5 + $0xa08] ss:$16 sps:$4 sm:$0xff]  }
 0x1b3   :  { %3686 = vmatpush2.bf16.msra.mxu1 %v5389_v59  ;;  %3646 = vmatprep.subr.bf16.mxu0 %v5394_v60  ;;  %v5460_v59 = vld [vmem:[#allocation5 + $0x9ec] ss:$16 sps:$4 sm:$0xff]  }
 0x1b4   :  { %3687 = vmatprep.subr.bf16.mxu1 %v5397_v61  ;;  %v5463_v60 = vld [vmem:[#allocation5 + $0xbec] ss:$16 sps:$4 sm:$0xff]   ;;  %v5458_v61 = vld [vmem:[#allocation5 + $0x9e8] ss:$16 sps:$4 sm:$0xff]  }
 0x1b6   :  { %3647 = vmatpush2.bf16.msra.mxu0 %v5392_v62  ;;  %v5461_v62 = vld [vmem:[#allocation5 + $0xbe8] ss:$16 sps:$4 sm:$0xff]  }
 0x1b7   :  { %3688 = vmatpush2.bf16.msra.mxu1 %v5395_v63  ;;  %3648 = vmatprep.subr.bf16.mxu0 %v5400_v1  ;;  %v5466_v63 = vld [vmem:[#allocation5 + $0x9cc] ss:$16 sps:$4 sm:$0xff]  }
 0x1b8   :  { %3689 = vmatprep.subr.bf16.mxu1 %v5403_v2  ;;  %v5469_v1 = vld [vmem:[#allocation5 + $0xbcc] ss:$16 sps:$4 sm:$0xff]   ;;  %v5464_v2 = vld [vmem:[#allocation5 + $0x9c8] ss:$16 sps:$4 sm:$0xff]  }
 0x1ba   :  { %3649 = vmatpush2.bf16.msra.mxu0 %v5398_v3  ;;  %v5467_v3 = vld [vmem:[#allocation5 + $0xbc8] ss:$16 sps:$4 sm:$0xff]  }
 0x1bb   :  { %3690 = vmatpush2.bf16.msra.mxu1 %v5401_v8  ;;  %3650 = vmatprep.subr.bf16.mxu0 %v5406_v9  ;;  %v5472_v8 = vld [vmem:[#allocation5 + $0x9ac] ss:$16 sps:$4 sm:$0xff]  }
 0x1bc   :  { %3691 = vmatprep.subr.bf16.mxu1 %v5409_v4  ;;  %v5475_v9 = vld [vmem:[#allocation5 + $0xbac] ss:$16 sps:$4 sm:$0xff]   ;;  %v5470_v4 = vld [vmem:[#allocation5 + $0x9a8] ss:$16 sps:$4 sm:$0xff]  }
 0x1be   :  { %3651 = vmatpush2.bf16.msra.mxu0 %v5404_v7  ;;  %v5473_v7 = vld [vmem:[#allocation5 + $0xba8] ss:$16 sps:$4 sm:$0xff]  }
 0x1bf   :  { %3692 = vmatpush2.bf16.msra.mxu1 %v5407_v10  ;;  %3702 = vmatprep.subr.bf16.mxu0 %v5412_v11  ;;  %v5478_v10 = vld [vmem:[#allocation5 + $0x98c] ss:$16 sps:$4 sm:$0xff]  }
 0x1c0   :  { %3743 = vmatprep.subr.bf16.mxu1 %v5415_v33  ;;  %v5481_v11 = vld [vmem:[#allocation5 + $0xb8c] ss:$16 sps:$4 sm:$0xff]   ;;  %v5476_v33 = vld [vmem:[#allocation5 + $0x988] ss:$16 sps:$4 sm:$0xff]  }
 0x1c1   :  { %v3408_v14 = vpop.f32.mrf.mxu0  ;;  %3653 = vmatmul.mubr.bf16.vlgmr.msra.gmra.mxu0 %v5836_v20 }
 0x1c2   :  { %v3449_v15 = vpop.f32.mrf.mxu1  ;;  %3694 = vmatmul.mubr.bf16.vlgmr.msra.gmra.mxu1 %v5838_v21  ;;  %v3409_v16 = vadd.f32 %v3408_v14, %v5879_v0  ;;  %3703 = vmatpush1.bf16.msra.mxu0 %v5410_v12  ;;  %v5479_v12 = vld [vmem:[#allocation5 + $0xb88] ss:$16 sps:$4 sm:$0xff]  }
 0x1c3   :  { %3744 = vmatpush1.bf16.msra.mxu1 %v5413_v37  ;;  %v3410_v19 = vpop.f32.mrf.mxu0  ;;  %3704 = vmatprep.subr.bf16.mxu0 %v5418_v40  ;;  %v5484_v37 = vld [vmem:[#allocation5 + $0x96c] ss:$16 sps:$4 sm:$0xff]   ;;  %v5485_v14 = vld [vmem:[#allocation5 + $0xb68] ss:$16 sps:$4 sm:$0xff]  }
 0x1c4   :  { %v3451_v22 = vpop.f32.mrf.mxu1  ;;  %3745 = vmatprep.subr.bf16.mxu1 %v5421_v13  ;;  %v5889_v25 = vadd.f32 %v3449_v15, %v3409_v16  ;;  %v3411_v27 = vadd.f32 %v3410_v19, %v5884_v26  ;;  %3734 = vmatprep.mubr.bf16.mxu0 %v5842_v29  ;;  %v5428_v26 = vld [vmem:[#allocation5 + $0x888] ss:$16 sps:$4 sm:$0xff]   ;;  %v5487_v40 = vld [vmem:[#allocation5 + $0xb6c] ss:$16 sps:$4 sm:$0xff]  }
 0x1c5   :  { %3775 = vmatprep.mubr.bf16.mxu1 %v5844_v32  ;;  %v3412_v20 = vpop.f32.mrf.mxu0  ;;  %v5431_v29 = vld [vmem:[#allocation5 + $0xa88] ss:$16 sps:$4 sm:$0xff]   ;;  %v5436_v32 = vld [vmem:[#allocation5 + $0x86c] ss:$16 sps:$4 sm:$0xff]  }
 0x1c6   :  { %v3453_v21 = vpop.f32.mrf.mxu1  ;;  %v5894_v0 = vadd.f32 %v3451_v22, %v3411_v27  ;;  %3705 = vmatpush1.bf16.msra.mxu0 %v5416_v17  ;;  %v5482_v13 = vld [vmem:[#allocation5 + $0x968] ss:$16 sps:$4 sm:$0xff]   ;;  %v5490_v15 = vld [vmem:[#allocation5 + $0x94c] ss:$16 sps:$4 sm:$0xff]  }
 0x1c7   :  { %3746 = vmatpush1.bf16.msra.mxu1 %v5419_v18  ;;  %v3413_v31 = vpop.f32.mrf.mxu0  ;;  %3706 = vmatprep.subr.bf16.mxu0 %v5424_v23  ;;  %v5493_v16 = vld [vmem:[#allocation5 + $0xb4c] ss:$16 sps:$4 sm:$0xff]   ;;  %v5488_v17 = vld [vmem:[#allocation5 + $0x948] ss:$16 sps:$4 sm:$0xff]  }
 0x1c8   :  { %v3454_v34 = vpop.f32.mrf.mxu1  ;;  %3747 = vmatprep.subr.bf16.mxu1 %v5427_v24  ;;  %v5491_v18 = vld [vmem:[#allocation5 + $0xb48] ss:$16 sps:$4 sm:$0xff]   ;;  %v5496_v19 = vld [vmem:[#allocation5 + $0x92c] ss:$16 sps:$4 sm:$0xff]  }
 0x1c9   :  { %v5499_v22 = vld [vmem:[#allocation5 + $0xb2c] ss:$16 sps:$4 sm:$0xff]   ;;  %v5494_v23 = vld [vmem:[#allocation5 + $0x928] ss:$16 sps:$4 sm:$0xff]  }
 0x1ca   :  { %3707 = vmatpush1.bf16.msra.mxu0 %v5422_v28  ;;  %v5497_v24 = vld [vmem:[#allocation5 + $0xb28] ss:$16 sps:$4 sm:$0xff]   ;;  %v5502_v27 = vld [vmem:[#allocation5 + $0x90c] ss:$16 sps:$4 sm:$0xff]  }
 0x1cb   :  { %3748 = vmatpush1.bf16.msra.mxu1 %v5425_v30  ;;  %3708 = vmatprep.subr.bf16.mxu0 %v5430_v35  ;;  %v5505_v20 = vld [vmem:[#allocation5 + $0xb0c] ss:$16 sps:$4 sm:$0xff]   ;;  %v5500_v21 = vld [vmem:[#allocation5 + $0x908] ss:$16 sps:$4 sm:$0xff]  }
 0x1cc   :  { %3749 = vmatprep.subr.bf16.mxu1 %v5433_v36  ;;  %v5503_v28 = vld [vmem:[#allocation5 + $0xb08] ss:$16 sps:$4 sm:$0xff]   ;;  %v5508_v30 = vld [vmem:[#allocation5 + $0xcec] ss:$16 sps:$4 sm:$0xff]  }
 0x1cd   :  { %v5511_v31 = vld [vmem:[#allocation5 + $0xeec] ss:$16 sps:$4 sm:$0xff]   ;;  %v5506_v34 = vld [vmem:[#allocation5 + $0xce8] ss:$16 sps:$4 sm:$0xff]  }
 0x1ce   :  { %3709 = vmatpush1.bf16.msra.mxu0 %v5428_v26  ;;  %v5509_v35 = vld [vmem:[#allocation5 + $0xee8] ss:$16 sps:$4 sm:$0xff]   ;;  %v5514_v36 = vld [vmem:[#allocation5 + $0xccc] ss:$16 sps:$4 sm:$0xff]  }
 0x1cf   :  { %3750 = vmatpush1.bf16.msra.mxu1 %v5431_v29  ;;  %3710 = vmatprep.subr.bf16.mxu0 %v5436_v32  ;;  %v5517_v26 = vld [vmem:[#allocation5 + $0xecc] ss:$16 sps:$4 sm:$0xff]  }
 0x1d0   :  { %3751 = vmatprep.subr.bf16.mxu1 %v5439_v38 }
 0x1d2   :  { %3711 = vmatpush1.bf16.msra.mxu0 %v5434_v39  ;;  %v5512_v39 = vld [vmem:[#allocation5 + $0xcc8] ss:$16 sps:$4 sm:$0xff]  }
 0x1d3   :  { %3752 = vmatpush1.bf16.msra.mxu1 %v5437_v41  ;;  %3712 = vmatprep.subr.bf16.mxu0 %v5442_v49  ;;  %v5515_v41 = vld [vmem:[#allocation5 + $0xec8] ss:$16 sps:$4 sm:$0xff]  }
 0x1d4   :  { %3753 = vmatprep.subr.bf16.mxu1 %v5445_v52 }
 0x1d6   :  { %3713 = vmatpush1.bf16.msra.mxu0 %v5440_v44  ;;  %v5520_v44 = vld [vmem:[#allocation5 + $0xcac] ss:$16 sps:$4 sm:$0xff]  }
 0x1d7   :  { %3754 = vmatpush1.bf16.msra.mxu1 %v5443_v45  ;;  %3714 = vmatprep.subr.bf16.mxu0 %v5448_v46  ;;  %v5523_v45 = vld [vmem:[#allocation5 + $0xeac] ss:$16 sps:$4 sm:$0xff]  }
 0x1d8   :  { %3755 = vmatprep.subr.bf16.mxu1 %v5451_v47  ;;  %v5521_v47 = vld [vmem:[#allocation5 + $0xea8] ss:$16 sps:$4 sm:$0xff]  }
 0x1da   :  { %3715 = vmatpush1.bf16.msra.mxu0 %v5446_v51 }
 0x1db   :  { %3756 = vmatpush1.bf16.msra.mxu1 %v5449_v53  ;;  %3716 = vmatprep.subr.bf16.mxu0 %v5454_v54  ;;  %v5526_v54 = vld [vmem:[#allocation5 + $0xc8c] ss:$16 sps:$4 sm:$0xff]  }
 0x1dc   :  { %3757 = vmatprep.subr.bf16.mxu1 %v5457_v55  ;;  %v5529_v55 = vld [vmem:[#allocation5 + $0xe8c] ss:$16 sps:$4 sm:$0xff]  }
 0x1de   :  { %3717 = vmatpush1.bf16.msra.mxu0 %v5452_v56  ;;  %v5524_v56 = vld [vmem:[#allocation5 + $0xc88] ss:$16 sps:$4 sm:$0xff]  }
 0x1df   :  { %3758 = vmatpush1.bf16.msra.mxu1 %v5455_v58  ;;  %3718 = vmatprep.subr.bf16.mxu0 %v5460_v59  ;;  %v5527_v58 = vld [vmem:[#allocation5 + $0xe88] ss:$16 sps:$4 sm:$0xff]  }
 0x1e0   :  { %3759 = vmatprep.subr.bf16.mxu1 %v5463_v60  ;;  %v5530_v59 = vld [vmem:[#allocation5 + $0xc68] ss:$16 sps:$4 sm:$0xff]  }
 0x1e1   :  { %v5533_v60 = vld [vmem:[#allocation5 + $0xe68] ss:$16 sps:$4 sm:$0xff]  }
 0x1e2   :  { %3719 = vmatpush2.bf16.msra.mxu0 %v5458_v61  ;;  %v5538_v61 = vld [vmem:[#allocation5 + $0xc4c] ss:$16 sps:$4 sm:$0xff]  }
 0x1e3   :  { %3760 = vmatpush2.bf16.msra.mxu1 %v5461_v62  ;;  %3720 = vmatprep.subr.bf16.mxu0 %v5466_v63  ;;  %v5541_v62 = vld [vmem:[#allocation5 + $0xe4c] ss:$16 sps:$4 sm:$0xff]   ;;  %v5536_v63 = vld [vmem:[#allocation5 + $0xc48] ss:$16 sps:$4 sm:$0xff]  }
 0x1e4   :  { %3761 = vmatprep.subr.bf16.mxu1 %v5469_v1  ;;  %v5539_v1 = vld [vmem:[#allocation5 + $0xe48] ss:$16 sps:$4 sm:$0xff]  }
 0x1e6   :  { %3721 = vmatpush2.bf16.msra.mxu0 %v5464_v2  ;;  %v5544_v2 = vld [vmem:[#allocation5 + $0xc2c] ss:$16 sps:$4 sm:$0xff]  }
 0x1e7   :  { %3762 = vmatpush2.bf16.msra.mxu1 %v5467_v3  ;;  %3722 = vmatprep.subr.bf16.mxu0 %v5472_v8  ;;  %v5547_v3 = vld [vmem:[#allocation5 + $0xe2c] ss:$16 sps:$4 sm:$0xff]   ;;  %v5542_v8 = vld [vmem:[#allocation5 + $0xc28] ss:$16 sps:$4 sm:$0xff]  }
 0x1e8   :  { %3763 = vmatprep.subr.bf16.mxu1 %v5475_v9  ;;  %v5545_v9 = vld [vmem:[#allocation5 + $0xe28] ss:$16 sps:$4 sm:$0xff]  }
 0x1ea   :  { %3723 = vmatpush2.bf16.msra.mxu0 %v5470_v4  ;;  %v5550_v4 = vld [vmem:[#allocation5 + $0xc0c] ss:$16 sps:$4 sm:$0xff]  }
 0x1eb   :  { %3764 = vmatpush2.bf16.msra.mxu1 %v5473_v7  ;;  %3724 = vmatprep.subr.bf16.mxu0 %v5478_v10  ;;  %v5553_v7 = vld [vmem:[#allocation5 + $0xe0c] ss:$16 sps:$4 sm:$0xff]   ;;  %v5548_v10 = vld [vmem:[#allocation5 + $0xc08] ss:$16 sps:$4 sm:$0xff]  }
 0x1ec   :  { %3765 = vmatprep.subr.bf16.mxu1 %v5481_v11  ;;  %v5551_v11 = vld [vmem:[#allocation5 + $0xe08] ss:$16 sps:$4 sm:$0xff]  }
 0x1ee   :  { %3725 = vmatpush2.bf16.msra.mxu0 %v5476_v33  ;;  %v5556_v33 = vld [vmem:[#allocation5 + $0xdec] ss:$16 sps:$4 sm:$0xff]  }
 0x1ef   :  { %3766 = vmatpush2.bf16.msra.mxu1 %v5479_v12  ;;  %3726 = vmatprep.subr.bf16.mxu0 %v5484_v37  ;;  %v5559_v12 = vld [vmem:[#allocation5 + $0xfec] ss:$16 sps:$4 sm:$0xff]   ;;  %v5554_v37 = vld [vmem:[#allocation5 + $0xde8] ss:$16 sps:$4 sm:$0xff]  }
 0x1f0   :  { %3767 = vmatprep.subr.bf16.mxu1 %v5487_v40  ;;  %v5557_v40 = vld [vmem:[#allocation5 + $0xfe8] ss:$16 sps:$4 sm:$0xff]  }
 0x1f2   :  { %3727 = vmatpush2.bf16.msra.mxu0 %v5482_v13  ;;  %v5562_v13 = vld [vmem:[#allocation5 + $0xdcc] ss:$16 sps:$4 sm:$0xff]  }
 0x1f3   :  { %3768 = vmatpush2.bf16.msra.mxu1 %v5485_v14  ;;  %3728 = vmatprep.subr.bf16.mxu0 %v5490_v15  ;;  %v5565_v14 = vld [vmem:[#allocation5 + $0xfcc] ss:$16 sps:$4 sm:$0xff]   ;;  %v5560_v15 = vld [vmem:[#allocation5 + $0xdc8] ss:$16 sps:$4 sm:$0xff]  }
 0x1f4   :  { %3769 = vmatprep.subr.bf16.mxu1 %v5493_v16  ;;  %v5563_v16 = vld [vmem:[#allocation5 + $0xfc8] ss:$16 sps:$4 sm:$0xff]  }
 0x1f6   :  { %3729 = vmatpush2.bf16.msra.mxu0 %v5488_v17  ;;  %v5568_v17 = vld [vmem:[#allocation5 + $0xdac] ss:$16 sps:$4 sm:$0xff]  }
 0x1f7   :  { %3770 = vmatpush2.bf16.msra.mxu1 %v5491_v18  ;;  %3730 = vmatprep.subr.bf16.mxu0 %v5496_v19  ;;  %v5571_v18 = vld [vmem:[#allocation5 + $0xfac] ss:$16 sps:$4 sm:$0xff]   ;;  %v5566_v19 = vld [vmem:[#allocation5 + $0xda8] ss:$16 sps:$4 sm:$0xff]  }
 0x1f8   :  { %3771 = vmatprep.subr.bf16.mxu1 %v5499_v22  ;;  %v5569_v22 = vld [vmem:[#allocation5 + $0xfa8] ss:$16 sps:$4 sm:$0xff]  }
 0x1fa   :  { %3731 = vmatpush2.bf16.msra.mxu0 %v5494_v23  ;;  %v5574_v23 = vld [vmem:[#allocation5 + $0xd8c] ss:$16 sps:$4 sm:$0xff]  }
 0x1fb   :  { %3772 = vmatpush2.bf16.msra.mxu1 %v5497_v24  ;;  %3732 = vmatprep.subr.bf16.mxu0 %v5502_v27  ;;  %v5577_v24 = vld [vmem:[#allocation5 + $0xf8c] ss:$16 sps:$4 sm:$0xff]   ;;  %v5572_v27 = vld [vmem:[#allocation5 + $0xd88] ss:$16 sps:$4 sm:$0xff]  }
 0x1fc   :  { %3773 = vmatprep.subr.bf16.mxu1 %v5505_v20  ;;  %v5575_v20 = vld [vmem:[#allocation5 + $0xf88] ss:$16 sps:$4 sm:$0xff]  }
 0x1fe   :  { %3733 = vmatpush2.bf16.msra.mxu0 %v5500_v21  ;;  %v5580_v21 = vld [vmem:[#allocation5 + $0xd6c] ss:$16 sps:$4 sm:$0xff]  }
 0x1ff   :  { %3774 = vmatpush2.bf16.msra.mxu1 %v5503_v28  ;;  %3784 = vmatprep.subr.bf16.mxu0 %v5508_v30  ;;  %v5583_v28 = vld [vmem:[#allocation5 + $0xf6c] ss:$16 sps:$4 sm:$0xff]   ;;  %v5578_v30 = vld [vmem:[#allocation5 + $0xd68] ss:$16 sps:$4 sm:$0xff]  }
 0x200   :  { %3825 = vmatprep.subr.bf16.mxu1 %v5511_v31  ;;  %v5581_v31 = vld [vmem:[#allocation5 + $0xf68] ss:$16 sps:$4 sm:$0xff]  }
 0x201   :  { %v3490_v29 = vpop.f32.mrf.mxu0  ;;  %3735 = vmatmul.mubr.bf16.vlgmr.msra.gmra.mxu0 %v5848_v42 }
 0x202   :  { %v3531_v32 = vpop.f32.mrf.mxu1  ;;  %3776 = vmatmul.mubr.bf16.vlgmr.msra.gmra.mxu1 %v5850_v43  ;;  %v3491_v38 = vadd.f32 %v3490_v29, %v5889_v25  ;;  %3785 = vmatpush1.bf16.msra.mxu0 %v5506_v34  ;;  %v5518_v25 = vld [vmem:[#allocation5 + $0xca8] ss:$16 sps:$4 sm:$0xff]   ;;  %v5586_v34 = vld [vmem:[#allocation5 + $0xd4c] ss:$16 sps:$4 sm:$0xff]  }
 0x203   :  { %3826 = vmatpush1.bf16.msra.mxu1 %v5509_v35  ;;  %v5899_v49 = vpop.f32.mrf.mxu0  ;;  %3786 = vmatprep.subr.bf16.mxu0 %v5514_v36  ;;  %v5589_v35 = vld [vmem:[#allocation5 + $0xf4c] ss:$16 sps:$4 sm:$0xff]   ;;  %v5584_v36 = vld [vmem:[#allocation5 + $0xd48] ss:$16 sps:$4 sm:$0xff]  }
 0x204   :  { %v5901_v52 = vpop.f32.mrf.mxu1  ;;  %3827 = vmatprep.subr.bf16.mxu1 %v5517_v26  ;;  %v5903_v46 = vadd.f32 %v3531_v32, %v3491_v38  ;;  %3816 = vmatprep.mubr.bf16.mxu0 %v5852_v48  ;;  %v5532_v48 = vld [vmem:[#allocation5 + $0xc6c] ss:$16 sps:$4 sm:$0xff]   ;;  %v5587_v26 = vld [vmem:[#allocation5 + $0xf48] ss:$16 sps:$4 sm:$0xff]   ;;  %v3493_v38 = vadd.f32 %v5899_v49, %v5894_v0  ;;  %v644_v49 = vsub.s32 3, %v5860_v57 }
 0x205   :  { %3857 = vmatprep.mubr.bf16.mxu1 %v5854_v50  ;;  %v3494_v42 = vpop.f32.mrf.mxu0  ;;  %v5535_v50 = vld [vmem:[#allocation5 + $0xe6c] ss:$16 sps:$4 sm:$0xff]  }
 0x206   :  { %v3535_v43 = vpop.f32.mrf.mxu1  ;;  %3787 = vmatpush1.bf16.msra.mxu0 %v5512_v39  ;;  %v5592_v29 = vld [vmem:[#allocation5 + $0xd2c] ss:$16 sps:$4 sm:$0xff]   ;;  %v5590_v39 = vld [vmem:[#allocation5 + $0xd28] ss:$16 sps:$4 sm:$0xff]   ;;  %v3534_v42 = vadd.f32 %v5901_v52, %v3493_v38 }
 0x207   :  { %3828 = vmatpush1.bf16.msra.mxu1 %v5515_v41  ;;  %v3495_v51 = vpop.f32.mrf.mxu0  ;;  %3788 = vmatprep.subr.bf16.mxu0 %v5520_v44  ;;  %v5595_v32 = vld [vmem:[#allocation5 + $0xf2c] ss:$16 sps:$4 sm:$0xff]   ;;  %v5593_v41 = vld [vmem:[#allocation5 + $0xf28] ss:$16 sps:$4 sm:$0xff]  }
 0x208   :  { %v3536_v53 = vpop.f32.mrf.mxu1  ;;  %3829 = vmatprep.subr.bf16.mxu1 %v5523_v45  ;;  %v5598_v44 = vld [vmem:[#allocation5 + $0xd0c] ss:$16 sps:$4 sm:$0xff]   ;;  %v5596_v43 = vld [vmem:[#allocation5 + $0xd08] ss:$16 sps:$4 sm:$0xff]   ;;  %v3867_v0 = vmax.f32 %v3534_v42, 0.0 }
 0x209   :  { %v5601_v45 = vld [vmem:[#allocation5 + $0xf0c] ss:$16 sps:$4 sm:$0xff]   ;;  %v5634_v53 = vld [vmem:[#allocation7] sm:$0xf] }
 0x20a   :  { %3789 = vmatpush1.bf16.msra.mxu0 %v5518_v25  ;;  %v5599_v25 = vld [vmem:[#allocation5 + $0xf08] ss:$16 sps:$4 sm:$0xff]   ;;  %v5602_v51 = vld [vmem:[#allocation8 + $0x78] sm:$0xff]   ;;  %v3871_v52 = vpack.c.bf16 %v3867_v0, %v3867_v0 }
 0x20b   :  { %3830 = vmatpush1.bf16.msra.mxu1 %v5521_v47  ;;  %3790 = vmatprep.subr.bf16.mxu0 %v5526_v54  ;;  %v640_v47 = vsub.s32 2, %v5860_v57 }
 0x20c   :  { %3831 = vmatprep.subr.bf16.mxu1 %v5529_v55  ;;  %v5603_v55 = vld [vmem:[#allocation8 + $0x38] sm:$0xff]  }
 0x20d   :  { %v641_v54 = vrot.slane %v5634_v53, %v640_v47  ;;  %v5633_v47 = vld [vmem:[#allocation8 + $0x80] sm:$0xff]  }
 0x20e   :  { %3791 = vmatpush1.bf16.msra.mxu0 %v5524_v56  ;;  %v5604_v56 = vld [vmem:[#allocation8 + $0x70] sm:$0xff]  }
 0x20f   :  { %3832 = vmatpush1.bf16.msra.mxu1 %v5527_v58  ;;  %3792 = vmatprep.subr.bf16.mxu0 %v5532_v48  ;;  %v645_v58 = vrot.slane %v5634_v53, %v644_v49 }
 0x210   :  { %3833 = vmatprep.subr.bf16.mxu1 %v5535_v50 }
 0x212   :  { %3793 = vmatpush1.bf16.msra.mxu0 %v5530_v59 }
 0x213   :  { %3834 = vmatpush1.bf16.msra.mxu1 %v5533_v60  ;;  %3794 = vmatprep.subr.bf16.mxu0 %v5538_v61  ;;  %v5605_v60 = vld [vmem:[#allocation8 + $0x30] sm:$0xff]  }
 0x214   :  { %3835 = vmatprep.subr.bf16.mxu1 %v5541_v62  ;;  %v5606_v62 = vld [vmem:[#allocation8 + $0x68] sm:$0xff]  }
 0x216   :  { %3795 = vmatpush1.bf16.msra.mxu0 %v5536_v63 }
 0x217   :  { %3836 = vmatpush1.bf16.msra.mxu1 %v5539_v1  ;;  %3796 = vmatprep.subr.bf16.mxu0 %v5544_v2 }
 0x218   :  { %3837 = vmatprep.subr.bf16.mxu1 %v5547_v3 }
 0x21a   :  { %3797 = vmatpush1.bf16.msra.mxu0 %v5542_v8 }
 0x21b   :  { %3838 = vmatpush1.bf16.msra.mxu1 %v5545_v9  ;;  %3798 = vmatprep.subr.bf16.mxu0 %v5550_v4  ;;  %v5607_v9 = vld [vmem:[#allocation8 + $0x28] sm:$0xff]   ;;  %v5608_v4 = vld [vmem:[#allocation8 + $0x60] sm:$0xff]  }
 0x21c   :  { %3839 = vmatprep.subr.bf16.mxu1 %v5553_v7 }
 0x21e   :  { %3799 = vmatpush1.bf16.msra.mxu0 %v5548_v10  ;;  %v5619_v10 = vld [vmem:[#allocation8 + $0xb8] sm:$0xff]  }
 0x21f   :  { %3840 = vmatpush1.bf16.msra.mxu1 %v5551_v11  ;;  %3800 = vmatprep.subr.bf16.mxu0 %v5556_v33  ;;  %v5620_v11 = vld [vmem:[#allocation8 + $0xf0] sm:$0xff]   ;;  %v5609_v33 = vld [vmem:[#allocation8 + $0x20] sm:$0xff]  }
 0x220   :  { %3841 = vmatprep.subr.bf16.mxu1 %v5559_v12  ;;  %v5621_v12 = vld [vmem:[#allocation8 + $0xb0] sm:$0xff]  }
 0x222   :  { %3801 = vmatpush2.bf16.msra.mxu0 %v5554_v37  ;;  %v5610_v37 = vld [vmem:[#allocation8 + $0x58] sm:$0xff]  }
 0x223   :  { %3842 = vmatpush2.bf16.msra.mxu1 %v5557_v40  ;;  %3802 = vmatprep.subr.bf16.mxu0 %v5562_v13  ;;  %v5622_v40 = vld [vmem:[#allocation8 + $0xe8] sm:$0xff]   ;;  %v5611_v13 = vld [vmem:[#allocation8 + $0x18] sm:$0xff]  }
 0x224   :  { %3843 = vmatprep.subr.bf16.mxu1 %v5565_v14  ;;  %v5623_v14 = vld [vmem:[#allocation8 + $0xa8] sm:$0xff]  }
 0x226   :  { %3803 = vmatpush2.bf16.msra.mxu0 %v5560_v15  ;;  %v5612_v15 = vld [vmem:[#allocation8 + $0x50] sm:$0xff]  }
 0x227   :  { %3844 = vmatpush2.bf16.msra.mxu1 %v5563_v16  ;;  %3804 = vmatprep.subr.bf16.mxu0 %v5568_v17  ;;  %v5624_v16 = vld [vmem:[#allocation8 + $0xe0] sm:$0xff]   ;;  %v5613_v17 = vld [vmem:[#allocation8 + $0x10] sm:$0xff]  }
 0x228   :  { %3845 = vmatprep.subr.bf16.mxu1 %v5571_v18  ;;  %v5625_v18 = vld [vmem:[#allocation8 + $0xa0] sm:$0xff]  }
 0x22a   :  { %3805 = vmatpush2.bf16.msra.mxu0 %v5566_v19  ;;  %v5614_v19 = vld [vmem:[#allocation8 + $0x48] sm:$0xff]  }
 0x22b   :  { %3846 = vmatpush2.bf16.msra.mxu1 %v5569_v22  ;;  %3806 = vmatprep.subr.bf16.mxu0 %v5574_v23  ;;  %v5626_v22 = vld [vmem:[#allocation8 + $0xd8] sm:$0xff]   ;;  %v5615_v23 = vld [vmem:[#allocation8 + $0x8] sm:$0xff]  }
 0x22c   :  { %3847 = vmatprep.subr.bf16.mxu1 %v5577_v24  ;;  %v5627_v24 = vld [vmem:[#allocation8 + $0x98] sm:$0xff]  }
 0x22e   :  { %3807 = vmatpush2.bf16.msra.mxu0 %v5572_v27  ;;  %v5616_v27 = vld [vmem:[#allocation8 + $0x40] sm:$0xff]  }
 0x22f   :  { %3848 = vmatpush2.bf16.msra.mxu1 %v5575_v20  ;;  %3808 = vmatprep.subr.bf16.mxu0 %v5580_v21  ;;  %v5617_v20 = vld [vmem:[#allocation8] sm:$0xff]   ;;  %v3866_v21 = vmax.f32 %v5903_v46, 0.0 }
 0x230   :  { %3849 = vmatprep.subr.bf16.mxu1 %v5583_v28 }
 0x231   :  { %v3870_v28 = vpack.c.bf16 %v3866_v21, %v3866_v21 }
 0x232   :  { %3809 = vmatpush2.bf16.msra.mxu0 %v5578_v30  ;;  %v5628_v30 = vld [vmem:[#allocation8 + $0xd0] sm:$0xff]  }
 0x233   :  { %3850 = vmatpush2.bf16.msra.mxu1 %v5581_v31  ;;  %3810 = vmatprep.subr.bf16.mxu0 %v5586_v34  ;;  %v5629_v31 = vld [vmem:[#allocation8 + $0x90] sm:$0xff]  }
 0x234   :  { %3851 = vmatprep.subr.bf16.mxu1 %v5589_v35 }
 0x236   :  { %3811 = vmatpush2.bf16.msra.mxu0 %v5584_v36 }
 0x237   :  { %3852 = vmatpush2.bf16.msra.mxu1 %v5587_v26  ;;  %3812 = vmatprep.subr.bf16.mxu0 %v5592_v29 }
 0x238   :  { %3853 = vmatprep.subr.bf16.mxu1 %v5595_v32  ;;  %v5630_v32 = vld [vmem:[#allocation8 + $0xc8] sm:$0xff]  }
 0x23a   :  { %3813 = vmatpush2.bf16.msra.mxu0 %v5590_v39 }
 0x23b   :  { %3854 = vmatpush2.bf16.msra.mxu1 %v5593_v41  ;;  %3814 = vmatprep.subr.bf16.mxu0 %v5598_v44  ;;  %v5631_v41 = vld [vmem:[#allocation8 + $0x88] sm:$0xff]  }
 0x23c   :  { %3855 = vmatprep.subr.bf16.mxu1 %v5601_v45 }
 0x23e   :  { %3815 = vmatpush2.bf16.msra.mxu0 %v5596_v43 }
 0x23f   :  { %3856 = vmatpush2.bf16.msra.mxu1 %v5599_v25  ;;  %4780 = vmatprep.subr.bf16.mxu0 %v5602_v51  ;;  %v5632_v25 = vld [vmem:[#allocation8 + $0xc0] sm:$0xff]  }
 0x241   :  { %v3572_v48 = vpop.f32.mrf.mxu0  ;;  %3817 = vmatmul.mubr.bf16.vlgmr.msra.gmra.mxu0 %v5864_v5 }
 0x242   :  { %v3613_v50 = vpop.f32.mrf.mxu1  ;;  %3858 = vmatmul.mubr.bf16.vlgmr.msra.gmra.mxu1 %v5866_v6  ;;  %v3573_v59 = vadd.f32 %v3572_v48, %v641_v54  ;;  %4781 = vmatpush3.bf16.msra.mxu0 %v5603_v55  ;;  %v5618_v6 = vld [vmem:[#allocation8 + $0xf8] sm:$0xff]  }
 0x243   :  { %4169 = vmatprep.mubr.bf16.mxu0 %v3871_v52  ;;  %v3574_v57 = vpop.f32.mrf.mxu0  ;;  %4782 = vmatprep.subr.bf16.mxu0 %v5604_v56 }
 0x244   :  { %v3615_v61 = vpop.f32.mrf.mxu1  ;;  %v3614_v63 = vadd.f32 %v3613_v50, %v3573_v59  ;;  %v3575_v1 = vadd.f32 %v3574_v57, %v645_v58  ;;  %4802 = vmatprep.subr.bf16.mxu1 %v5618_v6 }
 0x245   :  { %v3576_v2 = vpop.f32.mrf.mxu0  ;;  %4803 = vmatpush3.bf16.msra.mxu1 %v5619_v10 }
 0x246   :  { %v3617_v3 = vpop.f32.mrf.mxu1  ;;  %v3616_v8 = vadd.f32 %v3615_v61, %v3575_v1  ;;  %4783 = vmatpush3.bf16.msra.mxu0 %v5605_v60  ;;  %4804 = vmatprep.subr.bf16.mxu1 %v5620_v11 }
 0x247   :  { %v3577_v7 = vpop.f32.mrf.mxu0  ;;  %4784 = vmatprep.subr.bf16.mxu0 %v5606_v62 }
 0x248   :  { %v3618_v5 = vpop.f32.mrf.mxu1 }
 0x249   :  { %4805 = vmatpush3.bf16.msra.mxu1 %v5621_v12 }
 0x24a   :  { %4785 = vmatpush3.bf16.msra.mxu0 %v5607_v9  ;;  %4806 = vmatprep.subr.bf16.mxu1 %v5622_v40 }
 0x24b   :  { %4786 = vmatprep.subr.bf16.mxu0 %v5608_v4 }
 0x24d   :  { %4807 = vmatpush3.bf16.msra.mxu1 %v5623_v14  ;;  %v4747_v14 = vld [vmem:[#allocation10] ss:$0 sm:$0xff] }
 0x24e   :  { %4787 = vmatpush3.bf16.msra.mxu0 %v5609_v33  ;;  %4808 = vmatprep.subr.bf16.mxu1 %v5624_v16 }
 0x24f   :  { %4788 = vmatprep.subr.bf16.mxu0 %v5610_v37 }
 0x251   :  { %4809 = vmatpush3.bf16.msra.mxu1 %v5625_v18 }
 0x252   :  { %4789 = vmatpush3.bf16.msra.mxu0 %v5611_v13  ;;  %4810 = vmatprep.subr.bf16.mxu1 %v5626_v22 }
 0x253   :  { %4790 = vmatprep.subr.bf16.mxu0 %v5612_v15 }
 0x255   :  { %4811 = vmatpush3.bf16.msra.mxu1 %v5627_v24 }
 0x256   :  { %4791 = vmatpush3.bf16.msra.mxu0 %v5613_v17  ;;  %4812 = vmatprep.subr.bf16.mxu1 %v5628_v30 }
 0x257   :  { %4792 = vmatprep.subr.bf16.mxu0 %v5614_v19 }
 0x259   :  { %4813 = vmatpush3.bf16.msra.mxu1 %v5629_v31 }
 0x25a   :  { %4793 = vmatpush3.bf16.msra.mxu0 %v5615_v23  ;;  %4814 = vmatprep.subr.bf16.mxu1 %v5630_v32 }
 0x25b   :  { %4794 = vmatprep.subr.bf16.mxu0 %v5616_v27 }
 0x25d   :  { %4815 = vmatpush3.bf16.msra.mxu1 %v5631_v41 }
 0x25e   :  { %4795 = vmatpush3.bf16.msra.mxu0 %v5617_v20  ;;  %4816 = vmatprep.subr.bf16.mxu1 %v5632_v25 }
 0x261   :  { %4170 = vmatmul.mubr.bf16.vlgmr.msra.gmra.mxu0 %v3870_v28  ;;  %4817 = vmatpush3.bf16.msra.mxu1 %v5633_v47 }
 0x281   :  { %v3654_v34 = vpop.f32.mrf.mxu0 }
 0x282   :  { %v3695_v35 = vpop.f32.mrf.mxu1  ;;  %v3655_v36 = vadd.f32 %v3654_v34, %v3614_v63 }
 0x283   :  { %v3656_v26 = vpop.f32.mrf.mxu0 }
 0x284   :  { %v3697_v29 = vpop.f32.mrf.mxu1  ;;  %v3696_v38 = vadd.f32 %v3695_v35, %v3655_v36  ;;  %v3657_v39 = vadd.f32 %v3656_v26, %v3616_v8 }
 0x285   :  { %v3658_v44 = vpop.f32.mrf.mxu0 }
 0x286   :  { %v3699_v45 = vpop.f32.mrf.mxu1  ;;  %v3698_v46 = vadd.f32 %v3697_v29, %v3657_v39 }
 0x287   :  { %v3659_v42 = vpop.f32.mrf.mxu0 }
 0x288   :  { %v3700_v43 = vpop.f32.mrf.mxu1 }
 0x2c1   :  { %v3736_v51 = vpop.f32.mrf.mxu0 }
 0x2c2   :  { %v3777_v0 = vpop.f32.mrf.mxu1  ;;  %v3737_v49 = vadd.f32 %v3736_v51, %v3696_v38 }
 0x2c3   :  { %v3738_v53 = vpop.f32.mrf.mxu0 }
 0x2c4   :  { %v3779_v54 = vpop.f32.mrf.mxu1  ;;  %v3778_v55 = vadd.f32 %v3777_v0, %v3737_v49  ;;  %v3739_v50 = vadd.f32 %v3738_v53, %v3698_v46 }
 0x2c5   :  { %v3740_v56 = vpop.f32.mrf.mxu0 }
 0x2c6   :  { %v3781_v52 = vpop.f32.mrf.mxu1  ;;  %v3780_v57 = vadd.f32 %v3779_v54, %v3739_v50 }
 0x2c7   :  { %v3741_v58 = vpop.f32.mrf.mxu0 }
 0x2c8   :  { %v3782_v48 = vpop.f32.mrf.mxu1 }
 0x301   :  { %v3818_v59 = vpop.f32.mrf.mxu0 }
 0x302   :  { %v3859_v60 = vpop.f32.mrf.mxu1  ;;  %v3819_v61 = vadd.f32 %v3818_v59, %v3778_v55 }
 0x303   :  { %v3820_v62 = vpop.f32.mrf.mxu0 }
 0x304   :  { %v3861_v63 = vpop.f32.mrf.mxu1  ;;  %v3860_v1 = vadd.f32 %v3859_v60, %v3819_v61  ;;  %v3821_v2 = vadd.f32 %v3820_v62, %v3780_v57 }
 0x305   :  { %v3822_v3 = vpop.f32.mrf.mxu0 }
 0x306   :  { %v3863_v8 = vpop.f32.mrf.mxu1  ;;  %v3862_v9 = vadd.f32 %v3861_v63, %v3821_v2  ;;  %v3868_v4 = vmax.f32 %v3860_v1, 0.0 }
 0x307   :  { %v3823_v7 = vpop.f32.mrf.mxu0 }
 0x308   :  { %v3864_v5 = vpop.f32.mrf.mxu1  ;;  %v3869_v6 = vmax.f32 %v3862_v9, 0.0  ;;  %v3872_v11 = vpack.c.bf16 %v3868_v4, %v3868_v4 }
 0x30a   :  { %v3873_v10 = vpack.c.bf16 %v3869_v6, %v3869_v6 }
 0x30c   :  { %4209 = vmatprep.mubr.bf16.mxu1 %v3873_v10 }
 0x30d   :  { %4210 = vmatmul.mubr.bf16.vlgmr.msra.gmra.mxu1 %v3872_v11 }
 0x321   :  { %v4796_v33 = vpop.f32.mrf.mxu0 }
 0x323   :  { %v4797_v12 = vpop.f32.mrf.mxu0 }
 0x324   :  { %v4798_v37 = vadd.f32 %v4797_v12, %v4796_v33 }
 0x325   :  { %v4799_v40 = vpop.f32.mrf.mxu0 }
 0x326   :  { %v4172_v17 = vadd.f32 %v4798_v37, %v4747_v14 }
 0x327   :  { %v4800_v13 = vpop.f32.mrf.mxu0 }
 0x3cd   :  { %v4818_v15 = vpop.f32.mrf.mxu1 }
 0x3cf   :  { %v4819_v16 = vpop.f32.mrf.mxu1 }
 0x3d0   :  { %v4820_v18 = vadd.f32 %v4819_v16, %v4818_v15 }
 0x3d1   :  { %v4821_v19 = vpop.f32.mrf.mxu1 }
 0x3d2   :  { %v4212_v22 = vadd.f32 %v4820_v18, %v4172_v17 }
 0x3d3   :  { %v4822_v23 = vpop.f32.mrf.mxu1 }
 0x3d4   :  { %4217 = vst [vmem:[#allocation11] sm:$0xff] %v4212_v22 }
 0x3d5   :  { %5746 = shalt.err (!%p5743_p1)
}
 0x3d6   :  { %4227 = dma.vmem_to_hbm [thread:$0]  %s4225_s4, 128, %s5923_s5, [#allocation4]  }
 0x3d7   :  { %5761 = dma.done.wait [#allocation4], 128  }
 0x3d8   :  { %5762 = vsyncadd [#allocation4], 4294967168 }
 0x3d9   :  { %4231 = vsyncpa [#allocation3], 1 }
 0x3da   :  { %4232 = vsyncpa [#allocation6], 1 }
 0x3db   :  { %4233 = vsyncpa [#allocation9], 1 }
 0x3dc   :  { %4234 = vsyncpa [#allocation4], 1 }

// kernel: tpu_custom_call.1
= control target key start
LH: loop header
LB: loop body
LE: loop exit
PB: predicated region body
PF: predicated region fallthrough
CT: control target
= control target key end

     0   :  { %10 = vsyncpa [#allocation3], 0  ;;  %s5918_s0 = inlined_call_operand.hbm [shape: f32[8,2048], index: 0, kind: input, shape index: {}]   ;;  %s5919_s1 = inlined_call_operand.hbm [shape: bf16[2048,512], index: 1, kind: input, shape index: {}]   ;;  %s5920_s2 = inlined_call_operand.hbm [shape: f32[1,512], index: 2, kind: input, shape index: {}]   ;;  %s5921_s3 = inlined_call_operand.hbm [shape: bf16[512,128], index: 3, kind: input, shape index: {}]   ;;  %s5922_s4 = inlined_call_operand.hbm [shape: f32[1,128], index: 4, kind: input, shape index: {}]   ;;  %s5923_s5 = inlined_call_operand.hbm [shape: f32[8,128], index: 5, kind: output, shape index: {}]  }
   0x1   :  { %11 = vsyncpa [#allocation6], 0 }
   0x2   :  { %12 = vsyncpa [#allocation9], 0 }
   0x3   :  { %13 = vsyncpa [#allocation4], 0  ;;  %s5763_s18 = smov [#allocation5]  }
   0x4   :  { %s29_s19 = sshll.u32 %s5763_s18, 4  ;;  %s30_s19 = int_to_ptr.vmem [resolvable:$true] %s29_s19 }
   0x5   :  { %s5643_s20 = scalar_lea.vmem %s30_s19, 65536  ;;  %p5648_p1 = scmp.lt.s32.totalorder %s30_s19, %s30_s19 }
   0x6   :  { %p5644_p0 = scmp.ne.s32.totalorder %s30_s19, %s5643_s20  ;;  %p5649_p2 = scmp.lt.s32.totalorder %s5643_s20, %s5643_s20 }
   0x8   :  { %p5650_p3 = por %p5649_p2, %p5648_p1 }
   0xa   :  { %p5651_p4 = pnand %p5650_p3, %p5644_p0 }
   0xc   :  { %5654 = shalt.err (!%p5651_p4)
}
   0xd   :  { %s5764_s21 = smov 256   ;;  %s5765_s22 = smov 16  }
   0xe   :  { %35 = dma.hbm_to_vmem [thread:$0]  %s5919_s1, 65536, %s30_s19, [#allocation6], %s5764_s21, %s5764_s21, %s5765_s22  }
   0xf   :  { %s5766_s25 = smov [#allocation8]  }
  0x10   :  { %s51_s26 = sshll.u32 %s5766_s25, 4  ;;  %s52_s26 = int_to_ptr.vmem [resolvable:$true] %s51_s26 }
  0x11   :  { %s5663_s27 = scalar_lea.vmem %s52_s26, 4096  ;;  %p5668_p6 = scmp.lt.s32.totalorder %s52_s26, %s52_s26 }
  0x12   :  { %p5664_p5 = scmp.ne.s32.totalorder %s52_s26, %s5663_s27  ;;  %p5669_p7 = scmp.lt.s32.totalorder %s5663_s27, %s5663_s27 }
  0x14   :  { %p5670_p8 = por %p5669_p7, %p5668_p6 }
  0x16   :  { %p5671_p9 = pnand %p5670_p8, %p5664_p5 }
  0x18   :  { %5674 = shalt.err (!%p5671_p9)
}
  0x19   :  { %s5767_s28 = smov 64   ;;  %s5768_s29 = smov 4  }
  0x1a   :  { %57 = dma.hbm_to_vmem [thread:$0]  %s5921_s3, 4096, %s52_s26, [#allocation9], %s5767_s28, %s5767_s28, %s5768_s29  }
  0x1b   :  { %s5769_s7 = smov [#allocation2]   ;;  %s5770_s9 = smov [#allocation7]  }
  0x1c   :  { %s20_s8 = sshll.u32 %s5769_s7, 4  ;;  %s42_s1 = sshll.u32 %s5770_s9, 4  ;;  %s21_s8 = int_to_ptr.vmem [resolvable:$true] %s20_s8  ;;  %s43_s1 = int_to_ptr.vmem [resolvable:$true] %s42_s1 }
  0x1d   :  { %s5683_s10 = scalar_lea.vmem %s21_s8, 2048  ;;  %p5688_p11 = scmp.lt.s32.totalorder %s21_s8, %s21_s8 }
  0x1e   :  { %p5684_p10 = scmp.ne.s32.totalorder %s21_s8, %s5683_s10  ;;  %p5689_p12 = scmp.lt.s32.totalorder %s5683_s10, %s5683_s10 }
  0x20   :  { %p5690_p13 = por %p5689_p12, %p5688_p11 }
  0x22   :  { %p5691_p0 = pnand %p5690_p13, %p5684_p10 }
  0x24   :  { %5694 = shalt.err (!%p5691_p0)
}
  0x25   :  { %23 = dma.hbm_to_vmem [thread:$0]  %s5918_s0, 2048, %s21_s8, [#allocation3]  }
  0x26   :  { %s5703_s13 = scalar_lea.vmem %s43_s1, 64  ;;  %p5708_p2 = scmp.lt.s32.totalorder %s43_s1, %s43_s1 }
  0x27   :  { %p5704_p1 = scmp.ne.s32.totalorder %s43_s1, %s5703_s13  ;;  %p5709_p3 = scmp.lt.s32.totalorder %s5703_s13, %s5703_s13 }
  0x29   :  { %p5710_p4 = por %p5709_p3, %p5708_p2 }
  0x2b   :  { %p5711_p5 = pnand %p5710_p4, %p5704_p1 }
  0x2d   :  { %5714 = shalt.err (!%p5711_p5)
}
  0x2e   :  { %45 = dma.hbm_to_vmem [thread:$0]  %s5920_s2, 64, %s43_s1, [#allocation6]  }
  0x2f   :  { %s5771_s15 = smov [#allocation10]  }
  0x30   :  { %s64_s16 = sshll.u32 %s5771_s15, 4  ;;  %s65_s16 = int_to_ptr.vmem [resolvable:$true] %s64_s16 }
  0x31   :  { %s5723_s17 = scalar_lea.vmem %s65_s16, 16  ;;  %s5727_s18 = scalar_lea.vmem %s65_s16, 32 }
  0x32   :  { %p5724_p6 = scmp.ne.s32.totalorder %s65_s16, %s5723_s17  ;;  %p5728_p7 = scmp.lt.s32.totalorder %s65_s16, %s65_s16 }
  0x33   :  { %p5729_p8 = scmp.lt.s32.totalorder %s5727_s18, %s5723_s17 }
  0x35   :  { %p5730_p9 = por %p5729_p8, %p5728_p7 }
  0x37   :  { %p5731_p10 = pnand %p5730_p9, %p5724_p6 }
  0x39   :  { %5734 = shalt.err (!%p5731_p10)
}
  0x3a   :  { %67 = dma.hbm_to_vmem [thread:$0]  %s5922_s4, 16, %s65_s16, [#allocation9]  }
  0x3b   :  { %5755 = dma.done.wait [#allocation3], 2048  }
  0x3c   :  { %5756 = vsyncadd [#allocation3], 4294965248 }
  0x3d   :  { %5757 = dma.done.wait [#allocation6], 65600  }
  0x3e   :  { %5758 = vsyncadd [#allocation6], 4294901696 }
  0x3f   :  { %5759 = dma.done.wait [#allocation9], 4112  }
  0x40   :  { %5760 = vsyncadd [#allocation9], 4294963184  ;;  %v4834_v0 = vld [vmem:[#allocation5 + $0xe4] ss:$16 sps:$4 sm:$0xff]   ;;  %v4838_v2 = vld [vmem:[#allocation5 + $0xe0] ss:$16 sps:$4 sm:$0xff]  }
  0x41   :  { %v4836_v1 = vld [vmem:[#allocation5 + $0x2e4] ss:$16 sps:$4 sm:$0xff]   ;;  %3210 = vmatprep.subr.bf16.mxu0 %v4834_v0  ;;  %v4839_v3 = vld [vmem:[#allocation5 + $0x2e0] ss:$16 sps:$4 sm:$0xff]   ;;  %v85_v46 = vld [vmem:[#allocation2 + $0x8] sm:$0xff]  ;;  %s5772_s2 = smov [#allocation11]  }
  0x42   :  { %3251 = vmatprep.subr.bf16.mxu1 %v4836_v1  ;;  %v4840_v4 = vld [vmem:[#allocation5 + $0xc4] ss:$16 sps:$4 sm:$0xff]   ;;  %3211 = vmatpush1.bf16.msra.mxu0 %v4838_v2  ;;  %v4844_v6 = vld [vmem:[#allocation5 + $0xc0] ss:$16 sps:$4 sm:$0xff]   ;;  %v5818_v49 = vpack.c.bf16 %v85_v46, %v85_v46  ;;  %v87_v50 = vld [vmem:[#allocation2 + $0x18] sm:$0xff]  ;;  %s4224_s4 = sshll.u32 %s5772_s2, 4  ;;  %s4225_s4 = int_to_ptr.vmem [resolvable:$true] %s4224_s4 }
  0x43   :  { %3252 = vmatpush1.bf16.msra.mxu1 %v4839_v3  ;;  %v4842_v5 = vld [vmem:[#allocation5 + $0x2c4] ss:$16 sps:$4 sm:$0xff]   ;;  %3212 = vmatprep.subr.bf16.mxu0 %v4840_v4  ;;  %v4845_v7 = vld [vmem:[#allocation5 + $0x2c0] ss:$16 sps:$4 sm:$0xff]   ;;  %v5820_v52 = vpack.c.bf16 %v87_v50, %v87_v50  ;;  %s5735_s20 = scalar_lea.vmem %s4225_s4, 128  ;;  %p5740_p12 = scmp.lt.s32.totalorder %s4225_s4, %s4225_s4 }
  0x44   :  { %3253 = vmatprep.subr.bf16.mxu1 %v4842_v5  ;;  %v4846_v8 = vld [vmem:[#allocation5 + $0xa4] ss:$16 sps:$4 sm:$0xff]   ;;  %v4850_v10 = vld [vmem:[#allocation5 + $0xa0] ss:$16 sps:$4 sm:$0xff]   ;;  %3242 = vmatprep.mubr.bf16.mxu0 %v5818_v49  ;;  %p5736_p11 = scmp.ne.s32.totalorder %s4225_s4, %s5735_s20  ;;  %p5741_p13 = scmp.lt.s32.totalorder %s5735_s20, %s5735_s20 }
  0x45   :  { %v4848_v9 = vld [vmem:[#allocation5 + $0x2a4] ss:$16 sps:$4 sm:$0xff]   ;;  %v4851_v11 = vld [vmem:[#allocation5 + $0x2a0] ss:$16 sps:$4 sm:$0xff]   ;;  %3283 = vmatprep.mubr.bf16.mxu1 %v5820_v52 }
  0x46   :  { %3213 = vmatpush1.bf16.msra.mxu0 %v4844_v6  ;;  %v4852_v12 = vld [vmem:[#allocation5 + $0x84] ss:$16 sps:$4 sm:$0xff]   ;;  %v4856_v14 = vld [vmem:[#allocation5 + $0x80] ss:$16 sps:$4 sm:$0xff]   ;;  %p5742_p0 = por %p5741_p13, %p5740_p12 }
  0x47   :  { %3254 = vmatpush1.bf16.msra.mxu1 %v4845_v7  ;;  %3214 = vmatprep.subr.bf16.mxu0 %v4846_v8  ;;  %v4854_v13 = vld [vmem:[#allocation5 + $0x284] ss:$16 sps:$4 sm:$0xff]   ;;  %v4857_v15 = vld [vmem:[#allocation5 + $0x280] ss:$16 sps:$4 sm:$0xff]  }
  0x48   :  { %3255 = vmatprep.subr.bf16.mxu1 %v4848_v9  ;;  %v4858_v16 = vld [vmem:[#allocation5 + $0x64] ss:$16 sps:$4 sm:$0xff]   ;;  %v4862_v18 = vld [vmem:[#allocation5 + $0x60] ss:$16 sps:$4 sm:$0xff]   ;;  %p5743_p1 = pnand %p5742_p0, %p5736_p11 }
  0x49   :  { %v4860_v17 = vld [vmem:[#allocation5 + $0x264] ss:$16 sps:$4 sm:$0xff]   ;;  %v4863_v19 = vld [vmem:[#allocation5 + $0x260] ss:$16 sps:$4 sm:$0xff]  }
  0x4a   :  { %3215 = vmatpush1.bf16.msra.mxu0 %v4850_v10  ;;  %v4864_v20 = vld [vmem:[#allocation5 + $0x44] ss:$16 sps:$4 sm:$0xff]   ;;  %v4868_v22 = vld [vmem:[#allocation5 + $0x40] ss:$16 sps:$4 sm:$0xff]  }
  0x4b   :  { %3256 = vmatpush1.bf16.msra.mxu1 %v4851_v11  ;;  %3216 = vmatprep.subr.bf16.mxu0 %v4852_v12  ;;  %v4866_v21 = vld [vmem:[#allocation5 + $0x244] ss:$16 sps:$4 sm:$0xff]   ;;  %v4869_v23 = vld [vmem:[#allocation5 + $0x240] ss:$16 sps:$4 sm:$0xff]  }
  0x4c   :  { %3257 = vmatprep.subr.bf16.mxu1 %v4854_v13  ;;  %v4870_v24 = vld [vmem:[#allocation5 + $0x24] ss:$16 sps:$4 sm:$0xff]   ;;  %v4874_v26 = vld [vmem:[#allocation5 + $0x20] ss:$16 sps:$4 sm:$0xff]  }
  0x4d   :  { %v4872_v25 = vld [vmem:[#allocation5 + $0x224] ss:$16 sps:$4 sm:$0xff]   ;;  %v4875_v27 = vld [vmem:[#allocation5 + $0x220] ss:$16 sps:$4 sm:$0xff]  }
  0x4e   :  { %3217 = vmatpush1.bf16.msra.mxu0 %v4856_v14  ;;  %v4876_v28 = vld [vmem:[#allocation5 + $0x4] ss:$16 sps:$4 sm:$0xff]   ;;  %v4880_v30 = vld [vmem:[#allocation5] ss:$16 sps:$4 sm:$0xff]  }
  0x4f   :  { %3258 = vmatpush1.bf16.msra.mxu1 %v4857_v15  ;;  %3218 = vmatprep.subr.bf16.mxu0 %v4858_v16  ;;  %v4878_v29 = vld [vmem:[#allocation5 + $0x204] ss:$16 sps:$4 sm:$0xff]   ;;  %v4881_v31 = vld [vmem:[#allocation5 + $0x200] ss:$16 sps:$4 sm:$0xff]  }
  0x50   :  { %3259 = vmatprep.subr.bf16.mxu1 %v4860_v17  ;;  %v4882_v32 = vld [vmem:[#allocation5 + $0x1e4] ss:$16 sps:$4 sm:$0xff]   ;;  %v4886_v34 = vld [vmem:[#allocation5 + $0x1e0] ss:$16 sps:$4 sm:$0xff]  }
  0x51   :  { %v4884_v33 = vld [vmem:[#allocation5 + $0x3e4] ss:$16 sps:$4 sm:$0xff]   ;;  %v4887_v35 = vld [vmem:[#allocation5 + $0x3e0] ss:$16 sps:$4 sm:$0xff]  }
  0x52   :  { %3219 = vmatpush1.bf16.msra.mxu0 %v4862_v18  ;;  %v4888_v36 = vld [vmem:[#allocation5 + $0x1c4] ss:$16 sps:$4 sm:$0xff]   ;;  %v4892_v38 = vld [vmem:[#allocation5 + $0x1c0] ss:$16 sps:$4 sm:$0xff]  }
  0x53   :  { %3260 = vmatpush1.bf16.msra.mxu1 %v4863_v19  ;;  %3220 = vmatprep.subr.bf16.mxu0 %v4864_v20  ;;  %v4890_v37 = vld [vmem:[#allocation5 + $0x3c4] ss:$16 sps:$4 sm:$0xff]   ;;  %v4893_v39 = vld [vmem:[#allocation5 + $0x3c0] ss:$16 sps:$4 sm:$0xff]  }
  0x54   :  { %3261 = vmatprep.subr.bf16.mxu1 %v4866_v21  ;;  %v4894_v40 = vld [vmem:[#allocation5 + $0x1a4] ss:$16 sps:$4 sm:$0xff]   ;;  %v4898_v42 = vld [vmem:[#allocation5 + $0x1a0] ss:$16 sps:$4 sm:$0xff]  }
  0x55   :  { %v4896_v41 = vld [vmem:[#allocation5 + $0x3a4] ss:$16 sps:$4 sm:$0xff]   ;;  %v4899_v43 = vld [vmem:[#allocation5 + $0x3a0] ss:$16 sps:$4 sm:$0xff]  }
  0x56   :  { %3221 = vmatpush1.bf16.msra.mxu0 %v4868_v22  ;;  %v4900_v44 = vld [vmem:[#allocation5 + $0x184] ss:$16 sps:$4 sm:$0xff]   ;;  %v4904_v47 = vld [vmem:[#allocation5 + $0x180] ss:$16 sps:$4 sm:$0xff]  }
  0x57   :  { %3262 = vmatpush1.bf16.msra.mxu1 %v4869_v23  ;;  %3222 = vmatprep.subr.bf16.mxu0 %v4870_v24  ;;  %v4902_v45 = vld [vmem:[#allocation5 + $0x384] ss:$16 sps:$4 sm:$0xff]   ;;  %v4905_v48 = vld [vmem:[#allocation5 + $0x380] ss:$16 sps:$4 sm:$0xff]  }
  0x58   :  { %3263 = vmatprep.subr.bf16.mxu1 %v4872_v25  ;;  %v4906_v51 = vld [vmem:[#allocation5 + $0x164] ss:$16 sps:$4 sm:$0xff]   ;;  %v4910_v54 = vld [vmem:[#allocation5 + $0x160] ss:$16 sps:$4 sm:$0xff]  }
  0x59   :  { %v4908_v53 = vld [vmem:[#allocation5 + $0x364] ss:$16 sps:$4 sm:$0xff]   ;;  %v4911_v55 = vld [vmem:[#allocation5 + $0x360] ss:$16 sps:$4 sm:$0xff]  }
  0x5a   :  { %3223 = vmatpush1.bf16.msra.mxu0 %v4874_v26  ;;  %v4912_v56 = vld [vmem:[#allocation5 + $0x144] ss:$16 sps:$4 sm:$0xff]   ;;  %v4916_v58 = vld [vmem:[#allocation5 + $0x140] ss:$16 sps:$4 sm:$0xff]  }
  0x5b   :  { %3264 = vmatpush1.bf16.msra.mxu1 %v4875_v27  ;;  %3224 = vmatprep.subr.bf16.mxu0 %v4876_v28  ;;  %v4914_v57 = vld [vmem:[#allocation5 + $0x344] ss:$16 sps:$4 sm:$0xff]   ;;  %v4917_v59 = vld [vmem:[#allocation5 + $0x340] ss:$16 sps:$4 sm:$0xff]  }
  0x5c   :  { %3265 = vmatprep.subr.bf16.mxu1 %v4878_v29  ;;  %v4918_v60 = vld [vmem:[#allocation5 + $0x124] ss:$16 sps:$4 sm:$0xff]   ;;  %v4922_v62 = vld [vmem:[#allocation5 + $0x120] ss:$16 sps:$4 sm:$0xff]  }
  0x5d   :  { %v4920_v61 = vld [vmem:[#allocation5 + $0x324] ss:$16 sps:$4 sm:$0xff]   ;;  %v4923_v63 = vld [vmem:[#allocation5 + $0x320] ss:$16 sps:$4 sm:$0xff]  }
  0x5e   :  { %3225 = vmatpush1.bf16.msra.mxu0 %v4880_v30  ;;  %v4924_v0 = vld [vmem:[#allocation5 + $0x104] ss:$16 sps:$4 sm:$0xff]   ;;  %v4928_v2 = vld [vmem:[#allocation5 + $0x100] ss:$16 sps:$4 sm:$0xff]  }
  0x5f   :  { %3266 = vmatpush1.bf16.msra.mxu1 %v4881_v31  ;;  %3226 = vmatprep.subr.bf16.mxu0 %v4882_v32  ;;  %v4926_v1 = vld [vmem:[#allocation5 + $0x304] ss:$16 sps:$4 sm:$0xff]   ;;  %v4929_v3 = vld [vmem:[#allocation5 + $0x300] ss:$16 sps:$4 sm:$0xff]  }
  0x60   :  { %3267 = vmatprep.subr.bf16.mxu1 %v4884_v33  ;;  %v84_v4 = vld [vmem:[#allocation2] sm:$0xff]  ;;  %v86_v5 = vld [vmem:[#allocation2 + $0x10] sm:$0xff] }
  0x61   :  { %v4932_v6 = vld [vmem:[#allocation5 + $0x4e4] ss:$16 sps:$4 sm:$0xff]   ;;  %v5824_v8 = vpack.c.bf16 %v84_v4, %v84_v4  ;;  %v5826_v9 = vpack.c.bf16 %v86_v5, %v86_v5  ;;  %v4930_v10 = vld [vmem:[#allocation5 + $0x4e0] ss:$16 sps:$4 sm:$0xff]  }
  0x62   :  { %3227 = vmatpush2.bf16.msra.mxu0 %v4886_v34  ;;  %v4935_v7 = vld [vmem:[#allocation5 + $0x6e4] ss:$16 sps:$4 sm:$0xff]   ;;  %v4933_v11 = vld [vmem:[#allocation5 + $0x6e0] ss:$16 sps:$4 sm:$0xff]   ;;  %v89_v34 = vld [vmem:[#allocation2 + $0x28] sm:$0xff] }
  0x63   :  { %3268 = vmatpush2.bf16.msra.mxu1 %v4887_v35  ;;  %3228 = vmatprep.subr.bf16.mxu0 %v4888_v36  ;;  %v4938_v12 = vld [vmem:[#allocation5 + $0x4c4] ss:$16 sps:$4 sm:$0xff]   ;;  %v4936_v14 = vld [vmem:[#allocation5 + $0x4c0] ss:$16 sps:$4 sm:$0xff]  }
  0x64   :  { %3269 = vmatprep.subr.bf16.mxu1 %v4890_v37  ;;  %v4941_v13 = vld [vmem:[#allocation5 + $0x6c4] ss:$16 sps:$4 sm:$0xff]   ;;  %v4939_v15 = vld [vmem:[#allocation5 + $0x6c0] ss:$16 sps:$4 sm:$0xff]   ;;  %v5830_v37 = vpack.c.bf16 %v89_v34, %v89_v34 }
  0x65   :  { %v4944_v16 = vld [vmem:[#allocation5 + $0x4a4] ss:$16 sps:$4 sm:$0xff]   ;;  %v4942_v18 = vld [vmem:[#allocation5 + $0x4a0] ss:$16 sps:$4 sm:$0xff]  }
  0x66   :  { %3229 = vmatpush2.bf16.msra.mxu0 %v4892_v38  ;;  %v4947_v17 = vld [vmem:[#allocation5 + $0x6a4] ss:$16 sps:$4 sm:$0xff]   ;;  %v4945_v19 = vld [vmem:[#allocation5 + $0x6a0] ss:$16 sps:$4 sm:$0xff]   ;;  %v91_v38 = vld [vmem:[#allocation2 + $0x38] sm:$0xff] }
  0x67   :  { %3270 = vmatpush2.bf16.msra.mxu1 %v4893_v39  ;;  %3230 = vmatprep.subr.bf16.mxu0 %v4894_v40  ;;  %v4950_v20 = vld [vmem:[#allocation5 + $0x484] ss:$16 sps:$4 sm:$0xff]   ;;  %v4948_v22 = vld [vmem:[#allocation5 + $0x480] ss:$16 sps:$4 sm:$0xff]   ;;  %v5832_v40 = vpack.c.bf16 %v91_v38, %v91_v38 }
  0x68   :  { %3271 = vmatprep.subr.bf16.mxu1 %v4896_v41  ;;  %v4953_v21 = vld [vmem:[#allocation5 + $0x684] ss:$16 sps:$4 sm:$0xff]   ;;  %v4951_v23 = vld [vmem:[#allocation5 + $0x680] ss:$16 sps:$4 sm:$0xff]  }
  0x69   :  { %v4956_v24 = vld [vmem:[#allocation5 + $0x464] ss:$16 sps:$4 sm:$0xff]   ;;  %v4954_v26 = vld [vmem:[#allocation5 + $0x460] ss:$16 sps:$4 sm:$0xff]  }
  0x6a   :  { %3231 = vmatpush2.bf16.msra.mxu0 %v4898_v42  ;;  %v4959_v25 = vld [vmem:[#allocation5 + $0x664] ss:$16 sps:$4 sm:$0xff]   ;;  %v4957_v27 = vld [vmem:[#allocation5 + $0x660] ss:$16 sps:$4 sm:$0xff]  }
  0x6b   :  { %3272 = vmatpush2.bf16.msra.mxu1 %v4899_v43  ;;  %3232 = vmatprep.subr.bf16.mxu0 %v4900_v44  ;;  %v4962_v28 = vld [vmem:[#allocation5 + $0x444] ss:$16 sps:$4 sm:$0xff]   ;;  %v4960_v30 = vld [vmem:[#allocation5 + $0x440] ss:$16 sps:$4 sm:$0xff]  }
  0x6c   :  { %3273 = vmatprep.subr.bf16.mxu1 %v4902_v45  ;;  %v4965_v29 = vld [vmem:[#allocation5 + $0x644] ss:$16 sps:$4 sm:$0xff]   ;;  %v4963_v31 = vld [vmem:[#allocation5 + $0x640] ss:$16 sps:$4 sm:$0xff]  }
  0x6d   :  { %v4968_v32 = vld [vmem:[#allocation5 + $0x424] ss:$16 sps:$4 sm:$0xff]   ;;  %v4966_v35 = vld [vmem:[#allocation5 + $0x420] ss:$16 sps:$4 sm:$0xff]  }
  0x6e   :  { %3233 = vmatpush2.bf16.msra.mxu0 %v4904_v47  ;;  %v4971_v33 = vld [vmem:[#allocation5 + $0x624] ss:$16 sps:$4 sm:$0xff]   ;;  %v4969_v36 = vld [vmem:[#allocation5 + $0x620] ss:$16 sps:$4 sm:$0xff]  }
  0x6f   :  { %3274 = vmatpush2.bf16.msra.mxu1 %v4905_v48  ;;  %3234 = vmatprep.subr.bf16.mxu0 %v4906_v51  ;;  %v4974_v39 = vld [vmem:[#allocation5 + $0x404] ss:$16 sps:$4 sm:$0xff]   ;;  %v4972_v42 = vld [vmem:[#allocation5 + $0x400] ss:$16 sps:$4 sm:$0xff]  }
  0x70   :  { %3275 = vmatprep.subr.bf16.mxu1 %v4908_v53  ;;  %v4977_v41 = vld [vmem:[#allocation5 + $0x604] ss:$16 sps:$4 sm:$0xff]   ;;  %v4975_v43 = vld [vmem:[#allocation5 + $0x600] ss:$16 sps:$4 sm:$0xff]  }
  0x71   :  { %v4980_v44 = vld [vmem:[#allocation5 + $0x5e4] ss:$16 sps:$4 sm:$0xff]   ;;  %v4978_v46 = vld [vmem:[#allocation5 + $0x5e0] ss:$16 sps:$4 sm:$0xff]  }
  0x72   :  { %3235 = vmatpush2.bf16.msra.mxu0 %v4910_v54  ;;  %v4983_v45 = vld [vmem:[#allocation5 + $0x7e4] ss:$16 sps:$4 sm:$0xff]   ;;  %v4981_v47 = vld [vmem:[#allocation5 + $0x7e0] ss:$16 sps:$4 sm:$0xff]  }
  0x73   :  { %3276 = vmatpush2.bf16.msra.mxu1 %v4911_v55  ;;  %3236 = vmatprep.subr.bf16.mxu0 %v4912_v56  ;;  %v4986_v48 = vld [vmem:[#allocation5 + $0x5c4] ss:$16 sps:$4 sm:$0xff]   ;;  %v4984_v51 = vld [vmem:[#allocation5 + $0x5c0] ss:$16 sps:$4 sm:$0xff]  }
  0x74   :  { %3277 = vmatprep.subr.bf16.mxu1 %v4914_v57  ;;  %v4989_v50 = vld [vmem:[#allocation5 + $0x7c4] ss:$16 sps:$4 sm:$0xff]   ;;  %v4987_v53 = vld [vmem:[#allocation5 + $0x7c0] ss:$16 sps:$4 sm:$0xff]  }
  0x75   :  { %v4992_v54 = vld [vmem:[#allocation5 + $0x5a4] ss:$16 sps:$4 sm:$0xff]   ;;  %v4990_v56 = vld [vmem:[#allocation5 + $0x5a0] ss:$16 sps:$4 sm:$0xff]  }
  0x76   :  { %3237 = vmatpush2.bf16.msra.mxu0 %v4916_v58  ;;  %v4995_v55 = vld [vmem:[#allocation5 + $0x7a4] ss:$16 sps:$4 sm:$0xff]   ;;  %v4993_v57 = vld [vmem:[#allocation5 + $0x7a0] ss:$16 sps:$4 sm:$0xff]  }
  0x77   :  { %3278 = vmatpush2.bf16.msra.mxu1 %v4917_v59  ;;  %3238 = vmatprep.subr.bf16.mxu0 %v4918_v60  ;;  %v4998_v58 = vld [vmem:[#allocation5 + $0x584] ss:$16 sps:$4 sm:$0xff]   ;;  %v4996_v60 = vld [vmem:[#allocation5 + $0x580] ss:$16 sps:$4 sm:$0xff]  }
  0x78   :  { %3279 = vmatprep.subr.bf16.mxu1 %v4920_v61  ;;  %v5001_v59 = vld [vmem:[#allocation5 + $0x784] ss:$16 sps:$4 sm:$0xff]   ;;  %v4999_v61 = vld [vmem:[#allocation5 + $0x780] ss:$16 sps:$4 sm:$0xff]  }
  0x79   :  { %v5008_v4 = vld [vmem:[#allocation5 + $0x540] ss:$16 sps:$4 sm:$0xff]   ;;  %v5049_v38 = vld [vmem:[#allocation5 + $0xa84] ss:$16 sps:$4 sm:$0xff]  }
  0x7a   :  { %3239 = vmatpush2.bf16.msra.mxu0 %v4922_v62  ;;  %v5004_v62 = vld [vmem:[#allocation5 + $0x564] ss:$16 sps:$4 sm:$0xff]   ;;  %v5011_v5 = vld [vmem:[#allocation5 + $0x740] ss:$16 sps:$4 sm:$0xff]  }
  0x7b   :  { %3280 = vmatpush2.bf16.msra.mxu1 %v4923_v63  ;;  %3240 = vmatprep.subr.bf16.mxu0 %v4924_v0  ;;  %v5007_v63 = vld [vmem:[#allocation5 + $0x764] ss:$16 sps:$4 sm:$0xff]   ;;  %v5002_v0 = vld [vmem:[#allocation5 + $0x560] ss:$16 sps:$4 sm:$0xff]  }
  0x7c   :  { %3281 = vmatprep.subr.bf16.mxu1 %v4926_v1  ;;  %v5005_v1 = vld [vmem:[#allocation5 + $0x760] ss:$16 sps:$4 sm:$0xff]  }
  0x7d   :  { %v5038_v34 = vld [vmem:[#allocation5 + $0x8a0] ss:$16 sps:$4 sm:$0xff]  }
  0x7e   :  { %3241 = vmatpush2.bf16.msra.mxu0 %v4928_v2  ;;  %v5010_v2 = vld [vmem:[#allocation5 + $0x544] ss:$16 sps:$4 sm:$0xff]  }
  0x7f   :  { %3282 = vmatpush2.bf16.msra.mxu1 %v4929_v3  ;;  %3292 = vmatprep.subr.bf16.mxu0 %v4932_v6  ;;  %v5013_v3 = vld [vmem:[#allocation5 + $0x744] ss:$16 sps:$4 sm:$0xff]  }
  0x80   :  { %3333 = vmatprep.subr.bf16.mxu1 %v4935_v7  ;;  %v5016_v6 = vld [vmem:[#allocation5 + $0x524] ss:$16 sps:$4 sm:$0xff]  }
  0x81   :  { %3243 = vmatmul.mubr.bf16.vlgmr.msra.gmra.mxu0 %v5824_v8  ;;  %v5019_v7 = vld [vmem:[#allocation5 + $0x724] ss:$16 sps:$4 sm:$0xff]  }
  0x82   :  { %3284 = vmatmul.mubr.bf16.vlgmr.msra.gmra.mxu1 %v5826_v9  ;;  %3293 = vmatpush1.bf16.msra.mxu0 %v4930_v10  ;;  %v5014_v10 = vld [vmem:[#allocation5 + $0x520] ss:$16 sps:$4 sm:$0xff]  }
  0x83   :  { %3334 = vmatpush1.bf16.msra.mxu1 %v4933_v11  ;;  %3294 = vmatprep.subr.bf16.mxu0 %v4938_v12  ;;  %v5017_v11 = vld [vmem:[#allocation5 + $0x720] ss:$16 sps:$4 sm:$0xff]   ;;  %v5022_v12 = vld [vmem:[#allocation5 + $0x504] ss:$16 sps:$4 sm:$0xff]  }
  0x84   :  { %3335 = vmatprep.subr.bf16.mxu1 %v4941_v13  ;;  %3324 = vmatprep.mubr.bf16.mxu0 %v5830_v37  ;;  %v5025_v13 = vld [vmem:[#allocation5 + $0x704] ss:$16 sps:$4 sm:$0xff]  }
  0x85   :  { %3365 = vmatprep.mubr.bf16.mxu1 %v5832_v40 }
  0x86   :  { %3295 = vmatpush1.bf16.msra.mxu0 %v4936_v14  ;;  %v5020_v14 = vld [vmem:[#allocation5 + $0x500] ss:$16 sps:$4 sm:$0xff]  }
  0x87   :  { %3336 = vmatpush1.bf16.msra.mxu1 %v4939_v15  ;;  %3296 = vmatprep.subr.bf16.mxu0 %v4944_v16  ;;  %v5023_v15 = vld [vmem:[#allocation5 + $0x700] ss:$16 sps:$4 sm:$0xff]  }
  0x88   :  { %3337 = vmatprep.subr.bf16.mxu1 %v4947_v17  ;;  %v88_v16 = vld [vmem:[#allocation2 + $0x20] sm:$0xff]  ;;  %v90_v17 = vld [vmem:[#allocation2 + $0x30] sm:$0xff] }
  0x8a   :  { %3297 = vmatpush1.bf16.msra.mxu0 %v4942_v18  ;;  %v5028_v18 = vld [vmem:[#allocation5 + $0x8e4] ss:$16 sps:$4 sm:$0xff]  }
  0x8b   :  { %3338 = vmatpush1.bf16.msra.mxu1 %v4945_v19  ;;  %3298 = vmatprep.subr.bf16.mxu0 %v4950_v20  ;;  %v5031_v19 = vld [vmem:[#allocation5 + $0xae4] ss:$16 sps:$4 sm:$0xff]   ;;  %v5836_v20 = vpack.c.bf16 %v88_v16, %v88_v16  ;;  %v5098_v16 = vld [vmem:[#allocation5 + $0x960] ss:$16 sps:$4 sm:$0xff]  }
  0x8c   :  { %3339 = vmatprep.subr.bf16.mxu1 %v4953_v21  ;;  %v5838_v21 = vpack.c.bf16 %v90_v17, %v90_v17  ;;  %v5101_v17 = vld [vmem:[#allocation5 + $0xb60] ss:$16 sps:$4 sm:$0xff]  }
  0x8e   :  { %3299 = vmatpush1.bf16.msra.mxu0 %v4948_v22  ;;  %v5026_v22 = vld [vmem:[#allocation5 + $0x8e0] ss:$16 sps:$4 sm:$0xff]  }
  0x8f   :  { %3340 = vmatpush1.bf16.msra.mxu1 %v4951_v23  ;;  %3300 = vmatprep.subr.bf16.mxu0 %v4956_v24  ;;  %v5029_v23 = vld [vmem:[#allocation5 + $0xae0] ss:$16 sps:$4 sm:$0xff]   ;;  %v5034_v24 = vld [vmem:[#allocation5 + $0x8c4] ss:$16 sps:$4 sm:$0xff]  }
  0x90   :  { %3341 = vmatprep.subr.bf16.mxu1 %v4959_v25  ;;  %v5037_v25 = vld [vmem:[#allocation5 + $0xac4] ss:$16 sps:$4 sm:$0xff]  }
  0x92   :  { %3301 = vmatpush1.bf16.msra.mxu0 %v4954_v26  ;;  %v93_v26 = vld [vmem:[#allocation2 + $0x48] sm:$0xff] }
  0x93   :  { %3342 = vmatpush1.bf16.msra.mxu1 %v4957_v27  ;;  %3302 = vmatprep.subr.bf16.mxu0 %v4962_v28  ;;  %v5032_v27 = vld [vmem:[#allocation5 + $0x8c0] ss:$16 sps:$4 sm:$0xff]  }
  0x94   :  { %3343 = vmatprep.subr.bf16.mxu1 %v4965_v29  ;;  %v5035_v28 = vld [vmem:[#allocation5 + $0xac0] ss:$16 sps:$4 sm:$0xff]   ;;  %v5842_v29 = vpack.c.bf16 %v93_v26, %v93_v26 }
  0x95   :  { %v5110_v26 = vld [vmem:[#allocation5 + $0x920] ss:$16 sps:$4 sm:$0xff]  }
  0x96   :  { %3303 = vmatpush1.bf16.msra.mxu0 %v4960_v30  ;;  %v95_v30 = vld [vmem:[#allocation2 + $0x58] sm:$0xff] }
  0x97   :  { %3344 = vmatpush1.bf16.msra.mxu1 %v4963_v31  ;;  %3304 = vmatprep.subr.bf16.mxu0 %v4968_v32  ;;  %v5040_v31 = vld [vmem:[#allocation5 + $0x8a4] ss:$16 sps:$4 sm:$0xff]   ;;  %v5844_v32 = vpack.c.bf16 %v95_v30, %v95_v30 }
  0x98   :  { %3345 = vmatprep.subr.bf16.mxu1 %v4971_v33  ;;  %v5043_v33 = vld [vmem:[#allocation5 + $0xaa4] ss:$16 sps:$4 sm:$0xff]  }
  0x99   :  { %v5121_v30 = vld [vmem:[#allocation5 + $0xb04] ss:$16 sps:$4 sm:$0xff]  }
  0x9a   :  { %3305 = vmatpush1.bf16.msra.mxu0 %v4966_v35  ;;  %v5041_v35 = vld [vmem:[#allocation5 + $0xaa0] ss:$16 sps:$4 sm:$0xff]  }
  0x9b   :  { %3346 = vmatpush1.bf16.msra.mxu1 %v4969_v36  ;;  %3306 = vmatprep.subr.bf16.mxu0 %v4974_v39  ;;  %v5046_v36 = vld [vmem:[#allocation5 + $0x884] ss:$16 sps:$4 sm:$0xff]   ;;  %v5044_v39 = vld [vmem:[#allocation5 + $0x880] ss:$16 sps:$4 sm:$0xff]  }
  0x9c   :  { %3347 = vmatprep.subr.bf16.mxu1 %v4977_v41  ;;  %v5047_v41 = vld [vmem:[#allocation5 + $0xa80] ss:$16 sps:$4 sm:$0xff]  }
  0x9e   :  { %3307 = vmatpush1.bf16.msra.mxu0 %v4972_v42  ;;  %v5052_v42 = vld [vmem:[#allocation5 + $0x864] ss:$16 sps:$4 sm:$0xff]  }
  0x9f   :  { %3348 = vmatpush1.bf16.msra.mxu1 %v4975_v43  ;;  %3308 = vmatprep.subr.bf16.mxu0 %v4980_v44  ;;  %v5055_v43 = vld [vmem:[#allocation5 + $0xa64] ss:$16 sps:$4 sm:$0xff]   ;;  %v5050_v44 = vld [vmem:[#allocation5 + $0x860] ss:$16 sps:$4 sm:$0xff]  }
  0xa0   :  { %3349 = vmatprep.subr.bf16.mxu1 %v4983_v45  ;;  %v5053_v45 = vld [vmem:[#allocation5 + $0xa60] ss:$16 sps:$4 sm:$0xff]  }
  0xa2   :  { %3309 = vmatpush2.bf16.msra.mxu0 %v4978_v46  ;;  %v5058_v46 = vld [vmem:[#allocation5 + $0x844] ss:$16 sps:$4 sm:$0xff]  }
  0xa3   :  { %3350 = vmatpush2.bf16.msra.mxu1 %v4981_v47  ;;  %3310 = vmatprep.subr.bf16.mxu0 %v4986_v48  ;;  %v5061_v47 = vld [vmem:[#allocation5 + $0xa44] ss:$16 sps:$4 sm:$0xff]   ;;  %v5056_v48 = vld [vmem:[#allocation5 + $0x840] ss:$16 sps:$4 sm:$0xff]  }
  0xa4   :  { %3351 = vmatprep.subr.bf16.mxu1 %v4989_v50  ;;  %v5059_v50 = vld [vmem:[#allocation5 + $0xa40] ss:$16 sps:$4 sm:$0xff]  }
  0xa6   :  { %3311 = vmatpush2.bf16.msra.mxu0 %v4984_v51  ;;  %v5064_v51 = vld [vmem:[#allocation5 + $0x824] ss:$16 sps:$4 sm:$0xff]  }
  0xa7   :  { %3352 = vmatpush2.bf16.msra.mxu1 %v4987_v53  ;;  %3312 = vmatprep.subr.bf16.mxu0 %v4992_v54  ;;  %v5067_v53 = vld [vmem:[#allocation5 + $0xa24] ss:$16 sps:$4 sm:$0xff]   ;;  %v5062_v54 = vld [vmem:[#allocation5 + $0x820] ss:$16 sps:$4 sm:$0xff]  }
  0xa8   :  { %3353 = vmatprep.subr.bf16.mxu1 %v4995_v55  ;;  %v5065_v55 = vld [vmem:[#allocation5 + $0xa20] ss:$16 sps:$4 sm:$0xff]  }
  0xaa   :  { %3313 = vmatpush2.bf16.msra.mxu0 %v4990_v56  ;;  %v5070_v56 = vld [vmem:[#allocation5 + $0x804] ss:$16 sps:$4 sm:$0xff]  }
  0xab   :  { %3354 = vmatpush2.bf16.msra.mxu1 %v4993_v57  ;;  %3314 = vmatprep.subr.bf16.mxu0 %v4998_v58  ;;  %v5073_v57 = vld [vmem:[#allocation5 + $0xa04] ss:$16 sps:$4 sm:$0xff]   ;;  %v5068_v58 = vld [vmem:[#allocation5 + $0x800] ss:$16 sps:$4 sm:$0xff]  }
  0xac   :  { %3355 = vmatprep.subr.bf16.mxu1 %v5001_v59  ;;  %v5071_v59 = vld [vmem:[#allocation5 + $0xa00] ss:$16 sps:$4 sm:$0xff]  }
  0xae   :  { %3315 = vmatpush2.bf16.msra.mxu0 %v4996_v60  ;;  %v5076_v60 = vld [vmem:[#allocation5 + $0x9e4] ss:$16 sps:$4 sm:$0xff]  }
  0xaf   :  { %3356 = vmatpush2.bf16.msra.mxu1 %v4999_v61  ;;  %3316 = vmatprep.subr.bf16.mxu0 %v5004_v62  ;;  %v5079_v61 = vld [vmem:[#allocation5 + $0xbe4] ss:$16 sps:$4 sm:$0xff]   ;;  %v5074_v62 = vld [vmem:[#allocation5 + $0x9e0] ss:$16 sps:$4 sm:$0xff]  }
  0xb0   :  { %3357 = vmatprep.subr.bf16.mxu1 %v5007_v63  ;;  %v5077_v63 = vld [vmem:[#allocation5 + $0xbe0] ss:$16 sps:$4 sm:$0xff]  }
  0xb2   :  { %3317 = vmatpush2.bf16.msra.mxu0 %v5002_v0  ;;  %v5082_v0 = vld [vmem:[#allocation5 + $0x9c4] ss:$16 sps:$4 sm:$0xff]  }
  0xb3   :  { %3358 = vmatpush2.bf16.msra.mxu1 %v5005_v1  ;;  %3318 = vmatprep.subr.bf16.mxu0 %v5010_v2  ;;  %v5085_v1 = vld [vmem:[#allocation5 + $0xbc4] ss:$16 sps:$4 sm:$0xff]   ;;  %v5080_v2 = vld [vmem:[#allocation5 + $0x9c0] ss:$16 sps:$4 sm:$0xff]  }
  0xb4   :  { %3359 = vmatprep.subr.bf16.mxu1 %v5013_v3  ;;  %v5083_v3 = vld [vmem:[#allocation5 + $0xbc0] ss:$16 sps:$4 sm:$0xff]  }
  0xb6   :  { %3319 = vmatpush2.bf16.msra.mxu0 %v5008_v4  ;;  %v5088_v4 = vld [vmem:[#allocation5 + $0x9a4] ss:$16 sps:$4 sm:$0xff]  }
  0xb7   :  { %3360 = vmatpush2.bf16.msra.mxu1 %v5011_v5  ;;  %3320 = vmatprep.subr.bf16.mxu0 %v5016_v6  ;;  %v5091_v5 = vld [vmem:[#allocation5 + $0xba4] ss:$16 sps:$4 sm:$0xff]   ;;  %v5086_v6 = vld [vmem:[#allocation5 + $0x9a0] ss:$16 sps:$4 sm:$0xff]  }
  0xb8   :  { %3361 = vmatprep.subr.bf16.mxu1 %v5019_v7  ;;  %v5089_v7 = vld [vmem:[#allocation5 + $0xba0] ss:$16 sps:$4 sm:$0xff]  }
  0xba   :  { %3321 = vmatpush2.bf16.msra.mxu0 %v5014_v10  ;;  %v5094_v10 = vld [vmem:[#allocation5 + $0x984] ss:$16 sps:$4 sm:$0xff]  }
  0xbb   :  { %3362 = vmatpush2.bf16.msra.mxu1 %v5017_v11  ;;  %3322 = vmatprep.subr.bf16.mxu0 %v5022_v12  ;;  %v5097_v11 = vld [vmem:[#allocation5 + $0xb84] ss:$16 sps:$4 sm:$0xff]   ;;  %v5092_v12 = vld [vmem:[#allocation5 + $0x980] ss:$16 sps:$4 sm:$0xff]  }
  0xbc   :  { %3363 = vmatprep.subr.bf16.mxu1 %v5025_v13  ;;  %v5095_v13 = vld [vmem:[#allocation5 + $0xb80] ss:$16 sps:$4 sm:$0xff]  }
  0xbe   :  { %3323 = vmatpush2.bf16.msra.mxu0 %v5020_v14  ;;  %v5100_v14 = vld [vmem:[#allocation5 + $0x964] ss:$16 sps:$4 sm:$0xff]  }
  0xbf   :  { %3364 = vmatpush2.bf16.msra.mxu1 %v5023_v15  ;;  %3374 = vmatprep.subr.bf16.mxu0 %v5028_v18  ;;  %v5103_v15 = vld [vmem:[#allocation5 + $0xb64] ss:$16 sps:$4 sm:$0xff]  }
  0xc0   :  { %3415 = vmatprep.subr.bf16.mxu1 %v5031_v19  ;;  %v5106_v18 = vld [vmem:[#allocation5 + $0x944] ss:$16 sps:$4 sm:$0xff]  }
  0xc1   :  { %3325 = vmatmul.mubr.bf16.vlgmr.msra.gmra.mxu0 %v5836_v20  ;;  %v5109_v19 = vld [vmem:[#allocation5 + $0xb44] ss:$16 sps:$4 sm:$0xff]  }
  0xc2   :  { %3366 = vmatmul.mubr.bf16.vlgmr.msra.gmra.mxu1 %v5838_v21  ;;  %3375 = vmatpush1.bf16.msra.mxu0 %v5026_v22  ;;  %v5104_v22 = vld [vmem:[#allocation5 + $0x940] ss:$16 sps:$4 sm:$0xff]  }
  0xc3   :  { %3416 = vmatpush1.bf16.msra.mxu1 %v5029_v23  ;;  %3376 = vmatprep.subr.bf16.mxu0 %v5034_v24  ;;  %v5107_v23 = vld [vmem:[#allocation5 + $0xb40] ss:$16 sps:$4 sm:$0xff]   ;;  %v5112_v24 = vld [vmem:[#allocation5 + $0x924] ss:$16 sps:$4 sm:$0xff]  }
  0xc4   :  { %3417 = vmatprep.subr.bf16.mxu1 %v5037_v25  ;;  %3406 = vmatprep.mubr.bf16.mxu0 %v5842_v29  ;;  %v5115_v25 = vld [vmem:[#allocation5 + $0xb24] ss:$16 sps:$4 sm:$0xff]  }
  0xc5   :  { %3447 = vmatprep.mubr.bf16.mxu1 %v5844_v32 }
  0xc6   :  { %3377 = vmatpush1.bf16.msra.mxu0 %v5032_v27  ;;  %v5113_v27 = vld [vmem:[#allocation5 + $0xb20] ss:$16 sps:$4 sm:$0xff]  }
  0xc7   :  { %3418 = vmatpush1.bf16.msra.mxu1 %v5035_v28  ;;  %3378 = vmatprep.subr.bf16.mxu0 %v5040_v31  ;;  %v5118_v28 = vld [vmem:[#allocation5 + $0x904] ss:$16 sps:$4 sm:$0xff]   ;;  %v5116_v31 = vld [vmem:[#allocation5 + $0x900] ss:$16 sps:$4 sm:$0xff]  }
  0xc8   :  { %3419 = vmatprep.subr.bf16.mxu1 %v5043_v33  ;;  %v5119_v33 = vld [vmem:[#allocation5 + $0xb00] ss:$16 sps:$4 sm:$0xff]  }
  0xca   :  { %3379 = vmatpush1.bf16.msra.mxu0 %v5038_v34  ;;  %v92_v34 = vld [vmem:[#allocation2 + $0x40] sm:$0xff] }
  0xcb   :  { %3420 = vmatpush1.bf16.msra.mxu1 %v5041_v35  ;;  %3380 = vmatprep.subr.bf16.mxu0 %v5046_v36  ;;  %v94_v35 = vld [vmem:[#allocation2 + $0x50] sm:$0xff] }
  0xcc   :  { %3421 = vmatprep.subr.bf16.mxu1 %v5049_v38  ;;  %v5124_v36 = vld [vmem:[#allocation5 + $0xce4] ss:$16 sps:$4 sm:$0xff]  }
  0xcd   :  { %v5127_v38 = vld [vmem:[#allocation5 + $0xee4] ss:$16 sps:$4 sm:$0xff]  }
  0xce   :  { %3381 = vmatpush1.bf16.msra.mxu0 %v5044_v39  ;;  %v5122_v39 = vld [vmem:[#allocation5 + $0xce0] ss:$16 sps:$4 sm:$0xff]  }
  0xcf   :  { %3422 = vmatpush1.bf16.msra.mxu1 %v5047_v41  ;;  %3382 = vmatprep.subr.bf16.mxu0 %v5052_v42  ;;  %v97_v41 = vld [vmem:[#allocation2 + $0x68] sm:$0xff]  ;;  %v5848_v42 = vpack.c.bf16 %v92_v34, %v92_v34  ;;  %v5188_v34 = vld [vmem:[#allocation5 + $0xd80] ss:$16 sps:$4 sm:$0xff]  }
  0xd0   :  { %3423 = vmatprep.subr.bf16.mxu1 %v5055_v43  ;;  %v5850_v43 = vpack.c.bf16 %v94_v35, %v94_v35  ;;  %v5191_v35 = vld [vmem:[#allocation5 + $0xf80] ss:$16 sps:$4 sm:$0xff]  }
  0xd2   :  { %3383 = vmatpush1.bf16.msra.mxu0 %v5050_v44  ;;  %v99_v44 = vld [vmem:[#allocation2 + $0x78] sm:$0xff] }
  0xd3   :  { %3424 = vmatpush1.bf16.msra.mxu1 %v5053_v45  ;;  %3384 = vmatprep.subr.bf16.mxu0 %v5058_v46  ;;  %v5125_v45 = vld [vmem:[#allocation5 + $0xee0] ss:$16 sps:$4 sm:$0xff]   ;;  %v5130_v46 = vld [vmem:[#allocation5 + $0xcc4] ss:$16 sps:$4 sm:$0xff]  }
  0xd4   :  { %3425 = vmatprep.subr.bf16.mxu1 %v5061_v47  ;;  %v5133_v47 = vld [vmem:[#allocation5 + $0xec4] ss:$16 sps:$4 sm:$0xff]  }
  0xd6   :  { %3385 = vmatpush1.bf16.msra.mxu0 %v5056_v48  ;;  %v5852_v48 = vpack.c.bf16 %v97_v41, %v97_v41  ;;  %v5197_v41 = vld [vmem:[#allocation5 + $0xf60] ss:$16 sps:$4 sm:$0xff]  }
  0xd7   :  { %3426 = vmatpush1.bf16.msra.mxu1 %v5059_v50  ;;  %3386 = vmatprep.subr.bf16.mxu0 %v5064_v51  ;;  %v5854_v50 = vpack.c.bf16 %v99_v44, %v99_v44  ;;  %v5128_v51 = vld [vmem:[#allocation5 + $0xcc0] ss:$16 sps:$4 sm:$0xff]   ;;  %v5202_v44 = vld [vmem:[#allocation5 + $0xd44] ss:$16 sps:$4 sm:$0xff]  }
  0xd8   :  { %3427 = vmatprep.subr.bf16.mxu1 %v5067_v53  ;;  %v5131_v53 = vld [vmem:[#allocation5 + $0xec0] ss:$16 sps:$4 sm:$0xff]  }
  0xda   :  { %3387 = vmatpush1.bf16.msra.mxu0 %v5062_v54  ;;  %v5136_v54 = vld [vmem:[#allocation5 + $0xca4] ss:$16 sps:$4 sm:$0xff]  }
  0xdb   :  { %3428 = vmatpush1.bf16.msra.mxu1 %v5065_v55  ;;  %3388 = vmatprep.subr.bf16.mxu0 %v5070_v56  ;;  %v5139_v55 = vld [vmem:[#allocation5 + $0xea4] ss:$16 sps:$4 sm:$0xff]   ;;  %v5134_v56 = vld [vmem:[#allocation5 + $0xca0] ss:$16 sps:$4 sm:$0xff]  }
  0xdc   :  { %3429 = vmatprep.subr.bf16.mxu1 %v5073_v57  ;;  %v5137_v57 = vld [vmem:[#allocation5 + $0xea0] ss:$16 sps:$4 sm:$0xff]  }
  0xde   :  { %3389 = vmatpush1.bf16.msra.mxu0 %v5068_v58  ;;  %v5142_v58 = vld [vmem:[#allocation5 + $0xc84] ss:$16 sps:$4 sm:$0xff]  }
  0xdf   :  { %3430 = vmatpush1.bf16.msra.mxu1 %v5071_v59  ;;  %3390 = vmatprep.subr.bf16.mxu0 %v5076_v60  ;;  %v5145_v59 = vld [vmem:[#allocation5 + $0xe84] ss:$16 sps:$4 sm:$0xff]   ;;  %v5140_v60 = vld [vmem:[#allocation5 + $0xc80] ss:$16 sps:$4 sm:$0xff]  }
  0xe0   :  { %3431 = vmatprep.subr.bf16.mxu1 %v5079_v61  ;;  %v5143_v61 = vld [vmem:[#allocation5 + $0xe80] ss:$16 sps:$4 sm:$0xff]  }
  0xe2   :  { %3391 = vmatpush2.bf16.msra.mxu0 %v5074_v62  ;;  %v5148_v62 = vld [vmem:[#allocation5 + $0xc64] ss:$16 sps:$4 sm:$0xff]  }
  0xe3   :  { %3432 = vmatpush2.bf16.msra.mxu1 %v5077_v63  ;;  %3392 = vmatprep.subr.bf16.mxu0 %v5082_v0  ;;  %v5151_v63 = vld [vmem:[#allocation5 + $0xe64] ss:$16 sps:$4 sm:$0xff]   ;;  %v5146_v0 = vld [vmem:[#allocation5 + $0xc60] ss:$16 sps:$4 sm:$0xff]  }
  0xe4   :  { %3433 = vmatprep.subr.bf16.mxu1 %v5085_v1  ;;  %v5149_v1 = vld [vmem:[#allocation5 + $0xe60] ss:$16 sps:$4 sm:$0xff]  }
  0xe6   :  { %3393 = vmatpush2.bf16.msra.mxu0 %v5080_v2  ;;  %v5154_v2 = vld [vmem:[#allocation5 + $0xc44] ss:$16 sps:$4 sm:$0xff]  }
  0xe7   :  { %3434 = vmatpush2.bf16.msra.mxu1 %v5083_v3  ;;  %3394 = vmatprep.subr.bf16.mxu0 %v5088_v4  ;;  %v5157_v3 = vld [vmem:[#allocation5 + $0xe44] ss:$16 sps:$4 sm:$0xff]   ;;  %v5152_v4 = vld [vmem:[#allocation5 + $0xc40] ss:$16 sps:$4 sm:$0xff]  }
  0xe8   :  { %3435 = vmatprep.subr.bf16.mxu1 %v5091_v5  ;;  %v5155_v5 = vld [vmem:[#allocation5 + $0xe40] ss:$16 sps:$4 sm:$0xff]  }
  0xea   :  { %3395 = vmatpush2.bf16.msra.mxu0 %v5086_v6  ;;  %v5160_v6 = vld [vmem:[#allocation5 + $0xc24] ss:$16 sps:$4 sm:$0xff]  }
  0xeb   :  { %3436 = vmatpush2.bf16.msra.mxu1 %v5089_v7  ;;  %3396 = vmatprep.subr.bf16.mxu0 %v5094_v10  ;;  %v5163_v7 = vld [vmem:[#allocation5 + $0xe24] ss:$16 sps:$4 sm:$0xff]   ;;  %v5158_v10 = vld [vmem:[#allocation5 + $0xc20] ss:$16 sps:$4 sm:$0xff]  }
  0xec   :  { %3437 = vmatprep.subr.bf16.mxu1 %v5097_v11  ;;  %v5161_v11 = vld [vmem:[#allocation5 + $0xe20] ss:$16 sps:$4 sm:$0xff]  }
  0xee   :  { %3397 = vmatpush2.bf16.msra.mxu0 %v5092_v12  ;;  %v5166_v12 = vld [vmem:[#allocation5 + $0xc04] ss:$16 sps:$4 sm:$0xff]  }
  0xef   :  { %3438 = vmatpush2.bf16.msra.mxu1 %v5095_v13  ;;  %3398 = vmatprep.subr.bf16.mxu0 %v5100_v14  ;;  %v5169_v13 = vld [vmem:[#allocation5 + $0xe04] ss:$16 sps:$4 sm:$0xff]   ;;  %v5164_v14 = vld [vmem:[#allocation5 + $0xc00] ss:$16 sps:$4 sm:$0xff]  }
  0xf0   :  { %3439 = vmatprep.subr.bf16.mxu1 %v5103_v15  ;;  %v5167_v15 = vld [vmem:[#allocation5 + $0xe00] ss:$16 sps:$4 sm:$0xff]  }
  0xf2   :  { %3399 = vmatpush2.bf16.msra.mxu0 %v5098_v16  ;;  %v5172_v16 = vld [vmem:[#allocation5 + $0xde4] ss:$16 sps:$4 sm:$0xff]  }
  0xf3   :  { %3440 = vmatpush2.bf16.msra.mxu1 %v5101_v17  ;;  %3400 = vmatprep.subr.bf16.mxu0 %v5106_v18  ;;  %v5175_v17 = vld [vmem:[#allocation5 + $0xfe4] ss:$16 sps:$4 sm:$0xff]   ;;  %v5170_v18 = vld [vmem:[#allocation5 + $0xde0] ss:$16 sps:$4 sm:$0xff]  }
  0xf4   :  { %3441 = vmatprep.subr.bf16.mxu1 %v5109_v19  ;;  %v5173_v19 = vld [vmem:[#allocation5 + $0xfe0] ss:$16 sps:$4 sm:$0xff]  }
  0xf6   :  { %3401 = vmatpush2.bf16.msra.mxu0 %v5104_v22  ;;  %v5178_v22 = vld [vmem:[#allocation5 + $0xdc4] ss:$16 sps:$4 sm:$0xff]  }
  0xf7   :  { %3442 = vmatpush2.bf16.msra.mxu1 %v5107_v23  ;;  %3402 = vmatprep.subr.bf16.mxu0 %v5112_v24  ;;  %v5181_v23 = vld [vmem:[#allocation5 + $0xfc4] ss:$16 sps:$4 sm:$0xff]   ;;  %v5176_v24 = vld [vmem:[#allocation5 + $0xdc0] ss:$16 sps:$4 sm:$0xff]  }
  0xf8   :  { %3443 = vmatprep.subr.bf16.mxu1 %v5115_v25  ;;  %v5179_v25 = vld [vmem:[#allocation5 + $0xfc0] ss:$16 sps:$4 sm:$0xff]  }
  0xfa   :  { %3403 = vmatpush2.bf16.msra.mxu0 %v5110_v26  ;;  %v5184_v26 = vld [vmem:[#allocation5 + $0xda4] ss:$16 sps:$4 sm:$0xff]  }
  0xfb   :  { %3444 = vmatpush2.bf16.msra.mxu1 %v5113_v27  ;;  %3404 = vmatprep.subr.bf16.mxu0 %v5118_v28  ;;  %v5187_v27 = vld [vmem:[#allocation5 + $0xfa4] ss:$16 sps:$4 sm:$0xff]   ;;  %v5182_v28 = vld [vmem:[#allocation5 + $0xda0] ss:$16 sps:$4 sm:$0xff]  }
  0xfc   :  { %3445 = vmatprep.subr.bf16.mxu1 %v5121_v30  ;;  %v5185_v30 = vld [vmem:[#allocation5 + $0xfa0] ss:$16 sps:$4 sm:$0xff]  }
  0xfe   :  { %3405 = vmatpush2.bf16.msra.mxu0 %v5116_v31  ;;  %v5190_v31 = vld [vmem:[#allocation5 + $0xd84] ss:$16 sps:$4 sm:$0xff]  }
  0xff   :  { %3446 = vmatpush2.bf16.msra.mxu1 %v5119_v33  ;;  %3456 = vmatprep.subr.bf16.mxu0 %v5124_v36  ;;  %v5193_v33 = vld [vmem:[#allocation5 + $0xf84] ss:$16 sps:$4 sm:$0xff]  }
 0x100   :  { %3497 = vmatprep.subr.bf16.mxu1 %v5127_v38  ;;  %v5196_v36 = vld [vmem:[#allocation5 + $0xd64] ss:$16 sps:$4 sm:$0xff]  }
 0x101   :  { %3407 = vmatmul.mubr.bf16.vlgmr.msra.gmra.mxu0 %v5848_v42  ;;  %v5199_v38 = vld [vmem:[#allocation5 + $0xf64] ss:$16 sps:$4 sm:$0xff]  }
 0x102   :  { %3448 = vmatmul.mubr.bf16.vlgmr.msra.gmra.mxu1 %v5850_v43  ;;  %3457 = vmatpush1.bf16.msra.mxu0 %v5122_v39  ;;  %v5194_v39 = vld [vmem:[#allocation5 + $0xd60] ss:$16 sps:$4 sm:$0xff]  }
 0x103   :  { %3498 = vmatpush1.bf16.msra.mxu1 %v5125_v45  ;;  %3458 = vmatprep.subr.bf16.mxu0 %v5130_v46  ;;  %v5205_v45 = vld [vmem:[#allocation5 + $0xf44] ss:$16 sps:$4 sm:$0xff]   ;;  %v5200_v46 = vld [vmem:[#allocation5 + $0xd40] ss:$16 sps:$4 sm:$0xff]  }
 0x104   :  { %3499 = vmatprep.subr.bf16.mxu1 %v5133_v47  ;;  %3488 = vmatprep.mubr.bf16.mxu0 %v5852_v48  ;;  %v5203_v47 = vld [vmem:[#allocation5 + $0xf40] ss:$16 sps:$4 sm:$0xff]  }
 0x105   :  { %3529 = vmatprep.mubr.bf16.mxu1 %v5854_v50 }
 0x106   :  { %3459 = vmatpush1.bf16.msra.mxu0 %v5128_v51  ;;  %v630_v51 = vlaneseq }
 0x107   :  { %3500 = vmatpush1.bf16.msra.mxu1 %v5131_v53  ;;  %3460 = vmatprep.subr.bf16.mxu0 %v5136_v54  ;;  %v5208_v53 = vld [vmem:[#allocation5 + $0xd24] ss:$16 sps:$4 sm:$0xff]  }
 0x108   :  { %3501 = vmatprep.subr.bf16.mxu1 %v5139_v55  ;;  %v5211_v54 = vld [vmem:[#allocation5 + $0xf24] ss:$16 sps:$4 sm:$0xff]   ;;  %v5206_v55 = vld [vmem:[#allocation5 + $0xd20] ss:$16 sps:$4 sm:$0xff]  }
 0x10a   :  { %3461 = vmatpush1.bf16.msra.mxu0 %v5134_v56  ;;  %v5209_v56 = vld [vmem:[#allocation5 + $0xf20] ss:$16 sps:$4 sm:$0xff]  }
 0x10b   :  { %3502 = vmatpush1.bf16.msra.mxu1 %v5137_v57  ;;  %3462 = vmatprep.subr.bf16.mxu0 %v5142_v58  ;;  %v5860_v57 = vshrl.u32 %v630_v51, 7  ;;  %v5214_v58 = vld [vmem:[#allocation5 + $0xd04] ss:$16 sps:$4 sm:$0xff]   ;;  %v5253_v51 = vld [vmem:[#allocation5 + $0x24c] ss:$16 sps:$4 sm:$0xff]  }
 0x10c   :  { %3503 = vmatprep.subr.bf16.mxu1 %v5145_v59  ;;  %v5217_v59 = vld [vmem:[#allocation5 + $0xf04] ss:$16 sps:$4 sm:$0xff]  }
 0x10e   :  { %3463 = vmatpush1.bf16.msra.mxu0 %v5140_v60  ;;  %v5212_v60 = vld [vmem:[#allocation5 + $0xd00] ss:$16 sps:$4 sm:$0xff]  }
 0x10f   :  { %3504 = vmatpush1.bf16.msra.mxu1 %v5143_v61  ;;  %3464 = vmatprep.subr.bf16.mxu0 %v5148_v62  ;;  %v5215_v61 = vld [vmem:[#allocation5 + $0xf00] ss:$16 sps:$4 sm:$0xff]  }
 0x110   :  { %3505 = vmatprep.subr.bf16.mxu1 %v5151_v63  ;;  %v628_v62 = vld [vmem:[#allocation7] sm:$0xf] }
 0x111   :  { %v96_v63 = vld [vmem:[#allocation2 + $0x60] sm:$0xff] }
 0x112   :  { %3465 = vmatpush1.bf16.msra.mxu0 %v5146_v0  ;;  %v632_v0 = vsub.s32 0, %v5860_v57 }
 0x113   :  { %3506 = vmatpush1.bf16.msra.mxu1 %v5149_v1  ;;  %3466 = vmatprep.subr.bf16.mxu0 %v5154_v2  ;;  %v98_v1 = vld [vmem:[#allocation2 + $0x70] sm:$0xff]  ;;  %v5220_v2 = vld [vmem:[#allocation5 + $0xec] ss:$16 sps:$4 sm:$0xff]  }
 0x114   :  { %3507 = vmatprep.subr.bf16.mxu1 %v5157_v3  ;;  %v5223_v3 = vld [vmem:[#allocation5 + $0x2ec] ss:$16 sps:$4 sm:$0xff]  }
 0x116   :  { %3467 = vmatpush1.bf16.msra.mxu0 %v5152_v4  ;;  %v636_v4 = vsub.s32 1, %v5860_v57 }
 0x117   :  { %3508 = vmatpush1.bf16.msra.mxu1 %v5155_v5  ;;  %3468 = vmatprep.subr.bf16.mxu0 %v5160_v6  ;;  %v5864_v5 = vpack.c.bf16 %v96_v63, %v96_v63  ;;  %v5866_v6 = vpack.c.bf16 %v98_v1, %v98_v1  ;;  %v5263_v63 = vld [vmem:[#allocation5 + $0x208] ss:$16 sps:$4 sm:$0xff]   ;;  %v5271_v1 = vld [vmem:[#allocation5 + $0x3ec] ss:$16 sps:$4 sm:$0xff]  }
 0x118   :  { %3509 = vmatprep.subr.bf16.mxu1 %v5163_v7  ;;  %v5218_v7 = vld [vmem:[#allocation5 + $0xe8] ss:$16 sps:$4 sm:$0xff]  }
 0x11a   :  { %3469 = vmatpush1.bf16.msra.mxu0 %v5158_v10  ;;  %v633_v10 = vrot.slane %v628_v62, %v632_v0  ;;  %v5268_v0 = vld [vmem:[#allocation5 + $0x1ec] ss:$16 sps:$4 sm:$0xff]  }
 0x11b   :  { %3510 = vmatpush1.bf16.msra.mxu1 %v5161_v11  ;;  %3470 = vmatprep.subr.bf16.mxu0 %v5166_v12  ;;  %v5221_v11 = vld [vmem:[#allocation5 + $0x2e8] ss:$16 sps:$4 sm:$0xff]   ;;  %v5226_v12 = vld [vmem:[#allocation5 + $0xcc] ss:$16 sps:$4 sm:$0xff]  }
 0x11c   :  { %3511 = vmatprep.subr.bf16.mxu1 %v5169_v13  ;;  %v5229_v13 = vld [vmem:[#allocation5 + $0x2cc] ss:$16 sps:$4 sm:$0xff]  }
 0x11e   :  { %3471 = vmatpush1.bf16.msra.mxu0 %v5164_v14  ;;  %v637_v14 = vrot.slane %v628_v62, %v636_v4  ;;  %v5260_v62 = vld [vmem:[#allocation5 + $0x8] ss:$16 sps:$4 sm:$0xff]   ;;  %v5274_v4 = vld [vmem:[#allocation5 + $0x1cc] ss:$16 sps:$4 sm:$0xff]  }
 0x11f   :  { %3512 = vmatpush1.bf16.msra.mxu1 %v5167_v15  ;;  %3472 = vmatprep.subr.bf16.mxu0 %v5172_v16 }
 0x120   :  { %3513 = vmatprep.subr.bf16.mxu1 %v5175_v17  ;;  %v5224_v17 = vld [vmem:[#allocation5 + $0xc8] ss:$16 sps:$4 sm:$0xff]  }
 0x122   :  { %3473 = vmatpush2.bf16.msra.mxu0 %v5170_v18 }
 0x123   :  { %3514 = vmatpush2.bf16.msra.mxu1 %v5173_v19  ;;  %3474 = vmatprep.subr.bf16.mxu0 %v5178_v22  ;;  %v5227_v19 = vld [vmem:[#allocation5 + $0x2c8] ss:$16 sps:$4 sm:$0xff]  }
 0x124   :  { %3515 = vmatprep.subr.bf16.mxu1 %v5181_v23 }
 0x126   :  { %3475 = vmatpush2.bf16.msra.mxu0 %v5176_v24  ;;  %v5232_v24 = vld [vmem:[#allocation5 + $0xac] ss:$16 sps:$4 sm:$0xff]  }
 0x127   :  { %3516 = vmatpush2.bf16.msra.mxu1 %v5179_v25  ;;  %3476 = vmatprep.subr.bf16.mxu0 %v5184_v26  ;;  %v5235_v25 = vld [vmem:[#allocation5 + $0x2ac] ss:$16 sps:$4 sm:$0xff]  }
 0x128   :  { %3517 = vmatprep.subr.bf16.mxu1 %v5187_v27 }
 0x12a   :  { %3477 = vmatpush2.bf16.msra.mxu0 %v5182_v28 }
 0x12b   :  { %3518 = vmatpush2.bf16.msra.mxu1 %v5185_v30  ;;  %3478 = vmatprep.subr.bf16.mxu0 %v5190_v31  ;;  %v5230_v31 = vld [vmem:[#allocation5 + $0xa8] ss:$16 sps:$4 sm:$0xff]  }
 0x12c   :  { %3519 = vmatprep.subr.bf16.mxu1 %v5193_v33 }
 0x12e   :  { %3479 = vmatpush2.bf16.msra.mxu0 %v5188_v34  ;;  %v5233_v34 = vld [vmem:[#allocation5 + $0x2a8] ss:$16 sps:$4 sm:$0xff]  }
 0x12f   :  { %3520 = vmatpush2.bf16.msra.mxu1 %v5191_v35  ;;  %3480 = vmatprep.subr.bf16.mxu0 %v5196_v36 }
 0x130   :  { %3521 = vmatprep.subr.bf16.mxu1 %v5199_v38  ;;  %v5238_v38 = vld [vmem:[#allocation5 + $0x8c] ss:$16 sps:$4 sm:$0xff]  }
 0x132   :  { %3481 = vmatpush2.bf16.msra.mxu0 %v5194_v39  ;;  %v5241_v39 = vld [vmem:[#allocation5 + $0x28c] ss:$16 sps:$4 sm:$0xff]  }
 0x133   :  { %3522 = vmatpush2.bf16.msra.mxu1 %v5197_v41  ;;  %3482 = vmatprep.subr.bf16.mxu0 %v5202_v44  ;;  %v5236_v41 = vld [vmem:[#allocation5 + $0x88] ss:$16 sps:$4 sm:$0xff]   ;;  %v5247_v44 = vld [vmem:[#allocation5 + $0x26c] ss:$16 sps:$4 sm:$0xff]  }
 0x134   :  { %3523 = vmatprep.subr.bf16.mxu1 %v5205_v45  ;;  %v5242_v45 = vld [vmem:[#allocation5 + $0x68] ss:$16 sps:$4 sm:$0xff]  }
 0x136   :  { %3483 = vmatpush2.bf16.msra.mxu0 %v5200_v46  ;;  %v5245_v46 = vld [vmem:[#allocation5 + $0x268] ss:$16 sps:$4 sm:$0xff]  }
 0x137   :  { %3524 = vmatpush2.bf16.msra.mxu1 %v5203_v47  ;;  %3484 = vmatprep.subr.bf16.mxu0 %v5208_v53  ;;  %v5250_v47 = vld [vmem:[#allocation5 + $0x4c] ss:$16 sps:$4 sm:$0xff]   ;;  %v5248_v53 = vld [vmem:[#allocation5 + $0x48] ss:$16 sps:$4 sm:$0xff]  }
 0x138   :  { %3525 = vmatprep.subr.bf16.mxu1 %v5211_v54  ;;  %v5251_v54 = vld [vmem:[#allocation5 + $0x248] ss:$16 sps:$4 sm:$0xff]  }
 0x13a   :  { %3485 = vmatpush2.bf16.msra.mxu0 %v5206_v55  ;;  %v5256_v55 = vld [vmem:[#allocation5 + $0x2c] ss:$16 sps:$4 sm:$0xff]  }
 0x13b   :  { %3526 = vmatpush2.bf16.msra.mxu1 %v5209_v56  ;;  %3486 = vmatprep.subr.bf16.mxu0 %v5214_v58  ;;  %v5259_v56 = vld [vmem:[#allocation5 + $0x22c] ss:$16 sps:$4 sm:$0xff]   ;;  %v5254_v58 = vld [vmem:[#allocation5 + $0x28] ss:$16 sps:$4 sm:$0xff]  }
 0x13c   :  { %3527 = vmatprep.subr.bf16.mxu1 %v5217_v59  ;;  %v5257_v59 = vld [vmem:[#allocation5 + $0x228] ss:$16 sps:$4 sm:$0xff]  }
 0x13e   :  { %3487 = vmatpush2.bf16.msra.mxu0 %v5212_v60  ;;  %v5262_v60 = vld [vmem:[#allocation5 + $0xc] ss:$16 sps:$4 sm:$0xff]  }
 0x13f   :  { %3528 = vmatpush2.bf16.msra.mxu1 %v5215_v61  ;;  %3538 = vmatprep.subr.bf16.mxu0 %v5220_v2  ;;  %v5265_v61 = vld [vmem:[#allocation5 + $0x20c] ss:$16 sps:$4 sm:$0xff]   ;;  %v5266_v2 = vld [vmem:[#allocation5 + $0x1e8] ss:$16 sps:$4 sm:$0xff]  }
 0x140   :  { %3579 = vmatprep.subr.bf16.mxu1 %v5223_v3  ;;  %v5269_v3 = vld [vmem:[#allocation5 + $0x3e8] ss:$16 sps:$4 sm:$0xff]  }
 0x141   :  { %v3244_v15 = vpop.f32.mrf.mxu0  ;;  %3489 = vmatmul.mubr.bf16.vlgmr.msra.gmra.mxu0 %v5864_v5 }
 0x142   :  { %v3285_v16 = vpop.f32.mrf.mxu1  ;;  %3530 = vmatmul.mubr.bf16.vlgmr.msra.gmra.mxu1 %v5866_v6  ;;  %v3245_v18 = vadd.f32 %v3244_v15, %v633_v10  ;;  %3539 = vmatpush1.bf16.msra.mxu0 %v5218_v7  ;;  %v5277_v7 = vld [vmem:[#allocation5 + $0x3cc] ss:$16 sps:$4 sm:$0xff]   ;;  %v5272_v10 = vld [vmem:[#allocation5 + $0x1c8] ss:$16 sps:$4 sm:$0xff]  }
 0x143   :  { %3580 = vmatpush1.bf16.msra.mxu1 %v5221_v11  ;;  %v3246_v22 = vpop.f32.mrf.mxu0  ;;  %3540 = vmatprep.subr.bf16.mxu0 %v5226_v12  ;;  %v5275_v11 = vld [vmem:[#allocation5 + $0x3c8] ss:$16 sps:$4 sm:$0xff]   ;;  %v5280_v12 = vld [vmem:[#allocation5 + $0x1ac] ss:$16 sps:$4 sm:$0xff]  }
 0x144   :  { %v3287_v23 = vpop.f32.mrf.mxu1  ;;  %3581 = vmatprep.subr.bf16.mxu1 %v5229_v13  ;;  %v5870_v26 = vadd.f32 %v3285_v16, %v3245_v18  ;;  %v3247_v27 = vadd.f32 %v3246_v22, %v637_v14  ;;  %3570 = vmatprep.mubr.bf16.mxu0 %v5818_v49  ;;  %v5239_v49 = vld [vmem:[#allocation5 + $0x288] ss:$16 sps:$4 sm:$0xff]   ;;  %v5283_v13 = vld [vmem:[#allocation5 + $0x3ac] ss:$16 sps:$4 sm:$0xff]  }
 0x145   :  { %3611 = vmatprep.mubr.bf16.mxu1 %v5820_v52  ;;  %v3248_v28 = vpop.f32.mrf.mxu0  ;;  %v5244_v52 = vld [vmem:[#allocation5 + $0x6c] ss:$16 sps:$4 sm:$0xff]   ;;  %v5278_v14 = vld [vmem:[#allocation5 + $0x1a8] ss:$16 sps:$4 sm:$0xff]  }
 0x146   :  { %v3289_v30 = vpop.f32.mrf.mxu1  ;;  %v5874_v33 = vadd.f32 %v3287_v23, %v3247_v27  ;;  %3541 = vmatpush1.bf16.msra.mxu0 %v5224_v17  ;;  %v5281_v15 = vld [vmem:[#allocation5 + $0x3a8] ss:$16 sps:$4 sm:$0xff]   ;;  %v5286_v16 = vld [vmem:[#allocation5 + $0x18c] ss:$16 sps:$4 sm:$0xff]  }
 0x147   :  { %3582 = vmatpush1.bf16.msra.mxu1 %v5227_v19  ;;  %v3249_v35 = vpop.f32.mrf.mxu0  ;;  %3542 = vmatprep.subr.bf16.mxu0 %v5232_v24  ;;  %v5289_v17 = vld [vmem:[#allocation5 + $0x38c] ss:$16 sps:$4 sm:$0xff]   ;;  %v5284_v18 = vld [vmem:[#allocation5 + $0x188] ss:$16 sps:$4 sm:$0xff]  }
 0x148   :  { %v3290_v36 = vpop.f32.mrf.mxu1  ;;  %3583 = vmatprep.subr.bf16.mxu1 %v5235_v25  ;;  %v5287_v19 = vld [vmem:[#allocation5 + $0x388] ss:$16 sps:$4 sm:$0xff]   ;;  %v5292_v22 = vld [vmem:[#allocation5 + $0x16c] ss:$16 sps:$4 sm:$0xff]  }
 0x149   :  { %v5295_v23 = vld [vmem:[#allocation5 + $0x36c] ss:$16 sps:$4 sm:$0xff]   ;;  %v5290_v24 = vld [vmem:[#allocation5 + $0x168] ss:$16 sps:$4 sm:$0xff]  }
 0x14a   :  { %3543 = vmatpush1.bf16.msra.mxu0 %v5230_v31  ;;  %v5293_v25 = vld [vmem:[#allocation5 + $0x368] ss:$16 sps:$4 sm:$0xff]   ;;  %v5298_v27 = vld [vmem:[#allocation5 + $0x14c] ss:$16 sps:$4 sm:$0xff]  }
 0x14b   :  { %3584 = vmatpush1.bf16.msra.mxu1 %v5233_v34  ;;  %3544 = vmatprep.subr.bf16.mxu0 %v5238_v38  ;;  %v5301_v28 = vld [vmem:[#allocation5 + $0x34c] ss:$16 sps:$4 sm:$0xff]   ;;  %v5296_v30 = vld [vmem:[#allocation5 + $0x148] ss:$16 sps:$4 sm:$0xff]  }
 0x14c   :  { %3585 = vmatprep.subr.bf16.mxu1 %v5241_v39  ;;  %v5299_v31 = vld [vmem:[#allocation5 + $0x348] ss:$16 sps:$4 sm:$0xff]   ;;  %v5304_v34 = vld [vmem:[#allocation5 + $0x12c] ss:$16 sps:$4 sm:$0xff]  }
 0x14d   :  { %v5307_v35 = vld [vmem:[#allocation5 + $0x32c] ss:$16 sps:$4 sm:$0xff]   ;;  %v5302_v36 = vld [vmem:[#allocation5 + $0x128] ss:$16 sps:$4 sm:$0xff]  }
 0x14e   :  { %3545 = vmatpush1.bf16.msra.mxu0 %v5236_v41  ;;  %v5305_v38 = vld [vmem:[#allocation5 + $0x328] ss:$16 sps:$4 sm:$0xff]   ;;  %v5310_v39 = vld [vmem:[#allocation5 + $0x10c] ss:$16 sps:$4 sm:$0xff]  }
 0x14f   :  { %3586 = vmatpush1.bf16.msra.mxu1 %v5239_v49  ;;  %3546 = vmatprep.subr.bf16.mxu0 %v5244_v52  ;;  %v5313_v41 = vld [vmem:[#allocation5 + $0x30c] ss:$16 sps:$4 sm:$0xff]   ;;  %v5308_v49 = vld [vmem:[#allocation5 + $0x108] ss:$16 sps:$4 sm:$0xff]  }
 0x150   :  { %3587 = vmatprep.subr.bf16.mxu1 %v5247_v44  ;;  %v5311_v52 = vld [vmem:[#allocation5 + $0x308] ss:$16 sps:$4 sm:$0xff]   ;;  %v5316_v44 = vld [vmem:[#allocation5 + $0x4ec] ss:$16 sps:$4 sm:$0xff]  }
 0x152   :  { %3547 = vmatpush1.bf16.msra.mxu0 %v5242_v45  ;;  %v5319_v45 = vld [vmem:[#allocation5 + $0x6ec] ss:$16 sps:$4 sm:$0xff]  }
 0x153   :  { %3588 = vmatpush1.bf16.msra.mxu1 %v5245_v46  ;;  %3548 = vmatprep.subr.bf16.mxu0 %v5250_v47  ;;  %v5314_v46 = vld [vmem:[#allocation5 + $0x4e8] ss:$16 sps:$4 sm:$0xff]  }
 0x154   :  { %3589 = vmatprep.subr.bf16.mxu1 %v5253_v51  ;;  %v5317_v47 = vld [vmem:[#allocation5 + $0x6e8] ss:$16 sps:$4 sm:$0xff]   ;;  %v5322_v51 = vld [vmem:[#allocation5 + $0x4cc] ss:$16 sps:$4 sm:$0xff]  }
 0x156   :  { %3549 = vmatpush1.bf16.msra.mxu0 %v5248_v53  ;;  %v5325_v53 = vld [vmem:[#allocation5 + $0x6cc] ss:$16 sps:$4 sm:$0xff]  }
 0x157   :  { %3590 = vmatpush1.bf16.msra.mxu1 %v5251_v54  ;;  %3550 = vmatprep.subr.bf16.mxu0 %v5256_v55  ;;  %v5320_v54 = vld [vmem:[#allocation5 + $0x4c8] ss:$16 sps:$4 sm:$0xff]  }
 0x158   :  { %3591 = vmatprep.subr.bf16.mxu1 %v5259_v56  ;;  %v5323_v55 = vld [vmem:[#allocation5 + $0x6c8] ss:$16 sps:$4 sm:$0xff]  }
 0x15a   :  { %3551 = vmatpush1.bf16.msra.mxu0 %v5254_v58 }
 0x15b   :  { %3592 = vmatpush1.bf16.msra.mxu1 %v5257_v59  ;;  %3552 = vmatprep.subr.bf16.mxu0 %v5262_v60 }
 0x15c   :  { %3593 = vmatprep.subr.bf16.mxu1 %v5265_v61 }
 0x15e   :  { %3553 = vmatpush1.bf16.msra.mxu0 %v5260_v62  ;;  %v5328_v62 = vld [vmem:[#allocation5 + $0x4ac] ss:$16 sps:$4 sm:$0xff]  }
 0x15f   :  { %3594 = vmatpush1.bf16.msra.mxu1 %v5263_v63  ;;  %3554 = vmatprep.subr.bf16.mxu0 %v5268_v0  ;;  %v5331_v63 = vld [vmem:[#allocation5 + $0x6ac] ss:$16 sps:$4 sm:$0xff]  }
 0x160   :  { %3595 = vmatprep.subr.bf16.mxu1 %v5271_v1 }
 0x162   :  { %3555 = vmatpush2.bf16.msra.mxu0 %v5266_v2  ;;  %v5326_v2 = vld [vmem:[#allocation5 + $0x4a8] ss:$16 sps:$4 sm:$0xff]  }
 0x163   :  { %3596 = vmatpush2.bf16.msra.mxu1 %v5269_v3  ;;  %3556 = vmatprep.subr.bf16.mxu0 %v5274_v4  ;;  %v5329_v3 = vld [vmem:[#allocation5 + $0x6a8] ss:$16 sps:$4 sm:$0xff]  }
 0x164   :  { %3597 = vmatprep.subr.bf16.mxu1 %v5277_v7 }
 0x166   :  { %3557 = vmatpush2.bf16.msra.mxu0 %v5272_v10  ;;  %v5334_v10 = vld [vmem:[#allocation5 + $0x48c] ss:$16 sps:$4 sm:$0xff]  }
 0x167   :  { %3598 = vmatpush2.bf16.msra.mxu1 %v5275_v11  ;;  %3558 = vmatprep.subr.bf16.mxu0 %v5280_v12  ;;  %v5337_v11 = vld [vmem:[#allocation5 + $0x68c] ss:$16 sps:$4 sm:$0xff]   ;;  %v5335_v12 = vld [vmem:[#allocation5 + $0x688] ss:$16 sps:$4 sm:$0xff]  }
 0x168   :  { %3599 = vmatprep.subr.bf16.mxu1 %v5283_v13  ;;  %v5338_v13 = vld [vmem:[#allocation5 + $0x468] ss:$16 sps:$4 sm:$0xff]  }
 0x16a   :  { %3559 = vmatpush2.bf16.msra.mxu0 %v5278_v14  ;;  %v5341_v14 = vld [vmem:[#allocation5 + $0x668] ss:$16 sps:$4 sm:$0xff]  }
 0x16b   :  { %3600 = vmatpush2.bf16.msra.mxu1 %v5281_v15  ;;  %3560 = vmatprep.subr.bf16.mxu0 %v5286_v16  ;;  %v5346_v15 = vld [vmem:[#allocation5 + $0x44c] ss:$16 sps:$4 sm:$0xff]  }
 0x16c   :  { %3601 = vmatprep.subr.bf16.mxu1 %v5289_v17  ;;  %v5349_v16 = vld [vmem:[#allocation5 + $0x64c] ss:$16 sps:$4 sm:$0xff]   ;;  %v5344_v17 = vld [vmem:[#allocation5 + $0x448] ss:$16 sps:$4 sm:$0xff]  }
 0x16e   :  { %3561 = vmatpush2.bf16.msra.mxu0 %v5284_v18  ;;  %v5347_v18 = vld [vmem:[#allocation5 + $0x648] ss:$16 sps:$4 sm:$0xff]  }
 0x16f   :  { %3602 = vmatpush2.bf16.msra.mxu1 %v5287_v19  ;;  %3562 = vmatprep.subr.bf16.mxu0 %v5292_v22  ;;  %v5352_v19 = vld [vmem:[#allocation5 + $0x42c] ss:$16 sps:$4 sm:$0xff]  }
 0x170   :  { %3603 = vmatprep.subr.bf16.mxu1 %v5295_v23  ;;  %v5355_v22 = vld [vmem:[#allocation5 + $0x62c] ss:$16 sps:$4 sm:$0xff]   ;;  %v5350_v23 = vld [vmem:[#allocation5 + $0x428] ss:$16 sps:$4 sm:$0xff]  }
 0x172   :  { %3563 = vmatpush2.bf16.msra.mxu0 %v5290_v24  ;;  %v5353_v24 = vld [vmem:[#allocation5 + $0x628] ss:$16 sps:$4 sm:$0xff]  }
 0x173   :  { %3604 = vmatpush2.bf16.msra.mxu1 %v5293_v25  ;;  %3564 = vmatprep.subr.bf16.mxu0 %v5298_v27  ;;  %v5358_v25 = vld [vmem:[#allocation5 + $0x40c] ss:$16 sps:$4 sm:$0xff]  }
 0x174   :  { %3605 = vmatprep.subr.bf16.mxu1 %v5301_v28  ;;  %v5361_v27 = vld [vmem:[#allocation5 + $0x60c] ss:$16 sps:$4 sm:$0xff]   ;;  %v5356_v28 = vld [vmem:[#allocation5 + $0x408] ss:$16 sps:$4 sm:$0xff]  }
 0x176   :  { %3565 = vmatpush2.bf16.msra.mxu0 %v5296_v30  ;;  %v5359_v30 = vld [vmem:[#allocation5 + $0x608] ss:$16 sps:$4 sm:$0xff]  }
 0x177   :  { %3606 = vmatpush2.bf16.msra.mxu1 %v5299_v31  ;;  %3566 = vmatprep.subr.bf16.mxu0 %v5304_v34  ;;  %v5364_v31 = vld [vmem:[#allocation5 + $0x5ec] ss:$16 sps:$4 sm:$0xff]  }
 0x178   :  { %3607 = vmatprep.subr.bf16.mxu1 %v5307_v35  ;;  %v5367_v34 = vld [vmem:[#allocation5 + $0x7ec] ss:$16 sps:$4 sm:$0xff]   ;;  %v5362_v35 = vld [vmem:[#allocation5 + $0x5e8] ss:$16 sps:$4 sm:$0xff]  }
 0x17a   :  { %3567 = vmatpush2.bf16.msra.mxu0 %v5302_v36  ;;  %v5365_v36 = vld [vmem:[#allocation5 + $0x7e8] ss:$16 sps:$4 sm:$0xff]  }
 0x17b   :  { %3608 = vmatpush2.bf16.msra.mxu1 %v5305_v38  ;;  %3568 = vmatprep.subr.bf16.mxu0 %v5310_v39  ;;  %v5370_v38 = vld [vmem:[#allocation5 + $0x5cc] ss:$16 sps:$4 sm:$0xff]  }
 0x17c   :  { %3609 = vmatprep.subr.bf16.mxu1 %v5313_v41  ;;  %v5373_v39 = vld [vmem:[#allocation5 + $0x7cc] ss:$16 sps:$4 sm:$0xff]   ;;  %v5368_v41 = vld [vmem:[#allocation5 + $0x5c8] ss:$16 sps:$4 sm:$0xff]  }
 0x17e   :  { %3569 = vmatpush2.bf16.msra.mxu0 %v5308_v49  ;;  %v5371_v49 = vld [vmem:[#allocation5 + $0x7c8] ss:$16 sps:$4 sm:$0xff]  }
 0x17f   :  { %3610 = vmatpush2.bf16.msra.mxu1 %v5311_v52  ;;  %3620 = vmatprep.subr.bf16.mxu0 %v5316_v44  ;;  %v5376_v52 = vld [vmem:[#allocation5 + $0x5ac] ss:$16 sps:$4 sm:$0xff]  }
 0x180   :  { %3661 = vmatprep.subr.bf16.mxu1 %v5319_v45  ;;  %v5379_v44 = vld [vmem:[#allocation5 + $0x7ac] ss:$16 sps:$4 sm:$0xff]   ;;  %v5374_v45 = vld [vmem:[#allocation5 + $0x5a8] ss:$16 sps:$4 sm:$0xff]  }
 0x181   :  { %v3326_v56 = vpop.f32.mrf.mxu0  ;;  %3571 = vmatmul.mubr.bf16.vlgmr.msra.gmra.mxu0 %v5824_v8 }
 0x182   :  { %v3367_v58 = vpop.f32.mrf.mxu1  ;;  %3612 = vmatmul.mubr.bf16.vlgmr.msra.gmra.mxu1 %v5826_v9  ;;  %v3327_v59 = vadd.f32 %v3326_v56, %v5870_v26  ;;  %3621 = vmatpush1.bf16.msra.mxu0 %v5314_v46  ;;  %v5377_v46 = vld [vmem:[#allocation5 + $0x7a8] ss:$16 sps:$4 sm:$0xff]   ;;  %v5391_v56 = vld [vmem:[#allocation5 + $0x76c] ss:$16 sps:$4 sm:$0xff]  }
 0x183   :  { %3662 = vmatpush1.bf16.msra.mxu1 %v5317_v47  ;;  %v3328_v60 = vpop.f32.mrf.mxu0  ;;  %3622 = vmatprep.subr.bf16.mxu0 %v5322_v51  ;;  %v5382_v47 = vld [vmem:[#allocation5 + $0x58c] ss:$16 sps:$4 sm:$0xff]  }
 0x184   :  { %v3369_v61 = vpop.f32.mrf.mxu1  ;;  %3663 = vmatprep.subr.bf16.mxu1 %v5325_v53  ;;  %v5879_v0 = vadd.f32 %v3367_v58, %v3327_v59  ;;  %v3329_v1 = vadd.f32 %v3328_v60, %v5874_v33  ;;  %3652 = vmatprep.mubr.bf16.mxu0 %v5830_v37  ;;  %v5332_v33 = vld [vmem:[#allocation5 + $0x488] ss:$16 sps:$4 sm:$0xff]   ;;  %v5340_v37 = vld [vmem:[#allocation5 + $0x46c] ss:$16 sps:$4 sm:$0xff]  }
 0x185   :  { %3693 = vmatprep.mubr.bf16.mxu1 %v5832_v40  ;;  %v3330_v8 = vpop.f32.mrf.mxu0  ;;  %v5343_v40 = vld [vmem:[#allocation5 + $0x66c] ss:$16 sps:$4 sm:$0xff]   ;;  %v5380_v53 = vld [vmem:[#allocation5 + $0x588] ss:$16 sps:$4 sm:$0xff]  }
 0x186   :  { %v3371_v9 = vpop.f32.mrf.mxu1  ;;  %v5884_v26 = vadd.f32 %v3369_v61, %v3329_v1  ;;  %3623 = vmatpush1.bf16.msra.mxu0 %v5320_v54  ;;  %v5385_v51 = vld [vmem:[#allocation5 + $0x78c] ss:$16 sps:$4 sm:$0xff]   ;;  %v5383_v54 = vld [vmem:[#allocation5 + $0x788] ss:$16 sps:$4 sm:$0xff]  }
 0x187   :  { %3664 = vmatpush1.bf16.msra.mxu1 %v5323_v55  ;;  %v3331_v4 = vpop.f32.mrf.mxu0  ;;  %3624 = vmatprep.subr.bf16.mxu0 %v5328_v62  ;;  %v5388_v55 = vld [vmem:[#allocation5 + $0x56c] ss:$16 sps:$4 sm:$0xff]   ;;  %v5386_v58 = vld [vmem:[#allocation5 + $0x568] ss:$16 sps:$4 sm:$0xff]  }
 0x188   :  { %v3372_v7 = vpop.f32.mrf.mxu1  ;;  %3665 = vmatprep.subr.bf16.mxu1 %v5331_v63  ;;  %v5389_v59 = vld [vmem:[#allocation5 + $0x768] ss:$16 sps:$4 sm:$0xff]   ;;  %v5394_v60 = vld [vmem:[#allocation5 + $0x54c] ss:$16 sps:$4 sm:$0xff]  }
 0x189   :  { %v5397_v61 = vld [vmem:[#allocation5 + $0x74c] ss:$16 sps:$4 sm:$0xff]   ;;  %v5392_v62 = vld [vmem:[#allocation5 + $0x548] ss:$16 sps:$4 sm:$0xff]  }
 0x18a   :  { %3625 = vmatpush1.bf16.msra.mxu0 %v5326_v2  ;;  %v5395_v63 = vld [vmem:[#allocation5 + $0x748] ss:$16 sps:$4 sm:$0xff]   ;;  %v5400_v1 = vld [vmem:[#allocation5 + $0x52c] ss:$16 sps:$4 sm:$0xff]  }
 0x18b   :  { %3666 = vmatpush1.bf16.msra.mxu1 %v5329_v3  ;;  %3626 = vmatprep.subr.bf16.mxu0 %v5334_v10  ;;  %v5403_v2 = vld [vmem:[#allocation5 + $0x72c] ss:$16 sps:$4 sm:$0xff]   ;;  %v5398_v3 = vld [vmem:[#allocation5 + $0x528] ss:$16 sps:$4 sm:$0xff]  }
 0x18c   :  { %3667 = vmatprep.subr.bf16.mxu1 %v5337_v11  ;;  %v5401_v8 = vld [vmem:[#allocation5 + $0x728] ss:$16 sps:$4 sm:$0xff]   ;;  %v5406_v9 = vld [vmem:[#allocation5 + $0x50c] ss:$16 sps:$4 sm:$0xff]  }
 0x18d   :  { %v5409_v4 = vld [vmem:[#allocation5 + $0x70c] ss:$16 sps:$4 sm:$0xff]   ;;  %v5404_v7 = vld [vmem:[#allocation5 + $0x508] ss:$16 sps:$4 sm:$0xff]  }
 0x18e   :  { %3627 = vmatpush1.bf16.msra.mxu0 %v5332_v33  ;;  %v5407_v10 = vld [vmem:[#allocation5 + $0x708] ss:$16 sps:$4 sm:$0xff]   ;;  %v5412_v11 = vld [vmem:[#allocation5 + $0x8ec] ss:$16 sps:$4 sm:$0xff]  }
 0x18f   :  { %3668 = vmatpush1.bf16.msra.mxu1 %v5335_v12  ;;  %3628 = vmatprep.subr.bf16.mxu0 %v5340_v37  ;;  %v5415_v33 = vld [vmem:[#allocation5 + $0xaec] ss:$16 sps:$4 sm:$0xff]   ;;  %v5410_v12 = vld [vmem:[#allocation5 + $0x8e8] ss:$16 sps:$4 sm:$0xff]  }
 0x190   :  { %3669 = vmatprep.subr.bf16.mxu1 %v5343_v40  ;;  %v5413_v37 = vld [vmem:[#allocation5 + $0xae8] ss:$16 sps:$4 sm:$0xff]   ;;  %v5418_v40 = vld [vmem:[#allocation5 + $0x8cc] ss:$16 sps:$4 sm:$0xff]  }
 0x192   :  { %3629 = vmatpush1.bf16.msra.mxu0 %v5338_v13  ;;  %v5421_v13 = vld [vmem:[#allocation5 + $0xacc] ss:$16 sps:$4 sm:$0xff]  }
 0x193   :  { %3670 = vmatpush1.bf16.msra.mxu1 %v5341_v14  ;;  %3630 = vmatprep.subr.bf16.mxu0 %v5346_v15 }
 0x194   :  { %3671 = vmatprep.subr.bf16.mxu1 %v5349_v16 }
 0x196   :  { %3631 = vmatpush1.bf16.msra.mxu0 %v5344_v17  ;;  %v5416_v17 = vld [vmem:[#allocation5 + $0x8c8] ss:$16 sps:$4 sm:$0xff]  }
 0x197   :  { %3672 = vmatpush1.bf16.msra.mxu1 %v5347_v18  ;;  %3632 = vmatprep.subr.bf16.mxu0 %v5352_v19  ;;  %v5419_v18 = vld [vmem:[#allocation5 + $0xac8] ss:$16 sps:$4 sm:$0xff]  }
 0x198   :  { %3673 = vmatprep.subr.bf16.mxu1 %v5355_v22 }
 0x19a   :  { %3633 = vmatpush1.bf16.msra.mxu0 %v5350_v23  ;;  %v5424_v23 = vld [vmem:[#allocation5 + $0x8ac] ss:$16 sps:$4 sm:$0xff]  }
 0x19b   :  { %3674 = vmatpush1.bf16.msra.mxu1 %v5353_v24  ;;  %3634 = vmatprep.subr.bf16.mxu0 %v5358_v25  ;;  %v5427_v24 = vld [vmem:[#allocation5 + $0xaac] ss:$16 sps:$4 sm:$0xff]  }
 0x19c   :  { %3675 = vmatprep.subr.bf16.mxu1 %v5361_v27 }
 0x19e   :  { %3635 = vmatpush1.bf16.msra.mxu0 %v5356_v28  ;;  %v5422_v28 = vld [vmem:[#allocation5 + $0x8a8] ss:$16 sps:$4 sm:$0xff]  }
 0x19f   :  { %3676 = vmatpush1.bf16.msra.mxu1 %v5359_v30  ;;  %3636 = vmatprep.subr.bf16.mxu0 %v5364_v31  ;;  %v5425_v30 = vld [vmem:[#allocation5 + $0xaa8] ss:$16 sps:$4 sm:$0xff]  }
 0x1a0   :  { %3677 = vmatprep.subr.bf16.mxu1 %v5367_v34 }
 0x1a2   :  { %3637 = vmatpush2.bf16.msra.mxu0 %v5362_v35  ;;  %v5430_v35 = vld [vmem:[#allocation5 + $0x88c] ss:$16 sps:$4 sm:$0xff]  }
 0x1a3   :  { %3678 = vmatpush2.bf16.msra.mxu1 %v5365_v36  ;;  %3638 = vmatprep.subr.bf16.mxu0 %v5370_v38  ;;  %v5433_v36 = vld [vmem:[#allocation5 + $0xa8c] ss:$16 sps:$4 sm:$0xff]  }
 0x1a4   :  { %3679 = vmatprep.subr.bf16.mxu1 %v5373_v39  ;;  %v5439_v38 = vld [vmem:[#allocation5 + $0xa6c] ss:$16 sps:$4 sm:$0xff]   ;;  %v5434_v39 = vld [vmem:[#allocation5 + $0x868] ss:$16 sps:$4 sm:$0xff]  }
 0x1a6   :  { %3639 = vmatpush2.bf16.msra.mxu0 %v5368_v41  ;;  %v5437_v41 = vld [vmem:[#allocation5 + $0xa68] ss:$16 sps:$4 sm:$0xff]  }
 0x1a7   :  { %3680 = vmatpush2.bf16.msra.mxu1 %v5371_v49  ;;  %3640 = vmatprep.subr.bf16.mxu0 %v5376_v52  ;;  %v5442_v49 = vld [vmem:[#allocation5 + $0x84c] ss:$16 sps:$4 sm:$0xff]  }
 0x1a8   :  { %3681 = vmatprep.subr.bf16.mxu1 %v5379_v44  ;;  %v5445_v52 = vld [vmem:[#allocation5 + $0xa4c] ss:$16 sps:$4 sm:$0xff]   ;;  %v5440_v44 = vld [vmem:[#allocation5 + $0x848] ss:$16 sps:$4 sm:$0xff]  }
 0x1aa   :  { %3641 = vmatpush2.bf16.msra.mxu0 %v5374_v45  ;;  %v5443_v45 = vld [vmem:[#allocation5 + $0xa48] ss:$16 sps:$4 sm:$0xff]  }
 0x1ab   :  { %3682 = vmatpush2.bf16.msra.mxu1 %v5377_v46  ;;  %3642 = vmatprep.subr.bf16.mxu0 %v5382_v47  ;;  %v5448_v46 = vld [vmem:[#allocation5 + $0x82c] ss:$16 sps:$4 sm:$0xff]  }
 0x1ac   :  { %3683 = vmatprep.subr.bf16.mxu1 %v5385_v51  ;;  %v5451_v47 = vld [vmem:[#allocation5 + $0xa2c] ss:$16 sps:$4 sm:$0xff]   ;;  %v5446_v51 = vld [vmem:[#allocation5 + $0x828] ss:$16 sps:$4 sm:$0xff]  }
 0x1ae   :  { %3643 = vmatpush2.bf16.msra.mxu0 %v5380_v53  ;;  %v5449_v53 = vld [vmem:[#allocation5 + $0xa28] ss:$16 sps:$4 sm:$0xff]  }
 0x1af   :  { %3684 = vmatpush2.bf16.msra.mxu1 %v5383_v54  ;;  %3644 = vmatprep.subr.bf16.mxu0 %v5388_v55  ;;  %v5454_v54 = vld [vmem:[#allocation5 + $0x80c] ss:$16 sps:$4 sm:$0xff]  }
 0x1b0   :  { %3685 = vmatprep.subr.bf16.mxu1 %v5391_v56  ;;  %v5457_v55 = vld [vmem:[#allocation5 + $0xa0c] ss:$16 sps:$4 sm:$0xff]   ;;  %v5452_v56 = vld [vmem:[#allocation5 + $0x808] ss:$16 sps:$4 sm:$0xff]  }
 0x1b2   :  { %3645 = vmatpush2.bf16.msra.mxu0 %v5386_v58  ;;  %v5455_v58 = vld [vmem:[#allocation5 + $0xa08] ss:$16 sps:$4 sm:$0xff]  }
 0x1b3   :  { %3686 = vmatpush2.bf16.msra.mxu1 %v5389_v59  ;;  %3646 = vmatprep.subr.bf16.mxu0 %v5394_v60  ;;  %v5460_v59 = vld [vmem:[#allocation5 + $0x9ec] ss:$16 sps:$4 sm:$0xff]  }
 0x1b4   :  { %3687 = vmatprep.subr.bf16.mxu1 %v5397_v61  ;;  %v5463_v60 = vld [vmem:[#allocation5 + $0xbec] ss:$16 sps:$4 sm:$0xff]   ;;  %v5458_v61 = vld [vmem:[#allocation5 + $0x9e8] ss:$16 sps:$4 sm:$0xff]  }
 0x1b6   :  { %3647 = vmatpush2.bf16.msra.mxu0 %v5392_v62  ;;  %v5461_v62 = vld [vmem:[#allocation5 + $0xbe8] ss:$16 sps:$4 sm:$0xff]  }
 0x1b7   :  { %3688 = vmatpush2.bf16.msra.mxu1 %v5395_v63  ;;  %3648 = vmatprep.subr.bf16.mxu0 %v5400_v1  ;;  %v5466_v63 = vld [vmem:[#allocation5 + $0x9cc] ss:$16 sps:$4 sm:$0xff]  }
 0x1b8   :  { %3689 = vmatprep.subr.bf16.mxu1 %v5403_v2  ;;  %v5469_v1 = vld [vmem:[#allocation5 + $0xbcc] ss:$16 sps:$4 sm:$0xff]   ;;  %v5464_v2 = vld [vmem:[#allocation5 + $0x9c8] ss:$16 sps:$4 sm:$0xff]  }
 0x1ba   :  { %3649 = vmatpush2.bf16.msra.mxu0 %v5398_v3  ;;  %v5467_v3 = vld [vmem:[#allocation5 + $0xbc8] ss:$16 sps:$4 sm:$0xff]  }
 0x1bb   :  { %3690 = vmatpush2.bf16.msra.mxu1 %v5401_v8  ;;  %3650 = vmatprep.subr.bf16.mxu0 %v5406_v9  ;;  %v5472_v8 = vld [vmem:[#allocation5 + $0x9ac] ss:$16 sps:$4 sm:$0xff]  }
 0x1bc   :  { %3691 = vmatprep.subr.bf16.mxu1 %v5409_v4  ;;  %v5475_v9 = vld [vmem:[#allocation5 + $0xbac] ss:$16 sps:$4 sm:$0xff]   ;;  %v5470_v4 = vld [vmem:[#allocation5 + $0x9a8] ss:$16 sps:$4 sm:$0xff]  }
 0x1be   :  { %3651 = vmatpush2.bf16.msra.mxu0 %v5404_v7  ;;  %v5473_v7 = vld [vmem:[#allocation5 + $0xba8] ss:$16 sps:$4 sm:$0xff]  }
 0x1bf   :  { %3692 = vmatpush2.bf16.msra.mxu1 %v5407_v10  ;;  %3702 = vmatprep.subr.bf16.mxu0 %v5412_v11  ;;  %v5478_v10 = vld [vmem:[#allocation5 + $0x98c] ss:$16 sps:$4 sm:$0xff]  }
 0x1c0   :  { %3743 = vmatprep.subr.bf16.mxu1 %v5415_v33  ;;  %v5481_v11 = vld [vmem:[#allocation5 + $0xb8c] ss:$16 sps:$4 sm:$0xff]   ;;  %v5476_v33 = vld [vmem:[#allocation5 + $0x988] ss:$16 sps:$4 sm:$0xff]  }
 0x1c1   :  { %v3408_v14 = vpop.f32.mrf.mxu0  ;;  %3653 = vmatmul.mubr.bf16.vlgmr.msra.gmra.mxu0 %v5836_v20 }
 0x1c2   :  { %v3449_v15 = vpop.f32.mrf.mxu1  ;;  %3694 = vmatmul.mubr.bf16.vlgmr.msra.gmra.mxu1 %v5838_v21  ;;  %v3409_v16 = vadd.f32 %v3408_v14, %v5879_v0  ;;  %3703 = vmatpush1.bf16.msra.mxu0 %v5410_v12  ;;  %v5479_v12 = vld [vmem:[#allocation5 + $0xb88] ss:$16 sps:$4 sm:$0xff]  }
 0x1c3   :  { %3744 = vmatpush1.bf16.msra.mxu1 %v5413_v37  ;;  %v3410_v19 = vpop.f32.mrf.mxu0  ;;  %3704 = vmatprep.subr.bf16.mxu0 %v5418_v40  ;;  %v5484_v37 = vld [vmem:[#allocation5 + $0x96c] ss:$16 sps:$4 sm:$0xff]   ;;  %v5485_v14 = vld [vmem:[#allocation5 + $0xb68] ss:$16 sps:$4 sm:$0xff]  }
 0x1c4   :  { %v3451_v22 = vpop.f32.mrf.mxu1  ;;  %3745 = vmatprep.subr.bf16.mxu1 %v5421_v13  ;;  %v5889_v25 = vadd.f32 %v3449_v15, %v3409_v16  ;;  %v3411_v27 = vadd.f32 %v3410_v19, %v5884_v26  ;;  %3734 = vmatprep.mubr.bf16.mxu0 %v5842_v29  ;;  %v5428_v26 = vld [vmem:[#allocation5 + $0x888] ss:$16 sps:$4 sm:$0xff]   ;;  %v5487_v40 = vld [vmem:[#allocation5 + $0xb6c] ss:$16 sps:$4 sm:$0xff]  }
 0x1c5   :  { %3775 = vmatprep.mubr.bf16.mxu1 %v5844_v32  ;;  %v3412_v20 = vpop.f32.mrf.mxu0  ;;  %v5431_v29 = vld [vmem:[#allocation5 + $0xa88] ss:$16 sps:$4 sm:$0xff]   ;;  %v5436_v32 = vld [vmem:[#allocation5 + $0x86c] ss:$16 sps:$4 sm:$0xff]  }
 0x1c6   :  { %v3453_v21 = vpop.f32.mrf.mxu1  ;;  %v5894_v0 = vadd.f32 %v3451_v22, %v3411_v27  ;;  %3705 = vmatpush1.bf16.msra.mxu0 %v5416_v17  ;;  %v5482_v13 = vld [vmem:[#allocation5 + $0x968] ss:$16 sps:$4 sm:$0xff]   ;;  %v5490_v15 = vld [vmem:[#allocation5 + $0x94c] ss:$16 sps:$4 sm:$0xff]  }
 0x1c7   :  { %3746 = vmatpush1.bf16.msra.mxu1 %v5419_v18  ;;  %v3413_v31 = vpop.f32.mrf.mxu0  ;;  %3706 = vmatprep.subr.bf16.mxu0 %v5424_v23  ;;  %v5493_v16 = vld [vmem:[#allocation5 + $0xb4c] ss:$16 sps:$4 sm:$0xff]   ;;  %v5488_v17 = vld [vmem:[#allocation5 + $0x948] ss:$16 sps:$4 sm:$0xff]  }
 0x1c8   :  { %v3454_v34 = vpop.f32.mrf.mxu1  ;;  %3747 = vmatprep.subr.bf16.mxu1 %v5427_v24  ;;  %v5491_v18 = vld [vmem:[#allocation5 + $0xb48] ss:$16 sps:$4 sm:$0xff]   ;;  %v5496_v19 = vld [vmem:[#allocation5 + $0x92c] ss:$16 sps:$4 sm:$0xff]  }
 0x1c9   :  { %v5499_v22 = vld [vmem:[#allocation5 + $0xb2c] ss:$16 sps:$4 sm:$0xff]   ;;  %v5494_v23 = vld [vmem:[#allocation5 + $0x928] ss:$16 sps:$4 sm:$0xff]  }
 0x1ca   :  { %3707 = vmatpush1.bf16.msra.mxu0 %v5422_v28  ;;  %v5497_v24 = vld [vmem:[#allocation5 + $0xb28] ss:$16 sps:$4 sm:$0xff]   ;;  %v5502_v27 = vld [vmem:[#allocation5 + $0x90c] ss:$16 sps:$4 sm:$0xff]  }
 0x1cb   :  { %3748 = vmatpush1.bf16.msra.mxu1 %v5425_v30  ;;  %3708 = vmatprep.subr.bf16.mxu0 %v5430_v35  ;;  %v5505_v20 = vld [vmem:[#allocation5 + $0xb0c] ss:$16 sps:$4 sm:$0xff]   ;;  %v5500_v21 = vld [vmem:[#allocation5 + $0x908] ss:$16 sps:$4 sm:$0xff]  }
 0x1cc   :  { %3749 = vmatprep.subr.bf16.mxu1 %v5433_v36  ;;  %v5503_v28 = vld [vmem:[#allocation5 + $0xb08] ss:$16 sps:$4 sm:$0xff]   ;;  %v5508_v30 = vld [vmem:[#allocation5 + $0xcec] ss:$16 sps:$4 sm:$0xff]  }
 0x1cd   :  { %v5511_v31 = vld [vmem:[#allocation5 + $0xeec] ss:$16 sps:$4 sm:$0xff]   ;;  %v5506_v34 = vld [vmem:[#allocation5 + $0xce8] ss:$16 sps:$4 sm:$0xff]  }
 0x1ce   :  { %3709 = vmatpush1.bf16.msra.mxu0 %v5428_v26  ;;  %v5509_v35 = vld [vmem:[#allocation5 + $0xee8] ss:$16 sps:$4 sm:$0xff]   ;;  %v5514_v36 = vld [vmem:[#allocation5 + $0xccc] ss:$16 sps:$4 sm:$0xff]  }
 0x1cf   :  { %3750 = vmatpush1.bf16.msra.mxu1 %v5431_v29  ;;  %3710 = vmatprep.subr.bf16.mxu0 %v5436_v32  ;;  %v5517_v26 = vld [vmem:[#allocation5 + $0xecc] ss:$16 sps:$4 sm:$0xff]  }
 0x1d0   :  { %3751 = vmatprep.subr.bf16.mxu1 %v5439_v38 }
 0x1d2   :  { %3711 = vmatpush1.bf16.msra.mxu0 %v5434_v39  ;;  %v5512_v39 = vld [vmem:[#allocation5 + $0xcc8] ss:$16 sps:$4 sm:$0xff]  }
 0x1d3   :  { %3752 = vmatpush1.bf16.msra.mxu1 %v5437_v41  ;;  %3712 = vmatprep.subr.bf16.mxu0 %v5442_v49  ;;  %v5515_v41 = vld [vmem:[#allocation5 + $0xec8] ss:$16 sps:$4 sm:$0xff]  }
 0x1d4   :  { %3753 = vmatprep.subr.bf16.mxu1 %v5445_v52 }
 0x1d6   :  { %3713 = vmatpush1.bf16.msra.mxu0 %v5440_v44  ;;  %v5520_v44 = vld [vmem:[#allocation5 + $0xcac] ss:$16 sps:$4 sm:$0xff]  }
 0x1d7   :  { %3754 = vmatpush1.bf16.msra.mxu1 %v5443_v45  ;;  %3714 = vmatprep.subr.bf16.mxu0 %v5448_v46  ;;  %v5523_v45 = vld [vmem:[#allocation5 + $0xeac] ss:$16 sps:$4 sm:$0xff]  }
 0x1d8   :  { %3755 = vmatprep.subr.bf16.mxu1 %v5451_v47  ;;  %v5521_v47 = vld [vmem:[#allocation5 + $0xea8] ss:$16 sps:$4 sm:$0xff]  }
 0x1da   :  { %3715 = vmatpush1.bf16.msra.mxu0 %v5446_v51 }
 0x1db   :  { %3756 = vmatpush1.bf16.msra.mxu1 %v5449_v53  ;;  %3716 = vmatprep.subr.bf16.mxu0 %v5454_v54  ;;  %v5526_v54 = vld [vmem:[#allocation5 + $0xc8c] ss:$16 sps:$4 sm:$0xff]  }
 0x1dc   :  { %3757 = vmatprep.subr.bf16.mxu1 %v5457_v55  ;;  %v5529_v55 = vld [vmem:[#allocation5 + $0xe8c] ss:$16 sps:$4 sm:$0xff]  }
 0x1de   :  { %3717 = vmatpush1.bf16.msra.mxu0 %v5452_v56  ;;  %v5524_v56 = vld [vmem:[#allocation5 + $0xc88] ss:$16 sps:$4 sm:$0xff]  }
 0x1df   :  { %3758 = vmatpush1.bf16.msra.mxu1 %v5455_v58  ;;  %3718 = vmatprep.subr.bf16.mxu0 %v5460_v59  ;;  %v5527_v58 = vld [vmem:[#allocation5 + $0xe88] ss:$16 sps:$4 sm:$0xff]  }
 0x1e0   :  { %3759 = vmatprep.subr.bf16.mxu1 %v5463_v60  ;;  %v5530_v59 = vld [vmem:[#allocation5 + $0xc68] ss:$16 sps:$4 sm:$0xff]  }
 0x1e1   :  { %v5533_v60 = vld [vmem:[#allocation5 + $0xe68] ss:$16 sps:$4 sm:$0xff]  }
 0x1e2   :  { %3719 = vmatpush2.bf16.msra.mxu0 %v5458_v61  ;;  %v5538_v61 = vld [vmem:[#allocation5 + $0xc4c] ss:$16 sps:$4 sm:$0xff]  }
 0x1e3   :  { %3760 = vmatpush2.bf16.msra.mxu1 %v5461_v62  ;;  %3720 = vmatprep.subr.bf16.mxu0 %v5466_v63  ;;  %v5541_v62 = vld [vmem:[#allocation5 + $0xe4c] ss:$16 sps:$4 sm:$0xff]   ;;  %v5536_v63 = vld [vmem:[#allocation5 + $0xc48] ss:$16 sps:$4 sm:$0xff]  }
 0x1e4   :  { %3761 = vmatprep.subr.bf16.mxu1 %v5469_v1  ;;  %v5539_v1 = vld [vmem:[#allocation5 + $0xe48] ss:$16 sps:$4 sm:$0xff]  }
 0x1e6   :  { %3721 = vmatpush2.bf16.msra.mxu0 %v5464_v2  ;;  %v5544_v2 = vld [vmem:[#allocation5 + $0xc2c] ss:$16 sps:$4 sm:$0xff]  }
 0x1e7   :  { %3762 = vmatpush2.bf16.msra.mxu1 %v5467_v3  ;;  %3722 = vmatprep.subr.bf16.mxu0 %v5472_v8  ;;  %v5547_v3 = vld [vmem:[#allocation5 + $0xe2c] ss:$16 sps:$4 sm:$0xff]   ;;  %v5542_v8 = vld [vmem:[#allocation5 + $0xc28] ss:$16 sps:$4 sm:$0xff]  }
 0x1e8   :  { %3763 = vmatprep.subr.bf16.mxu1 %v5475_v9  ;;  %v5545_v9 = vld [vmem:[#allocation5 + $0xe28] ss:$16 sps:$4 sm:$0xff]  }
 0x1ea   :  { %3723 = vmatpush2.bf16.msra.mxu0 %v5470_v4  ;;  %v5550_v4 = vld [vmem:[#allocation5 + $0xc0c] ss:$16 sps:$4 sm:$0xff]  }
 0x1eb   :  { %3764 = vmatpush2.bf16.msra.mxu1 %v5473_v7  ;;  %3724 = vmatprep.subr.bf16.mxu0 %v5478_v10  ;;  %v5553_v7 = vld [vmem:[#allocation5 + $0xe0c] ss:$16 sps:$4 sm:$0xff]   ;;  %v5548_v10 = vld [vmem:[#allocation5 + $0xc08] ss:$16 sps:$4 sm:$0xff]  }
 0x1ec   :  { %3765 = vmatprep.subr.bf16.mxu1 %v5481_v11  ;;  %v5551_v11 = vld [vmem:[#allocation5 + $0xe08] ss:$16 sps:$4 sm:$0xff]  }
 0x1ee   :  { %3725 = vmatpush2.bf16.msra.mxu0 %v5476_v33  ;;  %v5556_v33 = vld [vmem:[#allocation5 + $0xdec] ss:$16 sps:$4 sm:$0xff]  }
 0x1ef   :  { %3766 = vmatpush2.bf16.msra.mxu1 %v5479_v12  ;;  %3726 = vmatprep.subr.bf16.mxu0 %v5484_v37  ;;  %v5559_v12 = vld [vmem:[#allocation5 + $0xfec] ss:$16 sps:$4 sm:$0xff]   ;;  %v5554_v37 = vld [vmem:[#allocation5 + $0xde8] ss:$16 sps:$4 sm:$0xff]  }
 0x1f0   :  { %3767 = vmatprep.subr.bf16.mxu1 %v5487_v40  ;;  %v5557_v40 = vld [vmem:[#allocation5 + $0xfe8] ss:$16 sps:$4 sm:$0xff]  }
 0x1f2   :  { %3727 = vmatpush2.bf16.msra.mxu0 %v5482_v13  ;;  %v5562_v13 = vld [vmem:[#allocation5 + $0xdcc] ss:$16 sps:$4 sm:$0xff]  }
 0x1f3   :  { %3768 = vmatpush2.bf16.msra.mxu1 %v5485_v14  ;;  %3728 = vmatprep.subr.bf16.mxu0 %v5490_v15  ;;  %v5565_v14 = vld [vmem:[#allocation5 + $0xfcc] ss:$16 sps:$4 sm:$0xff]   ;;  %v5560_v15 = vld [vmem:[#allocation5 + $0xdc8] ss:$16 sps:$4 sm:$0xff]  }
 0x1f4   :  { %3769 = vmatprep.subr.bf16.mxu1 %v5493_v16  ;;  %v5563_v16 = vld [vmem:[#allocation5 + $0xfc8] ss:$16 sps:$4 sm:$0xff]  }
 0x1f6   :  { %3729 = vmatpush2.bf16.msra.mxu0 %v5488_v17  ;;  %v5568_v17 = vld [vmem:[#allocation5 + $0xdac] ss:$16 sps:$4 sm:$0xff]  }
 0x1f7   :  { %3770 = vmatpush2.bf16.msra.mxu1 %v5491_v18  ;;  %3730 = vmatprep.subr.bf16.mxu0 %v5496_v19  ;;  %v5571_v18 = vld [vmem:[#allocation5 + $0xfac] ss:$16 sps:$4 sm:$0xff]   ;;  %v5566_v19 = vld [vmem:[#allocation5 + $0xda8] ss:$16 sps:$4 sm:$0xff]  }
 0x1f8   :  { %3771 = vmatprep.subr.bf16.mxu1 %v5499_v22  ;;  %v5569_v22 = vld [vmem:[#allocation5 + $0xfa8] ss:$16 sps:$4 sm:$0xff]  }
 0x1fa   :  { %3731 = vmatpush2.bf16.msra.mxu0 %v5494_v23  ;;  %v5574_v23 = vld [vmem:[#allocation5 + $0xd8c] ss:$16 sps:$4 sm:$0xff]  }
 0x1fb   :  { %3772 = vmatpush2.bf16.msra.mxu1 %v5497_v24  ;;  %3732 = vmatprep.subr.bf16.mxu0 %v5502_v27  ;;  %v5577_v24 = vld [vmem:[#allocation5 + $0xf8c] ss:$16 sps:$4 sm:$0xff]   ;;  %v5572_v27 = vld [vmem:[#allocation5 + $0xd88] ss:$16 sps:$4 sm:$0xff]  }
 0x1fc   :  { %3773 = vmatprep.subr.bf16.mxu1 %v5505_v20  ;;  %v5575_v20 = vld [vmem:[#allocation5 + $0xf88] ss:$16 sps:$4 sm:$0xff]  }
 0x1fe   :  { %3733 = vmatpush2.bf16.msra.mxu0 %v5500_v21  ;;  %v5580_v21 = vld [vmem:[#allocation5 + $0xd6c] ss:$16 sps:$4 sm:$0xff]  }
 0x1ff   :  { %3774 = vmatpush2.bf16.msra.mxu1 %v5503_v28  ;;  %3784 = vmatprep.subr.bf16.mxu0 %v5508_v30  ;;  %v5583_v28 = vld [vmem:[#allocation5 + $0xf6c] ss:$16 sps:$4 sm:$0xff]   ;;  %v5578_v30 = vld [vmem:[#allocation5 + $0xd68] ss:$16 sps:$4 sm:$0xff]  }
 0x200   :  { %3825 = vmatprep.subr.bf16.mxu1 %v5511_v31  ;;  %v5581_v31 = vld [vmem:[#allocation5 + $0xf68] ss:$16 sps:$4 sm:$0xff]  }
 0x201   :  { %v3490_v29 = vpop.f32.mrf.mxu0  ;;  %3735 = vmatmul.mubr.bf16.vlgmr.msra.gmra.mxu0 %v5848_v42 }
 0x202   :  { %v3531_v32 = vpop.f32.mrf.mxu1  ;;  %3776 = vmatmul.mubr.bf16.vlgmr.msra.gmra.mxu1 %v5850_v43  ;;  %v3491_v38 = vadd.f32 %v3490_v29, %v5889_v25  ;;  %3785 = vmatpush1.bf16.msra.mxu0 %v5506_v34  ;;  %v5518_v25 = vld [vmem:[#allocation5 + $0xca8] ss:$16 sps:$4 sm:$0xff]   ;;  %v5586_v34 = vld [vmem:[#allocation5 + $0xd4c] ss:$16 sps:$4 sm:$0xff]  }
 0x203   :  { %3826 = vmatpush1.bf16.msra.mxu1 %v5509_v35  ;;  %v5899_v49 = vpop.f32.mrf.mxu0  ;;  %3786 = vmatprep.subr.bf16.mxu0 %v5514_v36  ;;  %v5589_v35 = vld [vmem:[#allocation5 + $0xf4c] ss:$16 sps:$4 sm:$0xff]   ;;  %v5584_v36 = vld [vmem:[#allocation5 + $0xd48] ss:$16 sps:$4 sm:$0xff]  }
 0x204   :  { %v5901_v52 = vpop.f32.mrf.mxu1  ;;  %3827 = vmatprep.subr.bf16.mxu1 %v5517_v26  ;;  %v5903_v46 = vadd.f32 %v3531_v32, %v3491_v38  ;;  %3816 = vmatprep.mubr.bf16.mxu0 %v5852_v48  ;;  %v5532_v48 = vld [vmem:[#allocation5 + $0xc6c] ss:$16 sps:$4 sm:$0xff]   ;;  %v5587_v26 = vld [vmem:[#allocation5 + $0xf48] ss:$16 sps:$4 sm:$0xff]   ;;  %v3493_v38 = vadd.f32 %v5899_v49, %v5894_v0  ;;  %v644_v49 = vsub.s32 3, %v5860_v57 }
 0x205   :  { %3857 = vmatprep.mubr.bf16.mxu1 %v5854_v50  ;;  %v3494_v42 = vpop.f32.mrf.mxu0  ;;  %v5535_v50 = vld [vmem:[#allocation5 + $0xe6c] ss:$16 sps:$4 sm:$0xff]  }
 0x206   :  { %v3535_v43 = vpop.f32.mrf.mxu1  ;;  %3787 = vmatpush1.bf16.msra.mxu0 %v5512_v39  ;;  %v5592_v29 = vld [vmem:[#allocation5 + $0xd2c] ss:$16 sps:$4 sm:$0xff]   ;;  %v5590_v39 = vld [vmem:[#allocation5 + $0xd28] ss:$16 sps:$4 sm:$0xff]   ;;  %v3534_v42 = vadd.f32 %v5901_v52, %v3493_v38 }
 0x207   :  { %3828 = vmatpush1.bf16.msra.mxu1 %v5515_v41  ;;  %v3495_v51 = vpop.f32.mrf.mxu0  ;;  %3788 = vmatprep.subr.bf16.mxu0 %v5520_v44  ;;  %v5595_v32 = vld [vmem:[#allocation5 + $0xf2c] ss:$16 sps:$4 sm:$0xff]   ;;  %v5593_v41 = vld [vmem:[#allocation5 + $0xf28] ss:$16 sps:$4 sm:$0xff]  }
 0x208   :  { %v3536_v53 = vpop.f32.mrf.mxu1  ;;  %3829 = vmatprep.subr.bf16.mxu1 %v5523_v45  ;;  %v5598_v44 = vld [vmem:[#allocation5 + $0xd0c] ss:$16 sps:$4 sm:$0xff]   ;;  %v5596_v43 = vld [vmem:[#allocation5 + $0xd08] ss:$16 sps:$4 sm:$0xff]   ;;  %v3867_v0 = vmax.f32 %v3534_v42, 0.0 }
 0x209   :  { %v5601_v45 = vld [vmem:[#allocation5 + $0xf0c] ss:$16 sps:$4 sm:$0xff]   ;;  %v5634_v53 = vld [vmem:[#allocation7] sm:$0xf] }
 0x20a   :  { %3789 = vmatpush1.bf16.msra.mxu0 %v5518_v25  ;;  %v5599_v25 = vld [vmem:[#allocation5 + $0xf08] ss:$16 sps:$4 sm:$0xff]   ;;  %v5602_v51 = vld [vmem:[#allocation8 + $0x78] sm:$0xff]   ;;  %v3871_v52 = vpack.c.bf16 %v3867_v0, %v3867_v0 }
 0x20b   :  { %3830 = vmatpush1.bf16.msra.mxu1 %v5521_v47  ;;  %3790 = vmatprep.subr.bf16.mxu0 %v5526_v54  ;;  %v640_v47 = vsub.s32 2, %v5860_v57 }
 0x20c   :  { %3831 = vmatprep.subr.bf16.mxu1 %v5529_v55  ;;  %v5603_v55 = vld [vmem:[#allocation8 + $0x38] sm:$0xff]  }
 0x20d   :  { %v641_v54 = vrot.slane %v5634_v53, %v640_v47  ;;  %v5633_v47 = vld [vmem:[#allocation8 + $0x80] sm:$0xff]  }
 0x20e   :  { %3791 = vmatpush1.bf16.msra.mxu0 %v5524_v56  ;;  %v5604_v56 = vld [vmem:[#allocation8 + $0x70] sm:$0xff]  }
 0x20f   :  { %3832 = vmatpush1.bf16.msra.mxu1 %v5527_v58  ;;  %3792 = vmatprep.subr.bf16.mxu0 %v5532_v48  ;;  %v645_v58 = vrot.slane %v5634_v53, %v644_v49 }
 0x210   :  { %3833 = vmatprep.subr.bf16.mxu1 %v5535_v50 }
 0x212   :  { %3793 = vmatpush1.bf16.msra.mxu0 %v5530_v59 }
 0x213   :  { %3834 = vmatpush1.bf16.msra.mxu1 %v5533_v60  ;;  %3794 = vmatprep.subr.bf16.mxu0 %v5538_v61  ;;  %v5605_v60 = vld [vmem:[#allocation8 + $0x30] sm:$0xff]  }
 0x214   :  { %3835 = vmatprep.subr.bf16.mxu1 %v5541_v62  ;;  %v5606_v62 = vld [vmem:[#allocation8 + $0x68] sm:$0xff]  }
 0x216   :  { %3795 = vmatpush1.bf16.msra.mxu0 %v5536_v63 }
 0x217   :  { %3836 = vmatpush1.bf16.msra.mxu1 %v5539_v1  ;;  %3796 = vmatprep.subr.bf16.mxu0 %v5544_v2 }
 0x218   :  { %3837 = vmatprep.subr.bf16.mxu1 %v5547_v3 }
 0x21a   :  { %3797 = vmatpush1.bf16.msra.mxu0 %v5542_v8 }
 0x21b   :  { %3838 = vmatpush1.bf16.msra.mxu1 %v5545_v9  ;;  %3798 = vmatprep.subr.bf16.mxu0 %v5550_v4  ;;  %v5607_v9 = vld [vmem:[#allocation8 + $0x28] sm:$0xff]   ;;  %v5608_v4 = vld [vmem:[#allocation8 + $0x60] sm:$0xff]  }
 0x21c   :  { %3839 = vmatprep.subr.bf16.mxu1 %v5553_v7 }
 0x21e   :  { %3799 = vmatpush1.bf16.msra.mxu0 %v5548_v10  ;;  %v5619_v10 = vld [vmem:[#allocation8 + $0xb8] sm:$0xff]  }
 0x21f   :  { %3840 = vmatpush1.bf16.msra.mxu1 %v5551_v11  ;;  %3800 = vmatprep.subr.bf16.mxu0 %v5556_v33  ;;  %v5620_v11 = vld [vmem:[#allocation8 + $0xf0] sm:$0xff]   ;;  %v5609_v33 = vld [vmem:[#allocation8 + $0x20] sm:$0xff]  }
 0x220   :  { %3841 = vmatprep.subr.bf16.mxu1 %v5559_v12  ;;  %v5621_v12 = vld [vmem:[#allocation8 + $0xb0] sm:$0xff]  }
 0x222   :  { %3801 = vmatpush2.bf16.msra.mxu0 %v5554_v37  ;;  %v5610_v37 = vld [vmem:[#allocation8 + $0x58] sm:$0xff]  }
 0x223   :  { %3842 = vmatpush2.bf16.msra.mxu1 %v5557_v40  ;;  %3802 = vmatprep.subr.bf16.mxu0 %v5562_v13  ;;  %v5622_v40 = vld [vmem:[#allocation8 + $0xe8] sm:$0xff]   ;;  %v5611_v13 = vld [vmem:[#allocation8 + $0x18] sm:$0xff]  }
 0x224   :  { %3843 = vmatprep.subr.bf16.mxu1 %v5565_v14  ;;  %v5623_v14 = vld [vmem:[#allocation8 + $0xa8] sm:$0xff]  }
 0x226   :  { %3803 = vmatpush2.bf16.msra.mxu0 %v5560_v15  ;;  %v5612_v15 = vld [vmem:[#allocation8 + $0x50] sm:$0xff]  }
 0x227   :  { %3844 = vmatpush2.bf16.msra.mxu1 %v5563_v16  ;;  %3804 = vmatprep.subr.bf16.mxu0 %v5568_v17  ;;  %v5624_v16 = vld [vmem:[#allocation8 + $0xe0] sm:$0xff]   ;;  %v5613_v17 = vld [vmem:[#allocation8 + $0x10] sm:$0xff]  }
 0x228   :  { %3845 = vmatprep.subr.bf16.mxu1 %v5571_v18  ;;  %v5625_v18 = vld [vmem:[#allocation8 + $0xa0] sm:$0xff]  }
 0x22a   :  { %3805 = vmatpush2.bf16.msra.mxu0 %v5566_v19  ;;  %v5614_v19 = vld [vmem:[#allocation8 + $0x48] sm:$0xff]  }
 0x22b   :  { %3846 = vmatpush2.bf16.msra.mxu1 %v5569_v22  ;;  %3806 = vmatprep.subr.bf16.mxu0 %v5574_v23  ;;  %v5626_v22 = vld [vmem:[#allocation8 + $0xd8] sm:$0xff]   ;;  %v5615_v23 = vld [vmem:[#allocation8 + $0x8] sm:$0xff]  }
 0x22c   :  { %3847 = vmatprep.subr.bf16.mxu1 %v5577_v24  ;;  %v5627_v24 = vld [vmem:[#allocation8 + $0x98] sm:$0xff]  }
 0x22e   :  { %3807 = vmatpush2.bf16.msra.mxu0 %v5572_v27  ;;  %v5616_v27 = vld [vmem:[#allocation8 + $0x40] sm:$0xff]  }
 0x22f   :  { %3848 = vmatpush2.bf16.msra.mxu1 %v5575_v20  ;;  %3808 = vmatprep.subr.bf16.mxu0 %v5580_v21  ;;  %v5617_v20 = vld [vmem:[#allocation8] sm:$0xff]   ;;  %v3866_v21 = vmax.f32 %v5903_v46, 0.0 }
 0x230   :  { %3849 = vmatprep.subr.bf16.mxu1 %v5583_v28 }
 0x231   :  { %v3870_v28 = vpack.c.bf16 %v3866_v21, %v3866_v21 }
 0x232   :  { %3809 = vmatpush2.bf16.msra.mxu0 %v5578_v30  ;;  %v5628_v30 = vld [vmem:[#allocation8 + $0xd0] sm:$0xff]  }
 0x233   :  { %3850 = vmatpush2.bf16.msra.mxu1 %v5581_v31  ;;  %3810 = vmatprep.subr.bf16.mxu0 %v5586_v34  ;;  %v5629_v31 = vld [vmem:[#allocation8 + $0x90] sm:$0xff]  }
 0x234   :  { %3851 = vmatprep.subr.bf16.mxu1 %v5589_v35 }
 0x236   :  { %3811 = vmatpush2.bf16.msra.mxu0 %v5584_v36 }
 0x237   :  { %3852 = vmatpush2.bf16.msra.mxu1 %v5587_v26  ;;  %3812 = vmatprep.subr.bf16.mxu0 %v5592_v29 }
 0x238   :  { %3853 = vmatprep.subr.bf16.mxu1 %v5595_v32  ;;  %v5630_v32 = vld [vmem:[#allocation8 + $0xc8] sm:$0xff]  }
 0x23a   :  { %3813 = vmatpush2.bf16.msra.mxu0 %v5590_v39 }
 0x23b   :  { %3854 = vmatpush2.bf16.msra.mxu1 %v5593_v41  ;;  %3814 = vmatprep.subr.bf16.mxu0 %v5598_v44  ;;  %v5631_v41 = vld [vmem:[#allocation8 + $0x88] sm:$0xff]  }
 0x23c   :  { %3855 = vmatprep.subr.bf16.mxu1 %v5601_v45 }
 0x23e   :  { %3815 = vmatpush2.bf16.msra.mxu0 %v5596_v43 }
 0x23f   :  { %3856 = vmatpush2.bf16.msra.mxu1 %v5599_v25  ;;  %4780 = vmatprep.subr.bf16.mxu0 %v5602_v51  ;;  %v5632_v25 = vld [vmem:[#allocation8 + $0xc0] sm:$0xff]  }
 0x241   :  { %v3572_v48 = vpop.f32.mrf.mxu0  ;;  %3817 = vmatmul.mubr.bf16.vlgmr.msra.gmra.mxu0 %v5864_v5 }
 0x242   :  { %v3613_v50 = vpop.f32.mrf.mxu1  ;;  %3858 = vmatmul.mubr.bf16.vlgmr.msra.gmra.mxu1 %v5866_v6  ;;  %v3573_v59 = vadd.f32 %v3572_v48, %v641_v54  ;;  %4781 = vmatpush3.bf16.msra.mxu0 %v5603_v55  ;;  %v5618_v6 = vld [vmem:[#allocation8 + $0xf8] sm:$0xff]  }
 0x243   :  { %4169 = vmatprep.mubr.bf16.mxu0 %v3871_v52  ;;  %v3574_v57 = vpop.f32.mrf.mxu0  ;;  %4782 = vmatprep.subr.bf16.mxu0 %v5604_v56 }
 0x244   :  { %v3615_v61 = vpop.f32.mrf.mxu1  ;;  %v3614_v63 = vadd.f32 %v3613_v50, %v3573_v59  ;;  %v3575_v1 = vadd.f32 %v3574_v57, %v645_v58  ;;  %4802 = vmatprep.subr.bf16.mxu1 %v5618_v6 }
 0x245   :  { %v3576_v2 = vpop.f32.mrf.mxu0  ;;  %4803 = vmatpush3.bf16.msra.mxu1 %v5619_v10 }
 0x246   :  { %v3617_v3 = vpop.f32.mrf.mxu1  ;;  %v3616_v8 = vadd.f32 %v3615_v61, %v3575_v1  ;;  %4783 = vmatpush3.bf16.msra.mxu0 %v5605_v60  ;;  %4804 = vmatprep.subr.bf16.mxu1 %v5620_v11 }
 0x247   :  { %v3577_v7 = vpop.f32.mrf.mxu0  ;;  %4784 = vmatprep.subr.bf16.mxu0 %v5606_v62 }
 0x248   :  { %v3618_v5 = vpop.f32.mrf.mxu1 }
 0x249   :  { %4805 = vmatpush3.bf16.msra.mxu1 %v5621_v12 }
 0x24a   :  { %4785 = vmatpush3.bf16.msra.mxu0 %v5607_v9  ;;  %4806 = vmatprep.subr.bf16.mxu1 %v5622_v40 }
 0x24b   :  { %4786 = vmatprep.subr.bf16.mxu0 %v5608_v4 }
 0x24d   :  { %4807 = vmatpush3.bf16.msra.mxu1 %v5623_v14  ;;  %v4747_v14 = vld [vmem:[#allocation10] ss:$0 sm:$0xff] }
 0x24e   :  { %4787 = vmatpush3.bf16.msra.mxu0 %v5609_v33  ;;  %4808 = vmatprep.subr.bf16.mxu1 %v5624_v16 }
 0x24f   :  { %4788 = vmatprep.subr.bf16.mxu0 %v5610_v37 }
 0x251   :  { %4809 = vmatpush3.bf16.msra.mxu1 %v5625_v18 }
 0x252   :  { %4789 = vmatpush3.bf16.msra.mxu0 %v5611_v13  ;;  %4810 = vmatprep.subr.bf16.mxu1 %v5626_v22 }
 0x253   :  { %4790 = vmatprep.subr.bf16.mxu0 %v5612_v15 }
 0x255   :  { %4811 = vmatpush3.bf16.msra.mxu1 %v5627_v24 }
 0x256   :  { %4791 = vmatpush3.bf16.msra.mxu0 %v5613_v17  ;;  %4812 = vmatprep.subr.bf16.mxu1 %v5628_v30 }
 0x257   :  { %4792 = vmatprep.subr.bf16.mxu0 %v5614_v19 }
 0x259   :  { %4813 = vmatpush3.bf16.msra.mxu1 %v5629_v31 }
 0x25a   :  { %4793 = vmatpush3.bf16.msra.mxu0 %v5615_v23  ;;  %4814 = vmatprep.subr.bf16.mxu1 %v5630_v32 }
 0x25b   :  { %4794 = vmatprep.subr.bf16.mxu0 %v5616_v27 }
 0x25d   :  { %4815 = vmatpush3.bf16.msra.mxu1 %v5631_v41 }
 0x25e   :  { %4795 = vmatpush3.bf16.msra.mxu0 %v5617_v20  ;;  %4816 = vmatprep.subr.bf16.mxu1 %v5632_v25 }
 0x261   :  { %4170 = vmatmul.mubr.bf16.vlgmr.msra.gmra.mxu0 %v3870_v28  ;;  %4817 = vmatpush3.bf16.msra.mxu1 %v5633_v47 }
 0x281   :  { %v3654_v34 = vpop.f32.mrf.mxu0 }
 0x282   :  { %v3695_v35 = vpop.f32.mrf.mxu1  ;;  %v3655_v36 = vadd.f32 %v3654_v34, %v3614_v63 }
 0x283   :  { %v3656_v26 = vpop.f32.mrf.mxu0 }
 0x284   :  { %v3697_v29 = vpop.f32.mrf.mxu1  ;;  %v3696_v38 = vadd.f32 %v3695_v35, %v3655_v36  ;;  %v3657_v39 = vadd.f32 %v3656_v26, %v3616_v8 }
 0x285   :  { %v3658_v44 = vpop.f32.mrf.mxu0 }
 0x286   :  { %v3699_v45 = vpop.f32.mrf.mxu1  ;;  %v3698_v46 = vadd.f32 %v3697_v29, %v3657_v39 }
 0x287   :  { %v3659_v42 = vpop.f32.mrf.mxu0 }
 0x288   :  { %v3700_v43 = vpop.f32.mrf.mxu1 }
 0x2c1   :  { %v3736_v51 = vpop.f32.mrf.mxu0 }
 0x2c2   :  { %v3777_v0 = vpop.f32.mrf.mxu1  ;;  %v3737_v49 = vadd.f32 %v3736_v51, %v3696_v38 }
 0x2c3   :  { %v3738_v53 = vpop.f32.mrf.mxu0 }
 0x2c4   :  { %v3779_v54 = vpop.f32.mrf.mxu1  ;;  %v3778_v55 = vadd.f32 %v3777_v0, %v3737_v49  ;;  %v3739_v50 = vadd.f32 %v3738_v53, %v3698_v46 }
 0x2c5   :  { %v3740_v56 = vpop.f32.mrf.mxu0 }
 0x2c6   :  { %v3781_v52 = vpop.f32.mrf.mxu1  ;;  %v3780_v57 = vadd.f32 %v3779_v54, %v3739_v50 }
 0x2c7   :  { %v3741_v58 = vpop.f32.mrf.mxu0 }
 0x2c8   :  { %v3782_v48 = vpop.f32.mrf.mxu1 }
 0x301   :  { %v3818_v59 = vpop.f32.mrf.mxu0 }
 0x302   :  { %v3859_v60 = vpop.f32.mrf.mxu1  ;;  %v3819_v61 = vadd.f32 %v3818_v59, %v3778_v55 }
 0x303   :  { %v3820_v62 = vpop.f32.mrf.mxu0 }
 0x304   :  { %v3861_v63 = vpop.f32.mrf.mxu1  ;;  %v3860_v1 = vadd.f32 %v3859_v60, %v3819_v61  ;;  %v3821_v2 = vadd.f32 %v3820_v62, %v3780_v57 }
 0x305   :  { %v3822_v3 = vpop.f32.mrf.mxu0 }
 0x306   :  { %v3863_v8 = vpop.f32.mrf.mxu1  ;;  %v3862_v9 = vadd.f32 %v3861_v63, %v3821_v2  ;;  %v3868_v4 = vmax.f32 %v3860_v1, 0.0 }
 0x307   :  { %v3823_v7 = vpop.f32.mrf.mxu0 }
 0x308   :  { %v3864_v5 = vpop.f32.mrf.mxu1  ;;  %v3869_v6 = vmax.f32 %v3862_v9, 0.0  ;;  %v3872_v11 = vpack.c.bf16 %v3868_v4, %v3868_v4 }
 0x30a   :  { %v3873_v10 = vpack.c.bf16 %v3869_v6, %v3869_v6 }
 0x30c   :  { %4209 = vmatprep.mubr.bf16.mxu1 %v3873_v10 }
 0x30d   :  { %4210 = vmatmul.mubr.bf16.vlgmr.msra.gmra.mxu1 %v3872_v11 }
 0x321   :  { %v4796_v33 = vpop.f32.mrf.mxu0 }
 0x323   :  { %v4797_v12 = vpop.f32.mrf.mxu0 }
 0x324   :  { %v4798_v37 = vadd.f32 %v4797_v12, %v4796_v33 }
 0x325   :  { %v4799_v40 = vpop.f32.mrf.mxu0 }
 0x326   :  { %v4172_v17 = vadd.f32 %v4798_v37, %v4747_v14 }
 0x327   :  { %v4800_v13 = vpop.f32.mrf.mxu0 }
 0x3cd   :  { %v4818_v15 = vpop.f32.mrf.mxu1 }
 0x3cf   :  { %v4819_v16 = vpop.f32.mrf.mxu1 }
 0x3d0   :  { %v4820_v18 = vadd.f32 %v4819_v16, %v4818_v15 }
 0x3d1   :  { %v4821_v19 = vpop.f32.mrf.mxu1 }
 0x3d2   :  { %v4212_v22 = vadd.f32 %v4820_v18, %v4172_v17 }
 0x3d3   :  { %v4822_v23 = vpop.f32.mrf.mxu1 }
 0x3d4   :  { %4217 = vst [vmem:[#allocation11] sm:$0xff] %v4212_v22 }
 0x3d5   :  { %5746 = shalt.err (!%p5743_p1)
}
 0x3d6   :  { %4227 = dma.vmem_to_hbm [thread:$0]  %s4225_s4, 128, %s5923_s5, [#allocation4]  }
 0x3d7   :  { %5761 = dma.done.wait [#allocation4], 128  }
 0x3d8   :  { %5762 = vsyncadd [#allocation4], 4294967168 }
 0x3d9   :  { %4231 = vsyncpa [#allocation3], 1 }
 0x3da   :  { %4232 = vsyncpa [#allocation6], 1 }
 0x3db   :  { %4233 = vsyncpa [#allocation9], 1 }
 0x3dc   :  { %4234 = vsyncpa [#allocation4], 1 }

</bundles_post_ra>
